<compile_context>
chip_gen: v6e
topology: v6e:2x2x1
jax: 0.10.0
libtpu: 0.0.40
codegen_flags: <defaults>
</compile_context>

<pallas_src>
import jax
import jax.numpy as jnp
from jax.experimental import pallas as pl
from jax.experimental.pallas import tpu as pltpu

_TILE_I = 512     # rows per grid step (multiple of 8)
_TILE_J = 512     # lane-chunk width of the inner loop (multiple of 128)
_PAD_Y = -1.0e30  # padded y sentinel: pairs with a padded column never count
_BIG = 3.0e38     # "never less than anything real": censored / padded rows


def _cindex_kernel(yi_ref, yhi_ref, si_ref,      # column blocks (TILE_I, 1)
                   yrow_ref, yhrow_ref,          # full rows     (1, npad)
                   valid_ref, conc_ref):         # per-row-tile partials (1, TILE_J)
    npad = yrow_ref.shape[1]
    nj = npad // _TILE_J

    # Fold the status-i condition into y_i once per row tile: if status_i != 1
    # (including padded rows), y_i_eff = +BIG so (y_i_eff - y_j) < 0 is never true.
    s_i = si_ref[...] == 1.0                       # (TI, 1) bool
    y_i = jnp.where(s_i, yi_ref[...], _BIG)        # (TI, 1)
    yh_i = yhi_ref[...]                            # (TI, 1)

    def body(j, carry):
        v_c, c_c = carry                           # each (1, TILE_J) f32
        off = pl.multiple_of(j * _TILE_J, _TILE_J)
        y_j = yrow_ref[:, pl.ds(off, _TILE_J)]     # (1, TJ)
        yh_j = yhrow_ref[:, pl.ds(off, _TILE_J)]   # (1, TJ)

        y_lt = (y_i - y_j) < 0.0                   # (TI, TJ): valid half-pair
        yh_lt = (yh_i - yh_j) < 0.0                # (TI, TJ)
        v_f = y_lt.astype(jnp.float32)
        c_f = (y_lt & yh_lt).astype(jnp.float32)   # concordant half-pair

        # Sublane-axis reduce: mostly plain vreg adds (VALU), tiny XLU tail.
        v_c = v_c + jnp.sum(v_f, axis=0, keepdims=True)
        c_c = c_c + jnp.sum(c_f, axis=0, keepdims=True)
        return v_c, c_c

    zero = jnp.zeros((1, _TILE_J), jnp.float32)
    v_c, c_c = jax.lax.fori_loop(0, nj, body, (zero, zero))

    valid_ref[...] = v_c
    conc_ref[...] = c_c


def _round_up(x, m):
    return ((x + m - 1) // m) * m


@jax.jit
def cindex_forward(y, y_hat, status):
    """Pallas c-index. Returns a scalar f32 (the .item() of the PyTorch module)."""
    # TODO(synk): the PyTorch module returns a host Python float via .item();
    # here we return a JAX 0-d array instead.
    y = jnp.asarray(y, jnp.float32).reshape(-1)
    y_hat = jnp.asarray(y_hat, jnp.float32).reshape(-1)
    status = jnp.asarray(status, jnp.float32).reshape(-1)

    n = y.shape[0]
    npad = _round_up(max(n, 1), max(_TILE_I, _TILE_J))
    pad = npad - n

    # Padded entries: y=-1e30, status=0 -> every pair involving a padded row or
    # column contributes 0 to both counts (no masking needed inside the kernel).
    y_p = jnp.pad(y, (0, pad), constant_values=_PAD_Y)
    yh_p = jnp.pad(y_hat, (0, pad), constant_values=0.0)
    s_p = jnp.pad(status, (0, pad), constant_values=0.0)

    y_col = y_p.reshape(npad, 1)
    yh_col = yh_p.reshape(npad, 1)
    s_col = s_p.reshape(npad, 1)
    y_row = y_p.reshape(1, npad)
    yh_row = yh_p.reshape(1, npad)

    num_i = npad // _TILE_I

    col_spec = pl.BlockSpec((_TILE_I, 1), lambda i: (i, 0))
    row_spec = pl.BlockSpec((1, npad), lambda i: (0, 0))
    out_spec = pl.BlockSpec((1, _TILE_J), lambda i: (i, 0))

    valid_p, conc_p = pl.pallas_call(
        _cindex_kernel,
        out_shape=(jax.ShapeDtypeStruct((num_i, _TILE_J), jnp.float32),
                   jax.ShapeDtypeStruct((num_i, _TILE_J), jnp.float32)),
        grid=(num_i,),
        in_specs=[col_spec, col_spec, col_spec, row_spec, row_spec],
        out_specs=(out_spec, out_spec),
        compiler_params=pltpu.CompilerParams(
            dimension_semantics=("parallel",),       # row tiles are independent
            vmem_limit_bytes=32 * 1024 * 1024),
        cost_estimate=pl.CostEstimate(
            flops=8 * npad * npad,
            transcendentals=0,
            bytes_accessed=(3 * npad * 4)                 # column arrays, read once
                           + (2 * npad * 4 * num_i)       # row arrays, revisited per row tile
                           + (2 * num_i * _TILE_J * 4)),  # partial-sum outputs
    )(y_col, yh_col, s_col, y_row, yh_row)

    # Antisymmetry: full-matrix sums are exactly twice the "y_i < y_j & status_i" half.
    valid_sum = jnp.sum(valid_p)
    conc_sum = jnp.sum(conc_p)
    return (2.0 * conc_sum) / (2.0 * valid_sum + 1e-6)


def _reference_cindex(y, y_hat, status):
    """Pure-JAX reference mirroring the PyTorch module exactly."""
    y = jnp.asarray(y, jnp.float32)
    y_hat = jnp.asarray(y_hat, jnp.float32)
    status = jnp.asarray(status, jnp.float32)
    n = y.shape[0]
    y_diff = y[:, None] - y[None, :]
    yh_diff = y_hat[:, None] - y_hat[None, :]
    s_i = status[:, None] == 1.0
    s_j = status[None, :] == 1.0
    valid = ((y_diff < 0) & s_i) | ((y_diff > 0) & s_j)
    conc = ((y_diff < 0) & (yh_diff < 0) & s_i) | ((y_diff > 0) & (yh_diff > 0) & s_j)
    eye = jnp.eye(n, dtype=bool)
    valid = valid & ~eye
    conc = conc & ~eye
    return conc.astype(jnp.float32).sum() / (valid.astype(jnp.float32).sum() + 1e-6)


if __name__ == "__main__":
    key = jax.random.PRNGKey(0)

    # Small test: N = 8 survival times / risk scores / event indicators.
    N = 8
    k1, k2, k3, k4, k5, k6 = jax.random.split(key, 6)
    y = jax.random.uniform(k1, (N,), jnp.float32, 0.0, 10.0)
    y_hat = jax.random.uniform(k2, (N,), jnp.float32, 0.0, 10.0)
    status = (jax.random.uniform(k3, (N,)) > 0.5).astype(jnp.float32)

    out = jax.block_until_ready(cindex_forward(y, y_hat, status))
    ref = _reference_cindex(y, y_hat, status)
    assert out.shape == ()
    assert jnp.allclose(out, ref, atol=1e-6, rtol=1e-6), (out, ref)

    # Second test exercises the padding path and multiple inner-loop branches.
    N2 = 300
    y2 = jax.random.uniform(k4, (N2,), jnp.float32, 0.0, 10.0)
    y_hat2 = jax.random.uniform(k5, (N2,), jnp.float32, 0.0, 10.0)
    status2 = (jax.random.uniform(k6, (N2,)) > 0.5).astype(jnp.float32)

    out2 = jax.block_until_ready(cindex_forward(y2, y_hat2, status2))
    ref2 = _reference_cindex(y2, y_hat2, status2)
    assert jnp.allclose(out2, ref2, atol=1e-5, rtol=1e-5), (out2, ref2)

    print("KERNEL_OK")
</pallas_src>

<mosaic_0001>
module attributes {stable_mosaic.version = 11 : i64} {
  func.func @_cindex_kernel(%arg0: i32, %arg1: memref<512x1xf32, #tpu.memory_space<vmem>>, %arg2: memref<512x1xf32, #tpu.memory_space<vmem>>, %arg3: memref<512x1xf32, #tpu.memory_space<vmem>>, %arg4: memref<1x512xf32, #tpu.memory_space<vmem>>, %arg5: memref<1x512xf32, #tpu.memory_space<vmem>>, %arg6: memref<1x512xf32, #tpu.memory_space<vmem>>, %arg7: memref<1x512xf32, #tpu.memory_space<vmem>>) attributes {dimension_semantics = [#tpu.dimension_semantics<parallel>], iteration_bounds = array<i64: 1>, scalar_prefetch = 0 : i64, scratch_operands = 0 : i64, tpu.core_type = #tpu.core_type<tc>, window_params = [{transform_indices = @transform_0, window_bounds = array<i64: 512, 1>}, {transform_indices = @transform_1, window_bounds = array<i64: 512, 1>}, {transform_indices = @transform_2, window_bounds = array<i64: 512, 1>}, {pipeline_mode = #tpu.pipeline_mode<synchronous>, transform_indices = @transform_3, window_bounds = array<i64: 1, 512>}, {pipeline_mode = #tpu.pipeline_mode<synchronous>, transform_indices = @transform_4, window_bounds = array<i64: 1, 512>}, {transform_indices = @transform_5, window_bounds = array<i64: 1, 512>}, {transform_indices = @transform_6, window_bounds = array<i64: 1, 512>}]} {
    %c0 = arith.constant 0 : index
    %c0_0 = arith.constant 0 : index
    %0 = vector.load %arg3[%c0, %c0_0] : memref<512x1xf32, #tpu.memory_space<vmem>>, vector<512x1xf32>
    %cst = arith.constant 1.000000e+00 : f32
    %1 = vector.broadcast %cst : f32 to vector<512x1xf32>
    %2 = arith.cmpf oeq, %0, %1 : vector<512x1xf32>
    %c0_1 = arith.constant 0 : index
    %c0_2 = arith.constant 0 : index
    %3 = vector.load %arg1[%c0_1, %c0_2] : memref<512x1xf32, #tpu.memory_space<vmem>>, vector<512x1xf32>
    %cst_3 = arith.constant 3.000000e+38 : f32
    %4 = vector.broadcast %cst_3 : f32 to vector<512x1xf32>
    %5 = arith.select %2, %3, %4 : vector<512x1xi1>, vector<512x1xf32>
    %c0_4 = arith.constant 0 : index
    %c0_5 = arith.constant 0 : index
    %6 = vector.load %arg2[%c0_4, %c0_5] : memref<512x1xf32, #tpu.memory_space<vmem>>, vector<512x1xf32>
    %cst_6 = arith.constant 0.000000e+00 : f32
    %7 = vector.broadcast %cst_6 : f32 to vector<1x512xf32>
    %c0_i32 = arith.constant 0 : i32
    %c512_i32 = arith.constant 512 : i32
    %8 = arith.muli %c0_i32, %c512_i32 : i32
    %9 = tpu.assume_multiple %8, 512 : i32
    %c0_7 = arith.constant 0 : index
    %10 = arith.index_cast %9 : i32 to index
    %11 = vector.load %arg4[%c0_7, %10] : memref<1x512xf32, #tpu.memory_space<vmem>>, vector<1x512xf32>
    %c0_8 = arith.constant 0 : index
    %12 = arith.index_cast %9 : i32 to index
    %13 = vector.load %arg5[%c0_8, %12] : memref<1x512xf32, #tpu.memory_space<vmem>>, vector<1x512xf32>
    %14 = vector.broadcast %5 : vector<512x1xf32> to vector<512x512xf32>
    %15 = vector.broadcast %11 : vector<1x512xf32> to vector<512x512xf32>
    %16 = arith.subf %14, %15 : vector<512x512xf32>
    %cst_9 = arith.constant 0.000000e+00 : f32
    %17 = vector.broadcast %cst_9 : f32 to vector<512x512xf32>
    %18 = arith.cmpf olt, %16, %17 : vector<512x512xf32>
    %19 = vector.broadcast %6 : vector<512x1xf32> to vector<512x512xf32>
    %20 = vector.broadcast %13 : vector<1x512xf32> to vector<512x512xf32>
    %21 = arith.subf %19, %20 : vector<512x512xf32>
    %cst_10 = arith.constant 0.000000e+00 : f32
    %22 = vector.broadcast %cst_10 : f32 to vector<512x512xf32>
    %23 = arith.cmpf olt, %21, %22 : vector<512x512xf32>
    %24 = arith.extui %18 : vector<512x512xi1> to vector<512x512xi32>
    %25 = arith.sitofp %24 : vector<512x512xi32> to vector<512x512xf32>
    %26 = arith.andi %18, %23 : vector<512x512xi1>
    %27 = arith.extui %26 : vector<512x512xi1> to vector<512x512xi32>
    %28 = arith.sitofp %27 : vector<512x512xi32> to vector<512x512xf32>
    %cst_11 = arith.constant dense<0.000000e+00> : vector<512xf32>
    %29 = vector.multi_reduction <add>, %25, %cst_11 [0] : vector<512x512xf32> to vector<512xf32>
    %30 = vector.shape_cast %29 : vector<512xf32> to vector<1x512xf32>
    %31 = arith.addf %7, %30 : vector<1x512xf32>
    %cst_12 = arith.constant dense<0.000000e+00> : vector<512xf32>
    %32 = vector.multi_reduction <add>, %28, %cst_12 [0] : vector<512x512xf32> to vector<512xf32>
    %33 = vector.shape_cast %32 : vector<512xf32> to vector<1x512xf32>
    %34 = arith.addf %7, %33 : vector<1x512xf32>
    %c1_i32 = arith.constant 1 : i32
    %c0_13 = arith.constant 0 : index
    %c0_14 = arith.constant 0 : index
    %35 = vector.load %arg6[%c0_13, %c0_14] : memref<1x512xf32, #tpu.memory_space<vmem>>, vector<1x512xf32>
    tpu.vector_store %arg6[%c0_13, %c0_14], %31 {strides = array<i32>} : memref<1x512xf32, #tpu.memory_space<vmem>>, vector<1x512xf32>,
    %c0_15 = arith.constant 0 : index
    %c0_16 = arith.constant 0 : index
    %36 = vector.load %arg7[%c0_15, %c0_16] : memref<1x512xf32, #tpu.memory_space<vmem>>, vector<1x512xf32>
    tpu.vector_store %arg7[%c0_15, %c0_16], %34 {strides = array<i32>} : memref<1x512xf32, #tpu.memory_space<vmem>>, vector<1x512xf32>,
    return
  }
  func.func @transform_0(%arg0: i32) -> (i32, i32) {
    %c0_i32 = arith.constant 0 : i32
    %c0_i32_0 = arith.constant 0 : i32
    return %arg0, %c0_i32 : i32, i32
  }
  func.func @transform_1(%arg0: i32) -> (i32, i32) {
    %c0_i32 = arith.constant 0 : i32
    %c0_i32_0 = arith.constant 0 : i32
    return %arg0, %c0_i32 : i32, i32
  }
  func.func @transform_2(%arg0: i32) -> (i32, i32) {
    %c0_i32 = arith.constant 0 : i32
    %c0_i32_0 = arith.constant 0 : i32
    return %arg0, %c0_i32 : i32, i32
  }
  func.func @transform_3(%arg0: i32) -> (i32, i32) {
    %c0_i32 = arith.constant 0 : i32
    %c0_i32_0 = arith.constant 0 : i32
    %c0_i32_1 = arith.constant 0 : i32
    return %c0_i32, %c0_i32_0 : i32, i32
  }
  func.func @transform_4(%arg0: i32) -> (i32, i32) {
    %c0_i32 = arith.constant 0 : i32
    %c0_i32_0 = arith.constant 0 : i32
    %c0_i32_1 = arith.constant 0 : i32
    return %c0_i32, %c0_i32_0 : i32, i32
  }
  func.func @transform_5(%arg0: i32) -> (i32, i32) {
    %c0_i32 = arith.constant 0 : i32
    %c0_i32_0 = arith.constant 0 : i32
    return %arg0, %c0_i32 : i32, i32
  }
  func.func @transform_6(%arg0: i32) -> (i32, i32) {
    %c0_i32 = arith.constant 0 : i32
    %c0_i32_0 = arith.constant 0 : i32
    return %arg0, %c0_i32 : i32, i32
  }
}

</mosaic_0001>

<bundles_post_ra>
// kernel: cindex_forward.1
= control target key start
LH: loop header
LB: loop body
LE: loop exit
PB: predicated region body
PF: predicated region fallthrough
CT: control target
= control target key end

     0   :  { %v4479_v0 = vmov 0   ;;  %s10097_s0 = inlined_call_operand.vmem [shape: f32[512,1], index: 0, kind: input, shape index: {}]   ;;  %s10098_s2 = inlined_call_operand.vmem [shape: f32[512,1], index: 2, kind: input, shape index: {}]   ;;  %s10099_s3 = inlined_call_operand.vmem [shape: f32[1,512], index: 3, kind: input, shape index: {}]   ;;  %s10100_s1 = inlined_call_operand.vmem [shape: f32[512,1], index: 1, kind: input, shape index: {}]   ;;  %s10101_s4 = inlined_call_operand.vmem [shape: f32[1,512], index: 4, kind: input, shape index: {}]   ;;  %s10102_s5 = inlined_call_operand.vmem [shape: f32[1,512], index: 5, kind: output, shape index: {0}]   ;;  %s10103_s6 = inlined_call_operand.vmem [shape: f32[1,512], index: 6, kind: output, shape index: {1}]  }
   0x1   :  { %4478 = vset.pattern.permute.xlu1 %v4479_v0  ;;  %4477 = vset.pattern.permute.xlu0 %v4479_v0  ;;  %v24_v1 = vld [vmem:[%s10098_s2 + $0x10] sm:$0xff]  ;;  %v22_v3 = vld [vmem:[%s10098_s2] sm:$0xff]  ;;  %v25_v5 = vld [vmem:[%s10098_s2 + $0x18] sm:$0xff] }
   0x2   :  { %v152_v2 = vld [vmem:[%s10097_s0 + $0x10] sm:$0xff]  ;;  %vm88_vm0 = vcmp.eq.f32.partialorder %v24_v1, 1.0  ;;  %vm86_vm1 = vcmp.eq.f32.partialorder %v22_v3, 1.0  ;;  %v150_v4 = vld [vmem:[%s10097_s0] sm:$0xff]  ;;  %v153_v6 = vld [vmem:[%s10097_s0 + $0x18] sm:$0xff]  ;;  %vm89_vm2 = vcmp.eq.f32.partialorder %v25_v5, 1.0 }
   0x3   :  { %v216_v7 = vsel %vm88_vm0, %v152_v2, 3e+38  ;;  %v214_v8 = vsel %vm86_vm1, %v150_v4, 3e+38  ;;  %v23_v9 = vld [vmem:[%s10098_s2 + $0x8] sm:$0xff]  ;;  %v26_v15 = vld [vmem:[%s10098_s2 + $0x20] sm:$0xff] }
   0x4   :  { %356 = vperm.xlu1 %4478, %v216_v7   ;;  %346 = vperm.xlu0 %4477, %v214_v8   ;;  %v217_v10 = vsel %vm89_vm2, %v153_v6, 3e+38  ;;  %vm87_vm3 = vcmp.eq.f32.partialorder %v23_v9, 1.0  ;;  %v151_v11 = vld [vmem:[%s10097_s0 + $0x8] sm:$0xff]  ;;  %v29_v16 = vld [vmem:[%s10098_s2 + $0x38] sm:$0xff]  ;;  %vm90_vm5 = vcmp.eq.f32.partialorder %v26_v15, 1.0 }
   0x5   :  { %v27_v12 = vld [vmem:[%s10098_s2 + $0x28] sm:$0xff]  ;;  %v215_v13 = vsel %vm87_vm3, %v151_v11, 3e+38  ;;  %v154_v17 = vld [vmem:[%s10097_s0 + $0x20] sm:$0xff]  ;;  %v28_v18 = vld [vmem:[%s10098_s2 + $0x30] sm:$0xff]  ;;  %vm93_vm6 = vcmp.eq.f32.partialorder %v29_v16, 1.0 }
   0x6   :  { %vm91_vm4 = vcmp.eq.f32.partialorder %v27_v12, 1.0  ;;  %v155_v14 = vld [vmem:[%s10097_s0 + $0x28] sm:$0xff]  ;;  %v30_v21 = vld [vmem:[%s10098_s2 + $0x40] sm:$0xff]  ;;  %v218_v22 = vsel %vm90_vm5, %v154_v17, 3e+38  ;;  %v157_v23 = vld [vmem:[%s10097_s0 + $0x38] sm:$0xff] }
   0x7   :  { %v219_v19 = vsel %vm91_vm4, %v155_v14, 3e+38  ;;  %v31_v20 = vld [vmem:[%s10098_s2 + $0x48] sm:$0xff]  ;;  %vm92_vm7 = vcmp.eq.f32.partialorder %v28_v18, 1.0  ;;  %v156_v24 = vld [vmem:[%s10097_s0 + $0x30] sm:$0xff]  ;;  %v33_v25 = vld [vmem:[%s10098_s2 + $0x58] sm:$0xff] }
   0x8   :  { %361 = vperm.xlu1 %4478, %v217_v10   ;;  %351 = vperm.xlu0 %4477, %v215_v13   ;;  %vm95_vm8 = vcmp.eq.f32.partialorder %v31_v20, 1.0  ;;  %v159_v26 = vld [vmem:[%s10097_s0 + $0x48] sm:$0xff]  ;;  %vm94_vm9 = vcmp.eq.f32.partialorder %v30_v21, 1.0  ;;  %v158_v27 = vld [vmem:[%s10097_s0 + $0x40] sm:$0xff]  ;;  %v32_v28 = vld [vmem:[%s10098_s2 + $0x50] sm:$0xff]  ;;  %vm97_vm10 = vcmp.eq.f32.partialorder %v33_v25, 1.0 }
   0x9   :  { %v161_v29 = vld [vmem:[%s10097_s0 + $0x58] sm:$0xff]  ;;  %vm96_vm11 = vcmp.eq.f32.partialorder %v32_v28, 1.0  ;;  %v160_v30 = vld [vmem:[%s10097_s0 + $0x50] sm:$0xff]  ;;  %v221_v31 = vsel %vm93_vm6, %v157_v23, 3e+38  ;;  %v35_v33 = vld [vmem:[%s10098_s2 + $0x68] sm:$0xff] }
   0xa   :  { %v220_v32 = vsel %vm92_vm7, %v156_v24, 3e+38  ;;  %v34_v34 = vld [vmem:[%s10098_s2 + $0x60] sm:$0xff]  ;;  %v223_v35 = vsel %vm95_vm8, %v159_v26, 3e+38  ;;  %v37_v37 = vld [vmem:[%s10098_s2 + $0x78] sm:$0xff] }
   0xb   :  { %v222_v36 = vsel %vm94_vm9, %v158_v27, 3e+38  ;;  %v36_v38 = vld [vmem:[%s10098_s2 + $0x70] sm:$0xff]  ;;  %v225_v39 = vsel %vm97_vm10, %v161_v29, 3e+38  ;;  %v163_v41 = vld [vmem:[%s10097_s0 + $0x68] sm:$0xff] }
   0xc   :  { %371 = vperm.xlu1 %4478, %v219_v19   ;;  %366 = vperm.xlu0 %4477, %v218_v22   ;;  %v224_v40 = vsel %vm96_vm11, %v160_v30, 3e+38  ;;  %vm99_vm12 = vcmp.eq.f32.partialorder %v35_v33, 1.0  ;;  %vm98_vm13 = vcmp.eq.f32.partialorder %v34_v34, 1.0  ;;  %v162_v42 = vld [vmem:[%s10097_s0 + $0x60] sm:$0xff]  ;;  %v39_v43 = vld [vmem:[%s10098_s2 + $0x88] sm:$0xff] }
   0xd   :  { %v38_v44 = vld [vmem:[%s10098_s2 + $0x80] sm:$0xff]  ;;  %vm101_vm14 = vcmp.eq.f32.partialorder %v37_v37, 1.0  ;;  %v165_v45 = vld [vmem:[%s10097_s0 + $0x78] sm:$0xff]  ;;  %vm100_vm15 = vcmp.eq.f32.partialorder %v36_v38, 1.0  ;;  %v164_v46 = vld [vmem:[%s10097_s0 + $0x70] sm:$0xff]  ;;  %vm103_vm0 = vcmp.eq.f32.partialorder %v39_v43, 1.0 }
   0xe   :  { %v41_v47 = vld [vmem:[%s10098_s2 + $0x98] sm:$0xff]  ;;  %v167_v48 = vld [vmem:[%s10097_s0 + $0x88] sm:$0xff]  ;;  %vm102_vm1 = vcmp.eq.f32.partialorder %v38_v44, 1.0  ;;  %v166_v49 = vld [vmem:[%s10097_s0 + $0x80] sm:$0xff]  ;;  %v227_v51 = vsel %vm99_vm12, %v163_v41, 3e+38 }
   0xf   :  { %v40_v50 = vld [vmem:[%s10098_s2 + $0x90] sm:$0xff]  ;;  %v226_v52 = vsel %vm98_vm13, %v162_v42, 3e+38  ;;  %vm105_vm2 = vcmp.eq.f32.partialorder %v41_v47, 1.0  ;;  %v169_v53 = vld [vmem:[%s10097_s0 + $0x98] sm:$0xff]  ;;  %v43_v59 = vld [vmem:[%s10098_s2 + $0xa8] sm:$0xff] }
  0x10   :  { %381 = vperm.xlu1 %4478, %v221_v31   ;;  %376 = vperm.xlu0 %4477, %v220_v32   ;;  %v229_v54 = vsel %vm101_vm14, %v165_v45, 3e+38  ;;  %v228_v55 = vsel %vm100_vm15, %v164_v46, 3e+38  ;;  %vm104_vm3 = vcmp.eq.f32.partialorder %v40_v50, 1.0  ;;  %v168_v56 = vld [vmem:[%s10097_s0 + $0x90] sm:$0xff] }
  0x11   :  { %v4640_v57 = vsel %vm103_vm0, %v167_v48, 3e+38  ;;  %v4642_v58 = vsel %vm102_vm1, %v166_v49, 3e+38  ;;  %v42_v60 = vld [vmem:[%s10098_s2 + $0xa0] sm:$0xff]  ;;  %v171_v62 = vld [vmem:[%s10097_s0 + $0xa8] sm:$0xff] }
  0x12   :  { %v4650_v61 = vsel %vm105_vm2, %v169_v53, 3e+38  ;;  %v45_v63 = vld [vmem:[%s10098_s2 + $0xb8] sm:$0xff]  ;;  %v44_v0 = vld [vmem:[%s10098_s2 + $0xb0] sm:$0xff]  ;;  %v4661_v1 = vsel %vm104_vm3, %v168_v56, 3e+38 }
  0x13   :  { %v170_v2 = vld [vmem:[%s10097_s0 + $0xa0] sm:$0xff]  ;;  %v47_v3 = vld [vmem:[%s10098_s2 + $0xc8] sm:$0xff]  ;;  %vm107_vm4 = vcmp.eq.f32.partialorder %v43_v59, 1.0  ;;  %vm106_vm5 = vcmp.eq.f32.partialorder %v42_v60, 1.0  ;;  %v173_v5 = vld [vmem:[%s10097_s0 + $0xb8] sm:$0xff]  ;;  %vm109_vm6 = vcmp.eq.f32.partialorder %v45_v63, 1.0 }
  0x14   :  { %391 = vperm.xlu1 %4478, %v223_v35   ;;  %386 = vperm.xlu0 %4477, %v222_v36   ;;  %v46_v4 = vld [vmem:[%s10098_s2 + $0xc0] sm:$0xff]  ;;  %v172_v6 = vld [vmem:[%s10097_s0 + $0xb0] sm:$0xff]  ;;  %v49_v7 = vld [vmem:[%s10098_s2 + $0xd8] sm:$0xff]  ;;  %vm108_vm7 = vcmp.eq.f32.partialorder %v44_v0, 1.0  ;;  %vm111_vm8 = vcmp.eq.f32.partialorder %v47_v3, 1.0 }
  0x15   :  { %v175_v8 = vld [vmem:[%s10097_s0 + $0xc8] sm:$0xff]  ;;  %v174_v9 = vld [vmem:[%s10097_s0 + $0xc0] sm:$0xff]  ;;  %v48_v10 = vld [vmem:[%s10098_s2 + $0xd0] sm:$0xff]  ;;  %vm110_vm9 = vcmp.eq.f32.partialorder %v46_v4, 1.0  ;;  %vm113_vm10 = vcmp.eq.f32.partialorder %v49_v7, 1.0 }
  0x16   :  { %v177_v11 = vld [vmem:[%s10097_s0 + $0xd8] sm:$0xff]  ;;  %vm112_vm11 = vcmp.eq.f32.partialorder %v48_v10, 1.0  ;;  %v176_v12 = vld [vmem:[%s10097_s0 + $0xd0] sm:$0xff]  ;;  %v51_v13 = vld [vmem:[%s10098_s2 + $0xe8] sm:$0xff]  ;;  %v4700_v14 = vsel %vm107_vm4, %v171_v62, 3e+38 }
  0x17   :  { %v4703_v15 = vsel %vm106_vm5, %v170_v2, 3e+38  ;;  %vm115_vm12 = vcmp.eq.f32.partialorder %v51_v13, 1.0  ;;  %v179_v16 = vld [vmem:[%s10097_s0 + $0xe8] sm:$0xff]  ;;  %v4709_v17 = vsel %vm109_vm6, %v173_v5, 3e+38 }
  0x18   :  { %401 = vperm.xlu1 %4478, %v225_v39   ;;  %396 = vperm.xlu0 %4477, %v224_v40   ;;  %v4712_v18 = vsel %vm108_vm7, %v172_v6, 3e+38  ;;  %v4715_v19 = vsel %vm111_vm8, %v175_v8, 3e+38  ;;  %v4717_v20 = vsel %vm110_vm9, %v174_v9, 3e+38 }
  0x19   :  { %v4719_v21 = vsel %vm113_vm10, %v177_v11, 3e+38  ;;  %v4721_v22 = vsel %vm112_vm11, %v176_v12, 3e+38  ;;  %v4723_v23 = vsel %vm115_vm12, %v179_v16, 3e+38 }
  0x1a   :  { %v55_v24 = vld [vmem:[%s10098_s2 + $0x108] sm:$0xff]  ;;  %v54_v26 = vld [vmem:[%s10098_s2 + $0x100] sm:$0xff]  ;;  %v57_v28 = vld [vmem:[%s10098_s2 + $0x118] sm:$0xff] }
  0x1b   :  { %v183_v25 = vld [vmem:[%s10097_s0 + $0x108] sm:$0xff]  ;;  %vm119_vm13 = vcmp.eq.f32.partialorder %v55_v24, 1.0  ;;  %vm118_vm14 = vcmp.eq.f32.partialorder %v54_v26, 1.0  ;;  %v182_v27 = vld [vmem:[%s10097_s0 + $0x100] sm:$0xff]  ;;  %v185_v29 = vld [vmem:[%s10097_s0 + $0x118] sm:$0xff]  ;;  %vm121_vm15 = vcmp.eq.f32.partialorder %v57_v28, 1.0 }
  0x1c   :  { %411 = vperm.xlu1 %4478, %v227_v51   ;;  %406 = vperm.xlu0 %4477, %v226_v52   ;;  %v4743_v30 = vsel %vm119_vm13, %v183_v25, 3e+38  ;;  %v4745_v31 = vsel %vm118_vm14, %v182_v27, 3e+38  ;;  %v56_v32 = vld [vmem:[%s10098_s2 + $0x110] sm:$0xff]  ;;  %v59_v35 = vld [vmem:[%s10098_s2 + $0x128] sm:$0xff] }
  0x1d   :  { %v4750_v33 = vsel %vm121_vm15, %v185_v29, 3e+38  ;;  %vm120_vm0 = vcmp.eq.f32.partialorder %v56_v32, 1.0  ;;  %v184_v34 = vld [vmem:[%s10097_s0 + $0x110] sm:$0xff]  ;;  %v187_v36 = vld [vmem:[%s10097_s0 + $0x128] sm:$0xff]  ;;  %vm123_vm1 = vcmp.eq.f32.partialorder %v59_v35, 1.0 }
  0x1e   :  { %v4761_v37 = vsel %vm120_vm0, %v184_v34, 3e+38  ;;  %v58_v38 = vld [vmem:[%s10098_s2 + $0x120] sm:$0xff]  ;;  %v61_v40 = vld [vmem:[%s10098_s2 + $0x138] sm:$0xff]  ;;  %v4772_v41 = vsel %vm123_vm1, %v187_v36, 3e+38 }
  0x1f   :  { %v186_v39 = vld [vmem:[%s10097_s0 + $0x120] sm:$0xff]  ;;  %vm122_vm2 = vcmp.eq.f32.partialorder %v58_v38, 1.0  ;;  %vm125_vm3 = vcmp.eq.f32.partialorder %v61_v40, 1.0  ;;  %v189_v42 = vld [vmem:[%s10097_s0 + $0x138] sm:$0xff]  ;;  %v60_v43 = vld [vmem:[%s10098_s2 + $0x130] sm:$0xff] }
  0x20   :  { %421 = vperm.xlu1 %4478, %v229_v54   ;;  %416 = vperm.xlu0 %4477, %v228_v55   ;;  %v4780_v44 = vsel %vm122_vm2, %v186_v39, 3e+38  ;;  %v4782_v45 = vsel %vm125_vm3, %v189_v42, 3e+38  ;;  %vm124_vm4 = vcmp.eq.f32.partialorder %v60_v43, 1.0  ;;  %v188_v46 = vld [vmem:[%s10097_s0 + $0x130] sm:$0xff] }
  0x21   :  { %v4789_v47 = vsel %vm124_vm4, %v188_v46, 3e+38  ;;  %v63_v48 = vld [vmem:[%s10098_s2 + $0x148] sm:$0xff]  ;;  %v62_v50 = vld [vmem:[%s10098_s2 + $0x140] sm:$0xff]  ;;  %v65_v52 = vld [vmem:[%s10098_s2 + $0x158] sm:$0xff] }
  0x22   :  { %v191_v49 = vld [vmem:[%s10097_s0 + $0x148] sm:$0xff]  ;;  %vm127_vm5 = vcmp.eq.f32.partialorder %v63_v48, 1.0  ;;  %vm126_vm6 = vcmp.eq.f32.partialorder %v62_v50, 1.0  ;;  %v190_v51 = vld [vmem:[%s10097_s0 + $0x140] sm:$0xff]  ;;  %v193_v53 = vld [vmem:[%s10097_s0 + $0x158] sm:$0xff]  ;;  %vm129_vm7 = vcmp.eq.f32.partialorder %v65_v52, 1.0 }
  0x23   :  { %v4809_v54 = vsel %vm127_vm5, %v191_v49, 3e+38  ;;  %v4811_v55 = vsel %vm126_vm6, %v190_v51, 3e+38  ;;  %v64_v56 = vld [vmem:[%s10098_s2 + $0x150] sm:$0xff]  ;;  %v67_v59 = vld [vmem:[%s10098_s2 + $0x168] sm:$0xff] }
  0x24   :  { %431 = vperm.xlu1 %4478, %v4640_v57   ;;  %426 = vperm.xlu0 %4477, %v4642_v58   ;;  %v4816_v57 = vsel %vm129_vm7, %v193_v53, 3e+38  ;;  %vm128_vm8 = vcmp.eq.f32.partialorder %v64_v56, 1.0  ;;  %v192_v58 = vld [vmem:[%s10097_s0 + $0x150] sm:$0xff]  ;;  %v195_v60 = vld [vmem:[%s10097_s0 + $0x168] sm:$0xff]  ;;  %vm131_vm9 = vcmp.eq.f32.partialorder %v67_v59, 1.0 }
  0x25   :  { %v4829_v62 = vsel %vm128_vm8, %v192_v58, 3e+38  ;;  %v66_v63 = vld [vmem:[%s10098_s2 + $0x160] sm:$0xff]  ;;  %v69_v2 = vld [vmem:[%s10098_s2 + $0x178] sm:$0xff]  ;;  %v4840_v3 = vsel %vm131_vm9, %v195_v60, 3e+38 }
  0x26   :  { %v194_v0 = vld [vmem:[%s10097_s0 + $0x160] sm:$0xff]  ;;  %vm130_vm10 = vcmp.eq.f32.partialorder %v66_v63, 1.0  ;;  %vm133_vm11 = vcmp.eq.f32.partialorder %v69_v2, 1.0  ;;  %v196_v6 = vld [vmem:[%s10097_s0 + $0x170] sm:$0xff]  ;;  %v71_v8 = vld [vmem:[%s10098_s2 + $0x188] sm:$0xff] }
  0x27   :  { %v4848_v4 = vsel %vm130_vm10, %v194_v0, 3e+38  ;;  %v199_v9 = vld [vmem:[%s10097_s0 + $0x188] sm:$0xff]  ;;  %v70_v10 = vld [vmem:[%s10098_s2 + $0x180] sm:$0xff]  ;;  %vm135_vm13 = vcmp.eq.f32.partialorder %v71_v8, 1.0  ;;  %v73_v12 = vld [vmem:[%s10098_s2 + $0x198] sm:$0xff] }
  0x28   :  { %441 = vperm.xlu1 %4478, %v4650_v61   ;;  %436 = vperm.xlu0 %4477, %v4661_v1   ;;  %v197_v61 = vld [vmem:[%s10097_s0 + $0x178] sm:$0xff]  ;;  %v68_v1 = vld [vmem:[%s10098_s2 + $0x170] sm:$0xff]  ;;  %vm134_vm14 = vcmp.eq.f32.partialorder %v70_v10, 1.0  ;;  %v198_v11 = vld [vmem:[%s10097_s0 + $0x180] sm:$0xff]  ;;  %v4877_v16 = vsel %vm135_vm13, %v199_v9, 3e+38 }
  0x29   :  { %v4850_v5 = vsel %vm133_vm11, %v197_v61, 3e+38  ;;  %vm132_vm12 = vcmp.eq.f32.partialorder %v68_v1, 1.0  ;;  %v201_v13 = vld [vmem:[%s10097_s0 + $0x198] sm:$0xff]  ;;  %v4879_v24 = vsel %vm134_vm14, %v198_v11, 3e+38 }
  0x2a   :  { %v4855_v7 = vsel %vm132_vm12, %v196_v6, 3e+38  ;;  %vm137_vm15 = vcmp.eq.f32.partialorder %v73_v12, 1.0  ;;  %v200_v26 = vld [vmem:[%s10097_s0 + $0x190] sm:$0xff]  ;;  %v75_v27 = vld [vmem:[%s10098_s2 + $0x1a8] sm:$0xff]  ;;  %v74_v32 = vld [vmem:[%s10098_s2 + $0x1a0] sm:$0xff] }
  0x2b   :  { %v4887_v25 = vsel %vm137_vm15, %v201_v13, 3e+38  ;;  %v203_v28 = vld [vmem:[%s10097_s0 + $0x1a8] sm:$0xff]  ;;  %vm139_vm1 = vcmp.eq.f32.partialorder %v75_v27, 1.0  ;;  %v202_v34 = vld [vmem:[%s10097_s0 + $0x1a0] sm:$0xff]  ;;  %v77_v35 = vld [vmem:[%s10098_s2 + $0x1b8] sm:$0xff] }
  0x2c   :  { %451 = vperm.xlu1 %4478, %v4700_v14   ;;  %446 = vperm.xlu0 %4477, %v4703_v15   ;;  %v72_v14 = vld [vmem:[%s10098_s2 + $0x190] sm:$0xff]  ;;  %v50_v15 = vld [vmem:[%s10098_s2 + $0xe0] sm:$0xff]  ;;  %v4911_v36 = vsel %vm139_vm1, %v203_v28, 3e+38  ;;  %vm138_vm2 = vcmp.eq.f32.partialorder %v74_v32, 1.0  ;;  %vm141_vm3 = vcmp.eq.f32.partialorder %v77_v35, 1.0 }
  0x2d   :  { %vm136_vm0 = vcmp.eq.f32.partialorder %v72_v14, 1.0  ;;  %v205_v38 = vld [vmem:[%s10097_s0 + $0x1b8] sm:$0xff]  ;;  %v76_v39 = vld [vmem:[%s10098_s2 + $0x1b0] sm:$0xff]  ;;  %v4919_v40 = vsel %vm138_vm2, %v202_v34, 3e+38  ;;  %v79_v43 = vld [vmem:[%s10098_s2 + $0x1c8] sm:$0xff] }
  0x2e   :  { %v4898_v29 = vsel %vm136_vm0, %v200_v26, 3e+38  ;;  %v4921_v42 = vsel %vm141_vm3, %v205_v38, 3e+38  ;;  %vm140_vm4 = vcmp.eq.f32.partialorder %v76_v39, 1.0  ;;  %v207_v46 = vld [vmem:[%s10097_s0 + $0x1c8] sm:$0xff] }
  0x2f   :  { %v78_v48 = vld [vmem:[%s10098_s2 + $0x1c0] sm:$0xff]  ;;  %vm114_vm5 = vcmp.eq.f32.partialorder %v50_v15, 1.0  ;;  %vm143_vm6 = vcmp.eq.f32.partialorder %v79_v43, 1.0  ;;  %v81_v50 = vld [vmem:[%s10098_s2 + $0x1d8] sm:$0xff]  ;;  %v80_v58 = vld [vmem:[%s10098_s2 + $0x1d0] sm:$0xff]  ;;  %v10626_v34 = vmov 0 }
  0x30   :  { %461 = vperm.xlu1 %4478, %v4709_v17   ;;  %456 = vperm.xlu0 %4477, %v4712_v18   ;;  %v204_v17 = vld [vmem:[%s10097_s0 + $0x1b0] sm:$0xff]  ;;  %vm142_vm7 = vcmp.eq.f32.partialorder %v78_v48, 1.0  ;;  %v206_v49 = vld [vmem:[%s10097_s0 + $0x1c0] sm:$0xff]  ;;  %v209_v51 = vld [vmem:[%s10097_s0 + $0x1d8] sm:$0xff]  ;;  %v4951_v53 = vsel %vm143_vm6, %v207_v46, 3e+38 }
  0x31   :  { %v4926_v18 = vsel %vm140_vm4, %v204_v17, 3e+38  ;;  %v178_v52 = vld [vmem:[%s10097_s0 + $0xe0] sm:$0xff]  ;;  %v4953_v56 = vsel %vm142_vm7, %v206_v49, 3e+38  ;;  %vm145_vm8 = vcmp.eq.f32.partialorder %v81_v50, 1.0 }
  0x32   :  { %v4958_v59 = vsel %vm145_vm8, %v209_v51, 3e+38  ;;  %vm144_vm9 = vcmp.eq.f32.partialorder %v80_v58, 1.0  ;;  %v211_v60 = vld [vmem:[%s10097_s0 + $0x1e8] sm:$0xff]  ;;  %v82_v0 = vld [vmem:[%s10098_s2 + $0x1e0] sm:$0xff]  ;;  %v85_v61 = vld [vmem:[%s10098_s2 + $0x1f8] sm:$0xff] }
  0x33   :  { %v210_v2 = vld [vmem:[%s10097_s0 + $0x1e0] sm:$0xff]  ;;  %v53_v1 = vld [vmem:[%s10098_s2 + $0xf8] sm:$0xff]  ;;  %v52_v6 = vld [vmem:[%s10098_s2 + $0xf0] sm:$0xff]  ;;  %vm146_vm11 = vcmp.eq.f32.partialorder %v82_v0, 1.0  ;;  %vm149_vm12 = vcmp.eq.f32.partialorder %v85_v61, 1.0  ;;  %v10628_v35 = vmov 0 }
  0x34   :  { %471 = vperm.xlu1 %4478, %v4715_v19   ;;  %466 = vperm.xlu0 %4477, %v4717_v20   ;;  %v208_v19 = vld [vmem:[%s10097_s0 + $0x1d0] sm:$0xff]  ;;  %v83_v20 = vld [vmem:[%s10098_s2 + $0x1e8] sm:$0xff]  ;;  %v274_v9 = vsel %vm146_vm11, %v210_v2, 3e+38  ;;  %v213_v10 = vld [vmem:[%s10097_s0 + $0x1f8] sm:$0xff]  ;;  %vm117_vm14 = vcmp.eq.f32.partialorder %v53_v1, 1.0 }
  0x35   :  { %v272_v63 = vsel %vm144_vm9, %v208_v19, 3e+38  ;;  %vm147_vm10 = vcmp.eq.f32.partialorder %v83_v20, 1.0  ;;  %v84_v11 = vld [vmem:[%s10098_s2 + $0x1f0] sm:$0xff]  ;;  %v242_v13 = vsel %vm114_vm5, %v178_v52, 3e+38 }
  0x36   :  { %v275_v8 = vsel %vm147_vm10, %v211_v60, 3e+38  ;;  %v212_v12 = vld [vmem:[%s10097_s0 + $0x1f0] sm:$0xff]  ;;  %v277_v14 = vsel %vm149_vm12, %v213_v10, 3e+38  ;;  %vm148_vm13 = vcmp.eq.f32.partialorder %v84_v11, 1.0 }
  0x37   :  { %vm116_vm15 = vcmp.eq.f32.partialorder %v52_v6, 1.0  ;;  %v276_v26 = vsel %vm148_vm13, %v212_v12, 3e+38  ;;  %v278_v32 = vld [vmem:[%s10100_s1] sm:$0xff]  ;;  %v10632_v38 = vmov 0  ;;  %v281_v43 = vld [vmem:[%s10100_s1 + $0x18] sm:$0xff] }
  0x38   :  { %481 = vperm.xlu1 %4478, %v4719_v21   ;;  %476 = vperm.xlu0 %4477, %v4721_v22   ;;  %v181_v21 = vld [vmem:[%s10097_s0 + $0xf8] sm:$0xff]  ;;  %v180_v22 = vld [vmem:[%s10097_s0 + $0xf0] sm:$0xff]  ;;  %v10136_v46 = vmov 0.0  }
  0x39   :  { %v245_v27 = vsel %vm117_vm14, %v181_v21, 3e+38  ;;  %v244_v28 = vsel %vm116_vm15, %v180_v22, 3e+38 }
  0x3c   :  { %491 = vperm.xlu1 %4478, %v4723_v23   ;;  %486 = vperm.xlu0 %4477, %v242_v13   ;;  %v10121_v23 = vlaneseq  ;;  %v282_v13 = vld [vmem:[%s10100_s1 + $0x20] sm:$0xff] }
  0x40   :  { %501 = vperm.xlu1 %4478, %v245_v27   ;;  %496 = vperm.xlu0 %4477, %v244_v28  }
  0x44   :  { %511 = vperm.xlu1 %4478, %v4743_v30   ;;  %506 = vperm.xlu0 %4477, %v4745_v31   ;;  %v5030_v30 = vshrl.u32 %v10121_v23, 7 }
  0x46   :  { %10625 = vst [vmem:[#allocation2_spill] sm:$0xff] %v5030_v30  ;;  %v10134_v31 = vsub.s32 0, %v5030_v30 }
  0x48   :  { %521 = vperm.xlu1 %4478, %v4750_v33   ;;  %516 = vperm.xlu0 %4477, %v4761_v37   ;;  %v10133_v33 = vsub.s32 1, %v5030_v30  ;;  %v10123_v37 = vsub.s32 2, %v5030_v30 }
  0x4c   :  { %531 = vperm.xlu1 %4478, %v4772_v41   ;;  %526 = vperm.xlu0 %4477, %v4780_v44   ;;  %v10122_v41 = vsub.s32 3, %v5030_v30  ;;  %v342_v44 = vld [vmem:[%s10099_s3] sm:$0xf] }
  0x50   :  { %541 = vperm.xlu1 %4478, %v4782_v45   ;;  %536 = vperm.xlu0 %4477, %v4789_v47   ;;  %v5042_v45 = vrot.slane %v342_v44, %v10134_v31  ;;  %v5046_v47 = vrot.slane %v342_v44, %v10133_v33 }
  0x54   :  { %551 = vperm.xlu1 %4478, %v4809_v54   ;;  %546 = vperm.xlu0 %4477, %v4811_v55   ;;  %v5050_v54 = vrot.slane %v342_v44, %v10123_v37  ;;  %v5054_v55 = vrot.slane %v342_v44, %v10122_v41 }
  0x58   :  { %561 = vperm.xlu1 %4478, %v4816_v57   ;;  %556 = vperm.xlu0 %4477, %v4829_v62  }
  0x5c   :  { %571 = vperm.xlu1 %4478, %v4840_v3   ;;  %566 = vperm.xlu0 %4477, %v4848_v4  }
  0x60   :  { %581 = vperm.xlu1 %4478, %v4850_v5   ;;  %576 = vperm.xlu0 %4477, %v4855_v7  }
  0x64   :  { %591 = vperm.xlu1 %4478, %v4877_v16   ;;  %586 = vperm.xlu0 %4477, %v4879_v24  }
  0x68   :  { %601 = vperm.xlu1 %4478, %v4887_v25   ;;  %596 = vperm.xlu0 %4477, %v4898_v29   ;;  %v279_v29 = vld [vmem:[%s10100_s1 + $0x8] sm:$0xff] }
  0x6c   :  { %611 = vperm.xlu1 %4478, %v4911_v36   ;;  %606 = vperm.xlu0 %4477, %v4919_v40   ;;  %v10630_v36 = vmov 0 }
  0x70   :  { %621 = vperm.xlu1 %4478, %v4921_v42   ;;  %616 = vperm.xlu0 %4477, %v4926_v18  }
  0x74   :  { %631 = vperm.xlu1 %4478, %v4951_v53   ;;  %626 = vperm.xlu0 %4477, %v4953_v56   ;;  %v280_v53 = vld [vmem:[%s10100_s1 + $0x10] sm:$0xff] }
  0x78   :  { %641 = vperm.xlu1 %4478, %v4958_v59   ;;  %636 = vperm.xlu0 %4477, %v272_v63  }
  0x7c   :  { %651 = vperm.xlu1 %4478, %v275_v8   ;;  %646 = vperm.xlu0 %4477, %v274_v9   ;;  %v283_v8 = vld [vmem:[%s10100_s1 + $0x28] sm:$0xff] }
  0x7f   :  { %v357_v57 = vpop.permute.xlu1 %356  ;;  %v347_v62 = vpop.permute.xlu0 %346 }
  0x80   :  { %v693_v3 = vsub.f32 %v357_v57, %v5042_v45  ;;  %v694_v4 = vsub.f32 %v357_v57, %v5046_v47  ;;  %v695_v5 = vsub.f32 %v357_v57, %v5050_v54  ;;  %v696_v7 = vsub.f32 %v357_v57, %v5054_v55  ;;  %661 = vperm.xlu1 %4478, %v277_v14  }
  0x81   :  { %v685_v16 = vsub.f32 %v347_v62, %v5042_v45  ;;  %v686_v24 = vsub.f32 %v347_v62, %v5046_v47  ;;  %v687_v15 = vsub.f32 %v347_v62, %v5050_v54  ;;  %v688_v25 = vsub.f32 %v347_v62, %v5054_v55  ;;  %656 = vperm.xlu0 %4477, %v276_v26  }
  0x82   :  { %vm5070_vm0 = vcmp.lt.f32.partialorder %v693_v3, 0.0  ;;  %vm5074_vm1 = vcmp.lt.f32.partialorder %v694_v4, 0.0  ;;  %vm5078_vm2 = vcmp.lt.f32.partialorder %v695_v5, 0.0  ;;  %vm5082_vm3 = vcmp.lt.f32.partialorder %v696_v7, 0.0 }
  0x83   :  { %v10627_v34 = vsel %vm5070_vm0, 4294967295, %v10626_v34  ;;  %v10629_v35 = vsel %vm5074_vm1, 4294967295, %v10628_v35  ;;  %v10631_v36 = vsel %vm5078_vm2, 4294967295, %v10630_v36  ;;  %v10633_v38 = vsel %vm5082_vm3, 4294967295, %v10632_v38  ;;  %v352_v39 = vpop.permute.xlu0 %351  ;;  %v362_v52 = vpop.permute.xlu1 %361 }
  0x84   :  { %1204 = vperm.xlu1 %4478, %v279_v29   ;;  %vm5086_vm4 = vcmp.lt.f32.partialorder %v685_v16, 0.0  ;;  %vm5090_vm5 = vcmp.lt.f32.partialorder %v686_v24, 0.0  ;;  %vm5094_vm6 = vcmp.lt.f32.partialorder %v687_v15, 0.0  ;;  %vm5098_vm7 = vcmp.lt.f32.partialorder %v688_v25, 0.0  ;;  %v285_v16 = vld [vmem:[%s10100_s1 + $0x38] sm:$0xff] }
  0x85   :  { %1199 = vperm.xlu0 %4477, %v278_v32   ;;  %v3970_v48 = vsel %vm5070_vm0, 1.0, %v10136_v46  ;;  %v3971_v49 = vsel %vm5074_vm1, 1.0, %v10136_v46  ;;  %v3972_v50 = vsel %vm5078_vm2, 1.0, %v10136_v46  ;;  %v3973_v51 = vsel %vm5082_vm3, 1.0, %v10136_v46  ;;  %v284_v32 = vld [vmem:[%s10100_s1 + $0x30] sm:$0xff] }
  0x86   :  { %v689_v56 = vsub.f32 %v352_v39, %v5042_v45  ;;  %v690_v58 = vsub.f32 %v352_v39, %v5046_v47  ;;  %v691_v59 = vsub.f32 %v352_v39, %v5050_v54  ;;  %v692_v19 = vsub.f32 %v352_v39, %v5054_v55 }
  0x87   :  { %v3962_v20 = vsel %vm5086_vm4, 1.0, %v10136_v46  ;;  %v3963_v60 = vsel %vm5090_vm5, 1.0, %v10136_v46  ;;  %v3964_v63 = vsel %vm5094_vm6, 1.0, %v10136_v46  ;;  %v3965_v0 = vsel %vm5098_vm7, 1.0, %v10136_v46  ;;  %v372_v62 = vpop.permute.xlu1 %371 }
  0x88   :  { %1214 = vperm.xlu1 %4478, %v281_v43   ;;  %v697_v2 = vsub.f32 %v362_v52, %v5042_v45  ;;  %v698_v61 = vsub.f32 %v362_v52, %v5046_v47  ;;  %v699_v1 = vsub.f32 %v362_v52, %v5050_v54  ;;  %v700_v6 = vsub.f32 %v362_v52, %v5054_v55 }
  0x89   :  { %1209 = vperm.xlu0 %4477, %v280_v53   ;;  %vm5143_vm8 = vcmp.lt.f32.partialorder %v689_v56, 0.0  ;;  %vm5147_vm9 = vcmp.lt.f32.partialorder %v690_v58, 0.0  ;;  %vm5151_vm10 = vcmp.lt.f32.partialorder %v691_v59, 0.0  ;;  %vm5155_vm11 = vcmp.lt.f32.partialorder %v692_v19, 0.0  ;;  %v367_v56 = vpop.permute.xlu0 %366 }
  0x8a   :  { %v3966_v14 = vsel %vm5143_vm8, 1.0, %v10136_v46  ;;  %v3967_v21 = vsel %vm5147_vm9, 1.0, %v10136_v46  ;;  %v3968_v22 = vsel %vm5151_vm10, 1.0, %v10136_v46  ;;  %v3969_v26 = vsel %vm5155_vm11, 1.0, %v10136_v46 }
  0x8b   :  { %v3330_v27 = vadd.f32 %v3966_v14, %v3962_v20  ;;  %v3399_v28 = vadd.f32 %v3967_v21, %v3963_v60  ;;  %v3468_v44 = vadd.f32 %v3968_v22, %v3964_v63  ;;  %v3537_v57 = vadd.f32 %v3969_v26, %v3965_v0  ;;  %v287_v60 = vld [vmem:[%s10100_s1 + $0x48] sm:$0xff] }
  0x8c   :  { %1224 = vperm.xlu1 %4478, %v283_v8   ;;  %vm5174_vm12 = vcmp.lt.f32.partialorder %v697_v2, 0.0  ;;  %v10650_v3 = vmov 0  ;;  %vm5178_vm13 = vcmp.lt.f32.partialorder %v698_v61, 0.0  ;;  %v10652_v4 = vmov 0 }
  0x8d   :  { %v10651_v3 = vsel %vm5174_vm12, 4294967295, %v10650_v3  ;;  %v10653_v4 = vsel %vm5178_vm13, 4294967295, %v10652_v4  ;;  %vm5182_vm14 = vcmp.lt.f32.partialorder %v699_v1, 0.0  ;;  %v10654_v5 = vmov 0  ;;  %1219 = vperm.xlu0 %4477, %v282_v13   ;;  %v286_v1 = vld [vmem:[%s10100_s1 + $0x40] sm:$0xff] }
  0x8e   :  { %v10655_v5 = vsel %vm5182_vm14, 4294967295, %v10654_v5  ;;  %vm5186_vm15 = vcmp.lt.f32.partialorder %v700_v6, 0.0  ;;  %v10656_v7 = vmov 0  ;;  %v3331_v24 = vadd.f32 %v3970_v48, %v3330_v27 }
  0x8f   :  { %v10657_v7 = vsel %vm5186_vm15, 4294967295, %v10656_v7  ;;  %v3400_v15 = vadd.f32 %v3971_v49, %v3399_v28  ;;  %v3469_v25 = vadd.f32 %v3972_v50, %v3468_v44  ;;  %v3538_v29 = vadd.f32 %v3973_v51, %v3537_v57  ;;  %v382_v28 = vpop.permute.xlu1 %381 }
  0x90   :  { %v705_v39 = vsub.f32 %v372_v62, %v5042_v45  ;;  %v706_v43 = vsub.f32 %v372_v62, %v5046_v47  ;;  %v707_v52 = vsub.f32 %v372_v62, %v5050_v54  ;;  %v708_v53 = vsub.f32 %v372_v62, %v5054_v55  ;;  %1234 = vperm.xlu1 %4478, %v285_v16  }
  0x91   :  { %v3974_v48 = vsel %vm5174_vm12, 1.0, %v10136_v46  ;;  %v3975_v49 = vsel %vm5178_vm13, 1.0, %v10136_v46  ;;  %v3976_v50 = vsel %vm5182_vm14, 1.0, %v10136_v46  ;;  %v3977_v51 = vsel %vm5186_vm15, 1.0, %v10136_v46  ;;  %1229 = vperm.xlu0 %4477, %v284_v32  }
  0x92   :  { %v3332_v58 = vadd.f32 %v3974_v48, %v3331_v24  ;;  %v3401_v59 = vadd.f32 %v3975_v49, %v3400_v15  ;;  %v3470_v19 = vadd.f32 %v3976_v50, %v3469_v25  ;;  %v3539_v20 = vadd.f32 %v3977_v51, %v3538_v29  ;;  %v289_v24 = vld [vmem:[%s10100_s1 + $0x58] sm:$0xff]  ;;  %v377_v48 = vpop.permute.xlu0 %376 }
  0x93   :  { %v701_v63 = vsub.f32 %v367_v56, %v5042_v45  ;;  %v702_v0 = vsub.f32 %v367_v56, %v5046_v47  ;;  %v703_v2 = vsub.f32 %v367_v56, %v5050_v54  ;;  %v704_v61 = vsub.f32 %v367_v56, %v5054_v55 }
  0x94   :  { %vm5222_vm3 = vcmp.lt.f32.partialorder %v705_v39, 0.0  ;;  %v10658_v6 = vmov 0  ;;  %vm5226_vm2 = vcmp.lt.f32.partialorder %v706_v43, 0.0  ;;  %v10660_v8 = vmov 0  ;;  %1244 = vperm.xlu1 %4478, %v287_v60   ;;  %v288_v39 = vld [vmem:[%s10100_s1 + $0x50] sm:$0xff] }
  0x95   :  { %v10659_v6 = vsel %vm5222_vm3, 4294967295, %v10658_v6  ;;  %v10661_v8 = vsel %vm5226_vm2, 4294967295, %v10660_v8  ;;  %vm5230_vm1 = vcmp.lt.f32.partialorder %v707_v52, 0.0  ;;  %v10662_v13 = vmov 0  ;;  %1239 = vperm.xlu0 %4477, %v286_v1  }
  0x96   :  { %v10663_v13 = vsel %vm5230_vm1, 4294967295, %v10662_v13  ;;  %vm5234_vm0 = vcmp.lt.f32.partialorder %v708_v53, 0.0  ;;  %v10664_v14 = vmov 0  ;;  %vm5238_vm15 = vcmp.lt.f32.partialorder %v701_v63, 0.0  ;;  %v291_v63 = vld [vmem:[%s10100_s1 + $0x68] sm:$0xff] }
  0x97   :  { %v10665_v14 = vsel %vm5234_vm0, 4294967295, %v10664_v14  ;;  %v10666_v21 = vmov 0  ;;  %vm5242_vm14 = vcmp.lt.f32.partialorder %v702_v0, 0.0  ;;  %v10668_v22 = vmov 0 }
  0x98   :  { %v10667_v21 = vsel %vm5238_vm15, 4294967295, %v10666_v21  ;;  %v10669_v22 = vsel %vm5242_vm14, 4294967295, %v10668_v22  ;;  %vm5246_vm13 = vcmp.lt.f32.partialorder %v703_v2, 0.0  ;;  %v10670_v26 = vmov 0  ;;  %1254 = vperm.xlu1 %4478, %v289_v24  }
  0x99   :  { %v10671_v26 = vsel %vm5246_vm13, 4294967295, %v10670_v26  ;;  %vm5250_vm12 = vcmp.lt.f32.partialorder %v704_v61, 0.0  ;;  %v10672_v27 = vmov 0  ;;  %v3978_v44 = vsel %vm5238_vm15, 1.0, %v10136_v46  ;;  %1249 = vperm.xlu0 %4477, %v288_v39  }
  0x9a   :  { %v10673_v27 = vsel %vm5250_vm12, 4294967295, %v10672_v27  ;;  %v3979_v57 = vsel %vm5242_vm14, 1.0, %v10136_v46  ;;  %v3980_v62 = vsel %vm5246_vm13, 1.0, %v10136_v46  ;;  %v3981_v16 = vsel %vm5250_vm12, 1.0, %v10136_v46 }
  0x9b   :  { %v3333_v15 = vadd.f32 %v3978_v44, %v3332_v58  ;;  %v3402_v25 = vadd.f32 %v3979_v57, %v3401_v59  ;;  %v3471_v29 = vadd.f32 %v3980_v62, %v3470_v19  ;;  %v3540_v32 = vadd.f32 %v3981_v16, %v3539_v20 }
  0x9c   :  { %v713_v43 = vsub.f32 %v382_v28, %v5042_v45  ;;  %v714_v52 = vsub.f32 %v382_v28, %v5046_v47  ;;  %v715_v53 = vsub.f32 %v382_v28, %v5050_v54  ;;  %v716_v56 = vsub.f32 %v382_v28, %v5054_v55  ;;  %v290_v28 = vld [vmem:[%s10100_s1 + $0x60] sm:$0xff]  ;;  %1264 = vperm.xlu1 %4478, %v291_v63  }
  0x9d   :  { %v3982_v49 = vsel %vm5222_vm3, 1.0, %v10136_v46  ;;  %v3983_v50 = vsel %vm5226_vm2, 1.0, %v10136_v46  ;;  %v3984_v51 = vsel %vm5230_vm1, 1.0, %v10136_v46  ;;  %v3985_v58 = vsel %vm5234_vm0, 1.0, %v10136_v46  ;;  %1259 = vperm.xlu0 %4477, %v290_v28  }
  0x9e   :  { %v3334_v59 = vadd.f32 %v3982_v49, %v3333_v15  ;;  %v3403_v19 = vadd.f32 %v3983_v50, %v3402_v25  ;;  %v3472_v20 = vadd.f32 %v3984_v51, %v3471_v29  ;;  %v3541_v60 = vadd.f32 %v3985_v58, %v3540_v32  ;;  %v392_v32 = vpop.permute.xlu1 %391  ;;  %v292_v58 = vld [vmem:[%s10100_s1 + $0x70] sm:$0xff] }
  0x9f   :  { %v709_v0 = vsub.f32 %v377_v48, %v5042_v45  ;;  %v710_v2 = vsub.f32 %v377_v48, %v5046_v47  ;;  %v711_v61 = vsub.f32 %v377_v48, %v5050_v54  ;;  %v712_v1 = vsub.f32 %v377_v48, %v5054_v55 }
  0xa0   :  { %vm5298_vm12 = vcmp.lt.f32.partialorder %v713_v43, 0.0  ;;  %v10674_v44 = vmov 0  ;;  %vm5302_vm13 = vcmp.lt.f32.partialorder %v714_v52, 0.0  ;;  %v10676_v57 = vmov 0 }
  0xa1   :  { %v10675_v44 = vsel %vm5298_vm12, 4294967295, %v10674_v44  ;;  %v10677_v57 = vsel %vm5302_vm13, 4294967295, %v10676_v57  ;;  %vm5306_vm14 = vcmp.lt.f32.partialorder %v715_v53, 0.0  ;;  %v10678_v62 = vmov 0  ;;  %1269 = vperm.xlu0 %4477, %v292_v58  }
  0xa2   :  { %v10679_v62 = vsel %vm5306_vm14, 4294967295, %v10678_v62  ;;  %vm5310_vm15 = vcmp.lt.f32.partialorder %v716_v56, 0.0  ;;  %v10680_v16 = vmov 0  ;;  %vm5314_vm0 = vcmp.lt.f32.partialorder %v709_v0, 0.0  ;;  %v293_v56 = vld [vmem:[%s10100_s1 + $0x78] sm:$0xff] }
  0xa3   :  { %v10681_v16 = vsel %vm5310_vm15, 4294967295, %v10680_v16  ;;  %v10682_v24 = vmov 0  ;;  %vm5318_vm1 = vcmp.lt.f32.partialorder %v710_v2, 0.0  ;;  %v10684_v15 = vmov 0  ;;  %1274 = vperm.xlu1 %4478, %v293_v56   ;;  %v294_v56 = vld [vmem:[%s10100_s1 + $0x80] sm:$0xff] }
  0xa4   :  { %v10683_v24 = vsel %vm5314_vm0, 4294967295, %v10682_v24  ;;  %v10685_v15 = vsel %vm5318_vm1, 4294967295, %v10684_v15  ;;  %vm5322_vm2 = vcmp.lt.f32.partialorder %v711_v61, 0.0  ;;  %v10686_v25 = vmov 0 }
  0xa5   :  { %v10687_v25 = vsel %vm5322_vm2, 4294967295, %v10686_v25  ;;  %vm5326_vm3 = vcmp.lt.f32.partialorder %v712_v1, 0.0  ;;  %v10689_v29 = vmov 0  ;;  %v3986_v39 = vsel %vm5314_vm0, 1.0, %v10136_v46  ;;  %v387_v1 = vpop.permute.xlu0 %386  ;;  %1279 = vperm.xlu0 %4477, %v294_v56  }
  0xa6   :  { %10688 = vst [vmem:[#allocation3_spill] sm:$0xff] %v10687_v25  ;;  %v10690_v29 = vsel %vm5326_vm3, 4294967295, %v10689_v29  ;;  %v3987_v43 = vsel %vm5318_vm1, 1.0, %v10136_v46  ;;  %v3988_v52 = vsel %vm5322_vm2, 1.0, %v10136_v46  ;;  %v3989_v53 = vsel %vm5326_vm3, 1.0, %v10136_v46 }
  0xa7   :  { %10691 = vst [vmem:[#allocation4_spill] sm:$0xff] %v10690_v29  ;;  %v3335_v48 = vadd.f32 %v3986_v39, %v3334_v59  ;;  %v3404_v49 = vadd.f32 %v3987_v43, %v3403_v19  ;;  %v3473_v50 = vadd.f32 %v3988_v52, %v3472_v20  ;;  %v3542_v51 = vadd.f32 %v3989_v53, %v3541_v60  ;;  %v295_v52 = vld [vmem:[%s10100_s1 + $0x88] sm:$0xff] }
  0xa8   :  { %v721_v63 = vsub.f32 %v392_v32, %v5042_v45  ;;  %v722_v0 = vsub.f32 %v392_v32, %v5046_v47  ;;  %v723_v2 = vsub.f32 %v392_v32, %v5050_v54  ;;  %v724_v61 = vsub.f32 %v392_v32, %v5054_v55  ;;  %1284 = vperm.xlu1 %4478, %v295_v52  }
  0xa9   :  { %v3990_v59 = vsel %vm5298_vm12, 1.0, %v10136_v46  ;;  %v3991_v19 = vsel %vm5302_vm13, 1.0, %v10136_v46  ;;  %v3992_v20 = vsel %vm5306_vm14, 1.0, %v10136_v46  ;;  %v3993_v60 = vsel %vm5310_vm15, 1.0, %v10136_v46 }
  0xaa   :  { %v3336_v28 = vadd.f32 %v3990_v59, %v3335_v48  ;;  %v3405_v32 = vadd.f32 %v3991_v19, %v3404_v49  ;;  %v3474_v39 = vadd.f32 %v3992_v20, %v3473_v50  ;;  %v3543_v43 = vadd.f32 %v3993_v60, %v3542_v51  ;;  %v297_v59 = vld [vmem:[%s10100_s1 + $0x98] sm:$0xff] }
  0xab   :  { %v717_v53 = vsub.f32 %v387_v1, %v5042_v45  ;;  %v718_v23 = vsub.f32 %v387_v1, %v5046_v47  ;;  %v719_v41 = vsub.f32 %v387_v1, %v5050_v54  ;;  %v720_v37 = vsub.f32 %v387_v1, %v5054_v55 }
  0xac   :  { %vm5374_vm3 = vcmp.lt.f32.partialorder %v721_v63, 0.0  ;;  %v10692_v48 = vmov 0  ;;  %vm5378_vm2 = vcmp.lt.f32.partialorder %v722_v0, 0.0  ;;  %v10695_v49 = vmov 0  ;;  %1294 = vperm.xlu1 %4478, %v297_v59   ;;  %v298_v59 = vld [vmem:[%s10100_s1 + $0xa0] sm:$0xff] }
  0xad   :  { %v10693_v48 = vsel %vm5374_vm3, 4294967295, %v10692_v48  ;;  %v10696_v49 = vsel %vm5378_vm2, 4294967295, %v10695_v49  ;;  %vm5382_vm1 = vcmp.lt.f32.partialorder %v723_v2, 0.0  ;;  %v10698_v50 = vmov 0 }
  0xae   :  { %10694 = vst [vmem:[#allocation5_spill] sm:$0xff] %v10693_v48  ;;  %10697 = vst [vmem:[#allocation6_spill] sm:$0xff] %v10696_v49  ;;  %v10699_v50 = vsel %vm5382_vm1, 4294967295, %v10698_v50  ;;  %vm5386_vm0 = vcmp.lt.f32.partialorder %v724_v61, 0.0  ;;  %v10701_v51 = vmov 0  ;;  %vm5390_vm15 = vcmp.lt.f32.partialorder %v717_v53, 0.0  ;;  %v402_v61 = vpop.permute.xlu1 %401 }
  0xaf   :  { %10700 = vst [vmem:[#allocation7_spill] sm:$0xff] %v10699_v50  ;;  %v10702_v51 = vsel %vm5386_vm0, 4294967295, %v10701_v51  ;;  %v10704_v58 = vmov 0  ;;  %vm5394_vm14 = vcmp.lt.f32.partialorder %v718_v23, 0.0  ;;  %v10707_v63 = vmov 0  ;;  %v296_v53 = vld [vmem:[%s10100_s1 + $0x90] sm:$0xff] }
  0xb0   :  { %10703 = vst [vmem:[#allocation8_spill] sm:$0xff] %v10702_v51  ;;  %v10705_v58 = vsel %vm5390_vm15, 4294967295, %v10704_v58  ;;  %v10708_v63 = vsel %vm5394_vm14, 4294967295, %v10707_v63  ;;  %vm5398_vm13 = vcmp.lt.f32.partialorder %v719_v41, 0.0  ;;  %v10710_v0 = vmov 0  ;;  %1289 = vperm.xlu0 %4477, %v296_v53  }
  0xb1   :  { %10706 = vst [vmem:[#allocation9_spill] sm:$0xff] %v10705_v58  ;;  %10709 = vst [vmem:[#allocation10_spill] sm:$0xff] %v10708_v63  ;;  %v10711_v0 = vsel %vm5398_vm13, 4294967295, %v10710_v0  ;;  %vm5402_vm12 = vcmp.lt.f32.partialorder %v720_v37, 0.0  ;;  %v10713_v2 = vmov 0  ;;  %v3994_v1 = vsel %vm5390_vm15, 1.0, %v10136_v46 }
  0xb2   :  { %10712 = vst [vmem:[#allocation11_spill] sm:$0xff] %v10711_v0  ;;  %v10714_v2 = vsel %vm5402_vm12, 4294967295, %v10713_v2  ;;  %v3995_v23 = vsel %vm5394_vm14, 1.0, %v10136_v46  ;;  %v3996_v41 = vsel %vm5398_vm13, 1.0, %v10136_v46  ;;  %v3997_v37 = vsel %vm5402_vm12, 1.0, %v10136_v46  ;;  %v397_v46 = vpop.permute.xlu0 %396  ;;  %v412_v53 = vpop.permute.xlu1 %411 }
  0xb3   :  { %10715 = vst [vmem:[#allocation12_spill] sm:$0xff] %v10714_v2  ;;  %v3337_v19 = vadd.f32 %v3994_v1, %v3336_v28  ;;  %v3406_v20 = vadd.f32 %v3995_v23, %v3405_v32  ;;  %v3475_v60 = vadd.f32 %v3996_v41, %v3474_v39  ;;  %v3544_v52 = vadd.f32 %v3997_v37, %v3543_v43  ;;  %v299_v37 = vld [vmem:[%s10100_s1 + $0xa8] sm:$0xff] }
  0xb4   :  { %v729_v33 = vsub.f32 %v402_v61, %v5042_v45  ;;  %v730_v31 = vsub.f32 %v402_v61, %v5046_v47  ;;  %v731_v2 = vsub.f32 %v402_v61, %v5050_v54  ;;  %v732_v56 = vsub.f32 %v402_v61, %v5054_v55  ;;  %1304 = vperm.xlu1 %4478, %v299_v37   ;;  %v300_v37 = vld [vmem:[%s10100_s1 + $0xb0] sm:$0xff] }
  0xb5   :  { %v10716_v0 = vmov 0.0   ;;  %v725_v63 = vsub.f32 %v397_v46, %v5042_v45  ;;  %v726_v58 = vsub.f32 %v397_v46, %v5046_v47  ;;  %v727_v50 = vsub.f32 %v397_v46, %v5050_v54  ;;  %1299 = vperm.xlu0 %4477, %v298_v59  }
  0xb6   :  { %v3998_v28 = vsel %vm5374_vm3, 1.0, %v10716_v0  ;;  %v3999_v32 = vsel %vm5378_vm2, 1.0, %v10716_v0  ;;  %v4000_v39 = vsel %vm5382_vm1, 1.0, %v10716_v0  ;;  %v4001_v43 = vsel %vm5386_vm0, 1.0, %v10716_v0 }
  0xb7   :  { %v3338_v1 = vadd.f32 %v3998_v28, %v3337_v19  ;;  %v3407_v61 = vadd.f32 %v3999_v32, %v3406_v20  ;;  %v3476_v23 = vadd.f32 %v4000_v39, %v3475_v60  ;;  %v3545_v41 = vadd.f32 %v4001_v43, %v3544_v52 }
  0xb8   :  { %v728_v49 = vsub.f32 %v397_v46, %v5054_v55  ;;  %vm5450_vm12 = vcmp.lt.f32.partialorder %v729_v33, 0.0  ;;  %v10717_v19 = vmov 0  ;;  %vm5454_vm13 = vcmp.lt.f32.partialorder %v730_v31, 0.0 }
  0xb9   :  { %v10718_v19 = vsel %vm5450_vm12, 4294967295, %v10717_v19  ;;  %v10720_v20 = vmov 0  ;;  %vm5458_vm14 = vcmp.lt.f32.partialorder %v731_v2, 0.0  ;;  %v10723_v60 = vmov 0  ;;  %1309 = vperm.xlu0 %4477, %v300_v37   ;;  %v422_v37 = vpop.permute.xlu1 %421 }
  0xba   :  { %10719 = vst [vmem:[#allocation13_spill] sm:$0xff] %v10718_v19  ;;  %v10721_v20 = vsel %vm5454_vm13, 4294967295, %v10720_v20  ;;  %v10724_v60 = vsel %vm5458_vm14, 4294967295, %v10723_v60  ;;  %vm5462_vm15 = vcmp.lt.f32.partialorder %v732_v56, 0.0  ;;  %v10726_v52 = vmov 0  ;;  %v301_v56 = vld [vmem:[%s10100_s1 + $0xb8] sm:$0xff] }
  0xbb   :  { %10722 = vst [vmem:[#allocation14_spill] sm:$0xff] %v10721_v20  ;;  %10725 = vst [vmem:[#allocation15_spill] sm:$0xff] %v10724_v60  ;;  %v10727_v52 = vsel %vm5462_vm15, 4294967295, %v10726_v52  ;;  %vm5466_vm0 = vcmp.lt.f32.partialorder %v725_v63, 0.0  ;;  %v10729_v46 = vmov 0  ;;  %vm5470_vm1 = vcmp.lt.f32.partialorder %v726_v58, 0.0  ;;  %1314 = vperm.xlu1 %4478, %v301_v56  }
  0xbc   :  { %10728 = vst [vmem:[#allocation16_spill] sm:$0xff] %v10727_v52  ;;  %v10730_v46 = vsel %vm5466_vm0, 4294967295, %v10729_v46  ;;  %v10732_v33 = vmov 0  ;;  %vm5474_vm2 = vcmp.lt.f32.partialorder %v727_v50, 0.0  ;;  %v10735_v31 = vmov 0  ;;  %v302_v56 = vld [vmem:[%s10100_s1 + $0xc0] sm:$0xff] }
  0xbd   :  { %10731 = vst [vmem:[#allocation17_spill] sm:$0xff] %v10730_v46  ;;  %v10733_v33 = vsel %vm5470_vm1, 4294967295, %v10732_v33  ;;  %v10736_v31 = vsel %vm5474_vm2, 4294967295, %v10735_v31  ;;  %vm5478_vm3 = vcmp.lt.f32.partialorder %v728_v49, 0.0  ;;  %v10738_v2 = vmov 0  ;;  %v407_v46 = vpop.permute.xlu0 %406  ;;  %1319 = vperm.xlu0 %4477, %v302_v56  }
  0xbe   :  { %10734 = vst [vmem:[#allocation18_spill] sm:$0xff] %v10733_v33  ;;  %10737 = vst [vmem:[#allocation19_spill] sm:$0xff] %v10736_v31  ;;  %v10739_v2 = vsel %vm5478_vm3, 4294967295, %v10738_v2  ;;  %v4002_v63 = vsel %vm5466_vm0, 1.0, %v10716_v0  ;;  %v4003_v58 = vsel %vm5470_vm1, 1.0, %v10716_v0  ;;  %v4004_v50 = vsel %vm5474_vm2, 1.0, %v10716_v0 }
  0xbf   :  { %10740 = vst [vmem:[#allocation20_spill] sm:$0xff] %v10739_v2  ;;  %v4005_v49 = vsel %vm5478_vm3, 1.0, %v10716_v0  ;;  %v3339_v28 = vadd.f32 %v4002_v63, %v3338_v1  ;;  %v3408_v32 = vadd.f32 %v4003_v58, %v3407_v61  ;;  %v3477_v39 = vadd.f32 %v4004_v50, %v3476_v23 }
  0xc0   :  { %v3546_v43 = vadd.f32 %v4005_v49, %v3545_v41  ;;  %v737_v31 = vsub.f32 %v412_v53, %v5042_v45  ;;  %v738_v33 = vsub.f32 %v412_v53, %v5046_v47  ;;  %v739_v2 = vsub.f32 %v412_v53, %v5050_v54  ;;  %v303_v49 = vld [vmem:[%s10100_s1 + $0xc8] sm:$0xff] }
  0xc1   :  { %v740_v59 = vsub.f32 %v412_v53, %v5054_v55  ;;  %v4006_v1 = vsel %vm5450_vm12, 1.0, %v10716_v0  ;;  %v4007_v61 = vsel %vm5454_vm13, 1.0, %v10716_v0  ;;  %v4008_v23 = vsel %vm5458_vm14, 1.0, %v10716_v0  ;;  %1324 = vperm.xlu1 %4478, %v303_v49   ;;  %v304_v49 = vld [vmem:[%s10100_s1 + $0xd0] sm:$0xff] }
  0xc2   :  { %v4009_v41 = vsel %vm5462_vm15, 1.0, %v10716_v0  ;;  %v3340_v63 = vadd.f32 %v4006_v1, %v3339_v28  ;;  %v3409_v53 = vadd.f32 %v4007_v61, %v3408_v32  ;;  %v3478_v58 = vadd.f32 %v4008_v23, %v3477_v39  ;;  %1329 = vperm.xlu0 %4477, %v304_v49   ;;  %v432_v49 = vpop.permute.xlu1 %431 }
  0xc3   :  { %v3547_v50 = vadd.f32 %v4009_v41, %v3546_v43  ;;  %v733_v20 = vsub.f32 %v407_v46, %v5042_v45  ;;  %v734_v19 = vsub.f32 %v407_v46, %v5046_v47  ;;  %v735_v60 = vsub.f32 %v407_v46, %v5050_v54 }
  0xc4   :  { %v736_v51 = vsub.f32 %v407_v46, %v5054_v55  ;;  %vm5526_vm3 = vcmp.lt.f32.partialorder %v737_v31, 0.0  ;;  %v10741_v28 = vmov 0  ;;  %vm5530_vm2 = vcmp.lt.f32.partialorder %v738_v33, 0.0 }
  0xc5   :  { %v10742_v28 = vsel %vm5526_vm3, 4294967295, %v10741_v28  ;;  %v10744_v32 = vmov 0  ;;  %vm5534_vm1 = vcmp.lt.f32.partialorder %v739_v2, 0.0  ;;  %v10747_v39 = vmov 0 }
  0xc6   :  { %10743 = vst [vmem:[#allocation21_spill] sm:$0xff] %v10742_v28  ;;  %v10745_v32 = vsel %vm5530_vm2, 4294967295, %v10744_v32  ;;  %v10748_v39 = vsel %vm5534_vm1, 4294967295, %v10747_v39  ;;  %vm5538_vm0 = vcmp.lt.f32.partialorder %v740_v59, 0.0  ;;  %v10750_v43 = vmov 0  ;;  %v305_v59 = vld [vmem:[%s10100_s1 + $0xd8] sm:$0xff] }
  0xc7   :  { %10746 = vst [vmem:[#allocation22_spill] sm:$0xff] %v10745_v32  ;;  %10749 = vst [vmem:[#allocation23_spill] sm:$0xff] %v10748_v39  ;;  %v10751_v43 = vsel %vm5538_vm0, 4294967295, %v10750_v43  ;;  %vm5542_vm15 = vcmp.lt.f32.partialorder %v733_v20, 0.0  ;;  %v10753_v46 = vmov 0  ;;  %vm5546_vm14 = vcmp.lt.f32.partialorder %v734_v19, 0.0  ;;  %1334 = vperm.xlu1 %4478, %v305_v59  }
  0xc8   :  { %10752 = vst [vmem:[#allocation24_spill] sm:$0xff] %v10751_v43  ;;  %v10754_v46 = vsel %vm5542_vm15, 4294967295, %v10753_v46  ;;  %v10756_v31 = vmov 0  ;;  %vm5550_vm13 = vcmp.lt.f32.partialorder %v735_v60, 0.0  ;;  %v10759_v33 = vmov 0  ;;  %v306_v59 = vld [vmem:[%s10100_s1 + $0xe0] sm:$0xff] }
  0xc9   :  { %10755 = vst [vmem:[#allocation25_spill] sm:$0xff] %v10754_v46  ;;  %v10757_v31 = vsel %vm5546_vm14, 4294967295, %v10756_v31  ;;  %v10760_v33 = vsel %vm5550_vm13, 4294967295, %v10759_v33  ;;  %vm5554_vm12 = vcmp.lt.f32.partialorder %v736_v51, 0.0  ;;  %v10762_v2 = vmov 0  ;;  %v417_v46 = vpop.permute.xlu0 %416  ;;  %1339 = vperm.xlu0 %4477, %v306_v59  }
  0xca   :  { %10758 = vst [vmem:[#allocation26_spill] sm:$0xff] %v10757_v31  ;;  %10761 = vst [vmem:[#allocation27_spill] sm:$0xff] %v10760_v33  ;;  %v10763_v2 = vsel %vm5554_vm12, 4294967295, %v10762_v2  ;;  %v4010_v20 = vsel %vm5542_vm15, 1.0, %v10716_v0  ;;  %v4011_v19 = vsel %vm5546_vm14, 1.0, %v10716_v0  ;;  %v4012_v60 = vsel %vm5550_vm13, 1.0, %v10716_v0 }
  0xcb   :  { %10764 = vst [vmem:[#allocation28_spill] sm:$0xff] %v10763_v2  ;;  %v4013_v51 = vsel %vm5554_vm12, 1.0, %v10716_v0  ;;  %v3341_v1 = vadd.f32 %v4010_v20, %v3340_v63  ;;  %v3410_v61 = vadd.f32 %v4011_v19, %v3409_v53  ;;  %v3479_v23 = vadd.f32 %v4012_v60, %v3478_v58 }
  0xcc   :  { %v3548_v41 = vadd.f32 %v4013_v51, %v3547_v50  ;;  %v745_v33 = vsub.f32 %v422_v37, %v5042_v45  ;;  %v746_v31 = vsub.f32 %v422_v37, %v5046_v47  ;;  %v747_v2 = vsub.f32 %v422_v37, %v5050_v54  ;;  %v307_v51 = vld [vmem:[%s10100_s1 + $0xe8] sm:$0xff] }
  0xcd   :  { %v748_v56 = vsub.f32 %v422_v37, %v5054_v55  ;;  %v4014_v63 = vsel %vm5526_vm3, 1.0, %v10716_v0  ;;  %v4015_v53 = vsel %vm5530_vm2, 1.0, %v10716_v0  ;;  %v4016_v58 = vsel %vm5534_vm1, 1.0, %v10716_v0  ;;  %1344 = vperm.xlu1 %4478, %v307_v51   ;;  %v308_v51 = vld [vmem:[%s10100_s1 + $0xf0] sm:$0xff] }
  0xce   :  { %v4017_v50 = vsel %vm5538_vm0, 1.0, %v10716_v0  ;;  %v3342_v20 = vadd.f32 %v4014_v63, %v3341_v1  ;;  %v3411_v37 = vadd.f32 %v4015_v53, %v3410_v61  ;;  %v3480_v19 = vadd.f32 %v4016_v58, %v3479_v23  ;;  %1349 = vperm.xlu0 %4477, %v308_v51   ;;  %v442_v51 = vpop.permute.xlu1 %441 }
  0xcf   :  { %v3549_v60 = vadd.f32 %v4017_v50, %v3548_v41  ;;  %v741_v32 = vsub.f32 %v417_v46, %v5042_v45  ;;  %v742_v28 = vsub.f32 %v417_v46, %v5046_v47  ;;  %v743_v39 = vsub.f32 %v417_v46, %v5050_v54 }
  0xd0   :  { %v744_v52 = vsub.f32 %v417_v46, %v5054_v55  ;;  %vm5602_vm12 = vcmp.lt.f32.partialorder %v745_v33, 0.0  ;;  %v10765_v1 = vmov 0  ;;  %vm5606_vm13 = vcmp.lt.f32.partialorder %v746_v31, 0.0 }
  0xd1   :  { %v10766_v1 = vsel %vm5602_vm12, 4294967295, %v10765_v1  ;;  %v10768_v61 = vmov 0  ;;  %vm5610_vm14 = vcmp.lt.f32.partialorder %v747_v2, 0.0  ;;  %v10771_v23 = vmov 0 }
  0xd2   :  { %10767 = vst [vmem:[#allocation29_spill] sm:$0xff] %v10766_v1  ;;  %v10769_v61 = vsel %vm5606_vm13, 4294967295, %v10768_v61  ;;  %v10772_v23 = vsel %vm5610_vm14, 4294967295, %v10771_v23  ;;  %vm5614_vm15 = vcmp.lt.f32.partialorder %v748_v56, 0.0  ;;  %v10774_v41 = vmov 0  ;;  %v309_v56 = vld [vmem:[%s10100_s1 + $0xf8] sm:$0xff] }
  0xd3   :  { %10770 = vst [vmem:[#allocation30_spill] sm:$0xff] %v10769_v61  ;;  %10773 = vst [vmem:[#allocation31_spill] sm:$0xff] %v10772_v23  ;;  %v10775_v41 = vsel %vm5614_vm15, 4294967295, %v10774_v41  ;;  %vm5618_vm0 = vcmp.lt.f32.partialorder %v741_v32, 0.0  ;;  %v10777_v46 = vmov 0  ;;  %vm5622_vm1 = vcmp.lt.f32.partialorder %v742_v28, 0.0  ;;  %1354 = vperm.xlu1 %4478, %v309_v56  }
  0xd4   :  { %10776 = vst [vmem:[#allocation32_spill] sm:$0xff] %v10775_v41  ;;  %v10778_v46 = vsel %vm5618_vm0, 4294967295, %v10777_v46  ;;  %v10780_v33 = vmov 0  ;;  %vm5626_vm2 = vcmp.lt.f32.partialorder %v743_v39, 0.0  ;;  %v10783_v31 = vmov 0  ;;  %v310_v56 = vld [vmem:[%s10100_s1 + $0x100] sm:$0xff] }
  0xd5   :  { %10779 = vst [vmem:[#allocation33_spill] sm:$0xff] %v10778_v46  ;;  %v10781_v33 = vsel %vm5622_vm1, 4294967295, %v10780_v33  ;;  %v10784_v31 = vsel %vm5626_vm2, 4294967295, %v10783_v31  ;;  %vm5630_vm3 = vcmp.lt.f32.partialorder %v744_v52, 0.0  ;;  %v10786_v2 = vmov 0  ;;  %v427_v46 = vpop.permute.xlu0 %426  ;;  %1359 = vperm.xlu0 %4477, %v310_v56  }
  0xd6   :  { %10782 = vst [vmem:[#allocation34_spill] sm:$0xff] %v10781_v33  ;;  %10785 = vst [vmem:[#allocation35_spill] sm:$0xff] %v10784_v31  ;;  %v10787_v2 = vsel %vm5630_vm3, 4294967295, %v10786_v2  ;;  %v4018_v32 = vsel %vm5618_vm0, 1.0, %v10716_v0  ;;  %v4019_v28 = vsel %vm5622_vm1, 1.0, %v10716_v0  ;;  %v4020_v39 = vsel %vm5626_vm2, 1.0, %v10716_v0 }
  0xd7   :  { %10788 = vst [vmem:[#allocation36_spill] sm:$0xff] %v10787_v2  ;;  %v4021_v52 = vsel %vm5630_vm3, 1.0, %v10716_v0  ;;  %v3343_v63 = vadd.f32 %v4018_v32, %v3342_v20  ;;  %v3412_v53 = vadd.f32 %v4019_v28, %v3411_v37  ;;  %v3481_v58 = vadd.f32 %v4020_v39, %v3480_v19 }
  0xd8   :  { %v3550_v50 = vadd.f32 %v4021_v52, %v3549_v60  ;;  %v753_v31 = vsub.f32 %v432_v49, %v5042_v45  ;;  %v754_v33 = vsub.f32 %v432_v49, %v5046_v47  ;;  %v755_v2 = vsub.f32 %v432_v49, %v5050_v54  ;;  %v311_v52 = vld [vmem:[%s10100_s1 + $0x108] sm:$0xff] }
  0xd9   :  { %v756_v59 = vsub.f32 %v432_v49, %v5054_v55  ;;  %v4022_v20 = vsel %vm5602_vm12, 1.0, %v10716_v0  ;;  %v4023_v37 = vsel %vm5606_vm13, 1.0, %v10716_v0  ;;  %v4024_v19 = vsel %vm5610_vm14, 1.0, %v10716_v0  ;;  %1364 = vperm.xlu1 %4478, %v311_v52   ;;  %v312_v52 = vld [vmem:[%s10100_s1 + $0x110] sm:$0xff] }
  0xda   :  { %v4025_v60 = vsel %vm5614_vm15, 1.0, %v10716_v0  ;;  %v3344_v32 = vadd.f32 %v4022_v20, %v3343_v63  ;;  %v3413_v49 = vadd.f32 %v4023_v37, %v3412_v53  ;;  %v3482_v28 = vadd.f32 %v4024_v19, %v3481_v58  ;;  %1369 = vperm.xlu0 %4477, %v312_v52   ;;  %v452_v52 = vpop.permute.xlu1 %451 }
  0xdb   :  { %v3551_v39 = vadd.f32 %v4025_v60, %v3550_v50  ;;  %v749_v61 = vsub.f32 %v427_v46, %v5042_v45  ;;  %v750_v1 = vsub.f32 %v427_v46, %v5046_v47  ;;  %v751_v23 = vsub.f32 %v427_v46, %v5050_v54 }
  0xdc   :  { %v752_v43 = vsub.f32 %v427_v46, %v5054_v55  ;;  %vm5678_vm3 = vcmp.lt.f32.partialorder %v753_v31, 0.0  ;;  %v10789_v63 = vmov 0  ;;  %vm5682_vm2 = vcmp.lt.f32.partialorder %v754_v33, 0.0 }
  0xdd   :  { %v10790_v63 = vsel %vm5678_vm3, 4294967295, %v10789_v63  ;;  %v10792_v53 = vmov 0  ;;  %vm5686_vm1 = vcmp.lt.f32.partialorder %v755_v2, 0.0  ;;  %v10795_v58 = vmov 0 }
  0xde   :  { %10791 = vst [vmem:[#allocation37_spill] sm:$0xff] %v10790_v63  ;;  %v10793_v53 = vsel %vm5682_vm2, 4294967295, %v10792_v53  ;;  %v10796_v58 = vsel %vm5686_vm1, 4294967295, %v10795_v58  ;;  %vm5690_vm0 = vcmp.lt.f32.partialorder %v756_v59, 0.0  ;;  %v10798_v50 = vmov 0  ;;  %v313_v59 = vld [vmem:[%s10100_s1 + $0x118] sm:$0xff] }
  0xdf   :  { %10794 = vst [vmem:[#allocation38_spill] sm:$0xff] %v10793_v53  ;;  %10797 = vst [vmem:[#allocation39_spill] sm:$0xff] %v10796_v58  ;;  %v10799_v50 = vsel %vm5690_vm0, 4294967295, %v10798_v50  ;;  %vm5694_vm15 = vcmp.lt.f32.partialorder %v749_v61, 0.0  ;;  %v10801_v46 = vmov 0  ;;  %vm5698_vm14 = vcmp.lt.f32.partialorder %v750_v1, 0.0  ;;  %1374 = vperm.xlu1 %4478, %v313_v59  }
  0xe0   :  { %10800 = vst [vmem:[#allocation40_spill] sm:$0xff] %v10799_v50  ;;  %v10802_v46 = vsel %vm5694_vm15, 4294967295, %v10801_v46  ;;  %v10804_v31 = vmov 0  ;;  %vm5702_vm13 = vcmp.lt.f32.partialorder %v751_v23, 0.0  ;;  %v10807_v33 = vmov 0  ;;  %v314_v59 = vld [vmem:[%s10100_s1 + $0x120] sm:$0xff] }
  0xe1   :  { %10803 = vst [vmem:[#allocation41_spill] sm:$0xff] %v10802_v46  ;;  %v10805_v31 = vsel %vm5698_vm14, 4294967295, %v10804_v31  ;;  %v10808_v33 = vsel %vm5702_vm13, 4294967295, %v10807_v33  ;;  %vm5706_vm12 = vcmp.lt.f32.partialorder %v752_v43, 0.0  ;;  %v10810_v2 = vmov 0  ;;  %v437_v46 = vpop.permute.xlu0 %436  ;;  %1379 = vperm.xlu0 %4477, %v314_v59  }
  0xe2   :  { %10806 = vst [vmem:[#allocation42_spill] sm:$0xff] %v10805_v31  ;;  %10809 = vst [vmem:[#allocation43_spill] sm:$0xff] %v10808_v33  ;;  %v10811_v2 = vsel %vm5706_vm12, 4294967295, %v10810_v2  ;;  %v4026_v61 = vsel %vm5694_vm15, 1.0, %v10716_v0  ;;  %v4027_v1 = vsel %vm5698_vm14, 1.0, %v10716_v0  ;;  %v4028_v23 = vsel %vm5702_vm13, 1.0, %v10716_v0 }
  0xe3   :  { %10812 = vst [vmem:[#allocation44_spill] sm:$0xff] %v10811_v2  ;;  %v4029_v43 = vsel %vm5706_vm12, 1.0, %v10716_v0  ;;  %v3345_v20 = vadd.f32 %v4026_v61, %v3344_v32  ;;  %v3414_v37 = vadd.f32 %v4027_v1, %v3413_v49  ;;  %v3483_v19 = vadd.f32 %v4028_v23, %v3482_v28 }
  0xe4   :  { %v3552_v60 = vadd.f32 %v4029_v43, %v3551_v39  ;;  %v761_v33 = vsub.f32 %v442_v51, %v5042_v45  ;;  %v762_v31 = vsub.f32 %v442_v51, %v5046_v47  ;;  %v763_v2 = vsub.f32 %v442_v51, %v5050_v54  ;;  %v315_v43 = vld [vmem:[%s10100_s1 + $0x128] sm:$0xff] }
  0xe5   :  { %v764_v56 = vsub.f32 %v442_v51, %v5054_v55  ;;  %v4030_v32 = vsel %vm5678_vm3, 1.0, %v10716_v0  ;;  %v4031_v49 = vsel %vm5682_vm2, 1.0, %v10716_v0  ;;  %v4032_v28 = vsel %vm5686_vm1, 1.0, %v10716_v0  ;;  %1384 = vperm.xlu1 %4478, %v315_v43   ;;  %v316_v43 = vld [vmem:[%s10100_s1 + $0x130] sm:$0xff] }
  0xe6   :  { %v4033_v39 = vsel %vm5690_vm0, 1.0, %v10716_v0  ;;  %v3346_v61 = vadd.f32 %v4030_v32, %v3345_v20  ;;  %v3415_v51 = vadd.f32 %v4031_v49, %v3414_v37  ;;  %v3484_v1 = vadd.f32 %v4032_v28, %v3483_v19  ;;  %1389 = vperm.xlu0 %4477, %v316_v43   ;;  %v462_v43 = vpop.permute.xlu1 %461 }
  0xe7   :  { %v3553_v23 = vadd.f32 %v4033_v39, %v3552_v60  ;;  %v757_v53 = vsub.f32 %v437_v46, %v5042_v45  ;;  %v758_v63 = vsub.f32 %v437_v46, %v5046_v47  ;;  %v759_v58 = vsub.f32 %v437_v46, %v5050_v54 }
  0xe8   :  { %v760_v41 = vsub.f32 %v437_v46, %v5054_v55  ;;  %vm5754_vm12 = vcmp.lt.f32.partialorder %v761_v33, 0.0  ;;  %v10813_v20 = vmov 0  ;;  %vm5758_vm13 = vcmp.lt.f32.partialorder %v762_v31, 0.0 }
  0xe9   :  { %v10814_v20 = vsel %vm5754_vm12, 4294967295, %v10813_v20  ;;  %v10816_v37 = vmov 0  ;;  %vm5762_vm14 = vcmp.lt.f32.partialorder %v763_v2, 0.0  ;;  %v10819_v19 = vmov 0 }
  0xea   :  { %10815 = vst [vmem:[#allocation45_spill] sm:$0xff] %v10814_v20  ;;  %v10817_v37 = vsel %vm5758_vm13, 4294967295, %v10816_v37  ;;  %v10820_v19 = vsel %vm5762_vm14, 4294967295, %v10819_v19  ;;  %vm5766_vm15 = vcmp.lt.f32.partialorder %v764_v56, 0.0  ;;  %v10822_v60 = vmov 0  ;;  %v317_v56 = vld [vmem:[%s10100_s1 + $0x138] sm:$0xff] }
  0xeb   :  { %10818 = vst [vmem:[#allocation46_spill] sm:$0xff] %v10817_v37  ;;  %10821 = vst [vmem:[#allocation47_spill] sm:$0xff] %v10820_v19  ;;  %v10823_v60 = vsel %vm5766_vm15, 4294967295, %v10822_v60  ;;  %vm5770_vm0 = vcmp.lt.f32.partialorder %v757_v53, 0.0  ;;  %v10825_v46 = vmov 0  ;;  %vm5774_vm1 = vcmp.lt.f32.partialorder %v758_v63, 0.0  ;;  %1394 = vperm.xlu1 %4478, %v317_v56  }
  0xec   :  { %10824 = vst [vmem:[#allocation48_spill] sm:$0xff] %v10823_v60  ;;  %v10826_v46 = vsel %vm5770_vm0, 4294967295, %v10825_v46  ;;  %v10828_v33 = vmov 0  ;;  %vm5778_vm2 = vcmp.lt.f32.partialorder %v759_v58, 0.0  ;;  %v10831_v31 = vmov 0  ;;  %v318_v56 = vld [vmem:[%s10100_s1 + $0x140] sm:$0xff] }
  0xed   :  { %10827 = vst [vmem:[#allocation49_spill] sm:$0xff] %v10826_v46  ;;  %v10829_v33 = vsel %vm5774_vm1, 4294967295, %v10828_v33  ;;  %v10832_v31 = vsel %vm5778_vm2, 4294967295, %v10831_v31  ;;  %vm5782_vm3 = vcmp.lt.f32.partialorder %v760_v41, 0.0  ;;  %v10834_v2 = vmov 0  ;;  %v447_v46 = vpop.permute.xlu0 %446  ;;  %1399 = vperm.xlu0 %4477, %v318_v56  }
  0xee   :  { %10830 = vst [vmem:[#allocation50_spill] sm:$0xff] %v10829_v33  ;;  %10833 = vst [vmem:[#allocation51_spill] sm:$0xff] %v10832_v31  ;;  %v10835_v2 = vsel %vm5782_vm3, 4294967295, %v10834_v2  ;;  %v4034_v53 = vsel %vm5770_vm0, 1.0, %v10716_v0  ;;  %v4035_v63 = vsel %vm5774_vm1, 1.0, %v10716_v0  ;;  %v4036_v58 = vsel %vm5778_vm2, 1.0, %v10716_v0 }
  0xef   :  { %10836 = vst [vmem:[#allocation52_spill] sm:$0xff] %v10835_v2  ;;  %v4037_v41 = vsel %vm5782_vm3, 1.0, %v10716_v0  ;;  %v3347_v32 = vadd.f32 %v4034_v53, %v3346_v61  ;;  %v3416_v49 = vadd.f32 %v4035_v63, %v3415_v51  ;;  %v3485_v28 = vadd.f32 %v4036_v58, %v3484_v1 }
  0xf0   :  { %v3554_v39 = vadd.f32 %v4037_v41, %v3553_v23  ;;  %v769_v31 = vsub.f32 %v452_v52, %v5042_v45  ;;  %v770_v33 = vsub.f32 %v452_v52, %v5046_v47  ;;  %v771_v2 = vsub.f32 %v452_v52, %v5050_v54  ;;  %v319_v41 = vld [vmem:[%s10100_s1 + $0x148] sm:$0xff] }
  0xf1   :  { %v772_v59 = vsub.f32 %v452_v52, %v5054_v55  ;;  %v4038_v61 = vsel %vm5754_vm12, 1.0, %v10716_v0  ;;  %v4039_v51 = vsel %vm5758_vm13, 1.0, %v10716_v0  ;;  %v4040_v1 = vsel %vm5762_vm14, 1.0, %v10716_v0  ;;  %1404 = vperm.xlu1 %4478, %v319_v41   ;;  %v320_v41 = vld [vmem:[%s10100_s1 + $0x150] sm:$0xff] }
  0xf2   :  { %v4041_v23 = vsel %vm5766_vm15, 1.0, %v10716_v0  ;;  %v3348_v53 = vadd.f32 %v4038_v61, %v3347_v32  ;;  %v3417_v52 = vadd.f32 %v4039_v51, %v3416_v49  ;;  %v3486_v63 = vadd.f32 %v4040_v1, %v3485_v28  ;;  %1409 = vperm.xlu0 %4477, %v320_v41   ;;  %v472_v41 = vpop.permute.xlu1 %471 }
  0xf3   :  { %v3555_v58 = vadd.f32 %v4041_v23, %v3554_v39  ;;  %v765_v37 = vsub.f32 %v447_v46, %v5042_v45  ;;  %v766_v20 = vsub.f32 %v447_v46, %v5046_v47  ;;  %v767_v19 = vsub.f32 %v447_v46, %v5050_v54 }
  0xf4   :  { %v768_v50 = vsub.f32 %v447_v46, %v5054_v55  ;;  %vm5830_vm3 = vcmp.lt.f32.partialorder %v769_v31, 0.0  ;;  %v10837_v32 = vmov 0  ;;  %vm5834_vm2 = vcmp.lt.f32.partialorder %v770_v33, 0.0 }
  0xf5   :  { %v10838_v32 = vsel %vm5830_vm3, 4294967295, %v10837_v32  ;;  %v10840_v49 = vmov 0  ;;  %vm5838_vm1 = vcmp.lt.f32.partialorder %v771_v2, 0.0  ;;  %v10843_v28 = vmov 0 }
  0xf6   :  { %10839 = vst [vmem:[#allocation53_spill] sm:$0xff] %v10838_v32  ;;  %v10841_v49 = vsel %vm5834_vm2, 4294967295, %v10840_v49  ;;  %v10844_v28 = vsel %vm5838_vm1, 4294967295, %v10843_v28  ;;  %vm5842_vm0 = vcmp.lt.f32.partialorder %v772_v59, 0.0  ;;  %v10846_v39 = vmov 0  ;;  %v321_v59 = vld [vmem:[%s10100_s1 + $0x158] sm:$0xff] }
  0xf7   :  { %10842 = vst [vmem:[#allocation54_spill] sm:$0xff] %v10841_v49  ;;  %10845 = vst [vmem:[#allocation55_spill] sm:$0xff] %v10844_v28  ;;  %v10847_v39 = vsel %vm5842_vm0, 4294967295, %v10846_v39  ;;  %vm5846_vm15 = vcmp.lt.f32.partialorder %v765_v37, 0.0  ;;  %v10849_v46 = vmov 0  ;;  %vm5850_vm14 = vcmp.lt.f32.partialorder %v766_v20, 0.0  ;;  %1414 = vperm.xlu1 %4478, %v321_v59  }
  0xf8   :  { %10848 = vst [vmem:[#allocation56_spill] sm:$0xff] %v10847_v39  ;;  %v10850_v46 = vsel %vm5846_vm15, 4294967295, %v10849_v46  ;;  %v10852_v31 = vmov 0  ;;  %vm5854_vm13 = vcmp.lt.f32.partialorder %v767_v19, 0.0  ;;  %v10855_v33 = vmov 0  ;;  %v322_v59 = vld [vmem:[%s10100_s1 + $0x160] sm:$0xff] }
  0xf9   :  { %10851 = vst [vmem:[#allocation57_spill] sm:$0xff] %v10850_v46  ;;  %v10853_v31 = vsel %vm5850_vm14, 4294967295, %v10852_v31  ;;  %v10856_v33 = vsel %vm5854_vm13, 4294967295, %v10855_v33  ;;  %vm5858_vm12 = vcmp.lt.f32.partialorder %v768_v50, 0.0  ;;  %v10858_v2 = vmov 0  ;;  %v457_v46 = vpop.permute.xlu0 %456  ;;  %1419 = vperm.xlu0 %4477, %v322_v59  }
  0xfa   :  { %10854 = vst [vmem:[#allocation58_spill] sm:$0xff] %v10853_v31  ;;  %10857 = vst [vmem:[#allocation59_spill] sm:$0xff] %v10856_v33  ;;  %v10859_v2 = vsel %vm5858_vm12, 4294967295, %v10858_v2  ;;  %v4042_v37 = vsel %vm5846_vm15, 1.0, %v10716_v0  ;;  %v4043_v20 = vsel %vm5850_vm14, 1.0, %v10716_v0  ;;  %v4044_v19 = vsel %vm5854_vm13, 1.0, %v10716_v0 }
  0xfb   :  { %10860 = vst [vmem:[#allocation60_spill] sm:$0xff] %v10859_v2  ;;  %v4045_v50 = vsel %vm5858_vm12, 1.0, %v10716_v0  ;;  %v3349_v61 = vadd.f32 %v4042_v37, %v3348_v53  ;;  %v3418_v51 = vadd.f32 %v4043_v20, %v3417_v52  ;;  %v3487_v1 = vadd.f32 %v4044_v19, %v3486_v63 }
  0xfc   :  { %v3556_v23 = vadd.f32 %v4045_v50, %v3555_v58  ;;  %v777_v33 = vsub.f32 %v462_v43, %v5042_v45  ;;  %v778_v31 = vsub.f32 %v462_v43, %v5046_v47  ;;  %v779_v2 = vsub.f32 %v462_v43, %v5050_v54  ;;  %v323_v50 = vld [vmem:[%s10100_s1 + $0x168] sm:$0xff] }
  0xfd   :  { %v780_v56 = vsub.f32 %v462_v43, %v5054_v55  ;;  %v4046_v53 = vsel %vm5830_vm3, 1.0, %v10716_v0  ;;  %v4047_v52 = vsel %vm5834_vm2, 1.0, %v10716_v0  ;;  %v4048_v63 = vsel %vm5838_vm1, 1.0, %v10716_v0  ;;  %1424 = vperm.xlu1 %4478, %v323_v50   ;;  %v324_v50 = vld [vmem:[%s10100_s1 + $0x170] sm:$0xff] }
  0xfe   :  { %v4049_v58 = vsel %vm5842_vm0, 1.0, %v10716_v0  ;;  %v3350_v37 = vadd.f32 %v4046_v53, %v3349_v61  ;;  %v3419_v43 = vadd.f32 %v4047_v52, %v3418_v51  ;;  %v3488_v20 = vadd.f32 %v4048_v63, %v3487_v1  ;;  %1429 = vperm.xlu0 %4477, %v324_v50   ;;  %v482_v50 = vpop.permute.xlu1 %481 }
  0xff   :  { %v3557_v19 = vadd.f32 %v4049_v58, %v3556_v23  ;;  %v773_v49 = vsub.f32 %v457_v46, %v5042_v45  ;;  %v774_v32 = vsub.f32 %v457_v46, %v5046_v47  ;;  %v775_v28 = vsub.f32 %v457_v46, %v5050_v54 }
 0x100   :  { %v776_v60 = vsub.f32 %v457_v46, %v5054_v55  ;;  %vm5906_vm12 = vcmp.lt.f32.partialorder %v777_v33, 0.0  ;;  %v10861_v61 = vmov 0  ;;  %vm5910_vm13 = vcmp.lt.f32.partialorder %v778_v31, 0.0 }
 0x101   :  { %v10862_v61 = vsel %vm5906_vm12, 4294967295, %v10861_v61  ;;  %v10864_v51 = vmov 0  ;;  %vm5914_vm14 = vcmp.lt.f32.partialorder %v779_v2, 0.0  ;;  %v10867_v1 = vmov 0 }
 0x102   :  { %10863 = vst [vmem:[#allocation61_spill] sm:$0xff] %v10862_v61  ;;  %v10865_v51 = vsel %vm5910_vm13, 4294967295, %v10864_v51  ;;  %v10868_v1 = vsel %vm5914_vm14, 4294967295, %v10867_v1  ;;  %vm5918_vm15 = vcmp.lt.f32.partialorder %v780_v56, 0.0  ;;  %v10870_v23 = vmov 0  ;;  %v325_v56 = vld [vmem:[%s10100_s1 + $0x178] sm:$0xff] }
 0x103   :  { %10866 = vst [vmem:[#allocation62_spill] sm:$0xff] %v10865_v51  ;;  %10869 = vst [vmem:[#allocation63_spill] sm:$0xff] %v10868_v1  ;;  %v10871_v23 = vsel %vm5918_vm15, 4294967295, %v10870_v23  ;;  %vm5922_vm0 = vcmp.lt.f32.partialorder %v773_v49, 0.0  ;;  %v10873_v46 = vmov 0  ;;  %vm5926_vm1 = vcmp.lt.f32.partialorder %v774_v32, 0.0  ;;  %1434 = vperm.xlu1 %4478, %v325_v56  }
 0x104   :  { %10872 = vst [vmem:[#allocation64_spill] sm:$0xff] %v10871_v23  ;;  %v10874_v46 = vsel %vm5922_vm0, 4294967295, %v10873_v46  ;;  %v10876_v33 = vmov 0  ;;  %vm5930_vm2 = vcmp.lt.f32.partialorder %v775_v28, 0.0  ;;  %v10879_v31 = vmov 0  ;;  %v326_v56 = vld [vmem:[%s10100_s1 + $0x180] sm:$0xff] }
 0x105   :  { %10875 = vst [vmem:[#allocation65_spill] sm:$0xff] %v10874_v46  ;;  %v10877_v33 = vsel %vm5926_vm1, 4294967295, %v10876_v33  ;;  %v10880_v31 = vsel %vm5930_vm2, 4294967295, %v10879_v31  ;;  %vm5934_vm3 = vcmp.lt.f32.partialorder %v776_v60, 0.0  ;;  %v10882_v2 = vmov 0  ;;  %v467_v46 = vpop.permute.xlu0 %466  ;;  %1439 = vperm.xlu0 %4477, %v326_v56  }
 0x106   :  { %10878 = vst [vmem:[#allocation66_spill] sm:$0xff] %v10877_v33  ;;  %10881 = vst [vmem:[#allocation67_spill] sm:$0xff] %v10880_v31  ;;  %v10883_v2 = vsel %vm5934_vm3, 4294967295, %v10882_v2  ;;  %v4050_v49 = vsel %vm5922_vm0, 1.0, %v10716_v0  ;;  %v4051_v32 = vsel %vm5926_vm1, 1.0, %v10716_v0  ;;  %v4052_v28 = vsel %vm5930_vm2, 1.0, %v10716_v0 }
 0x107   :  { %10884 = vst [vmem:[#allocation68_spill] sm:$0xff] %v10883_v2  ;;  %v4053_v60 = vsel %vm5934_vm3, 1.0, %v10716_v0  ;;  %v3351_v53 = vadd.f32 %v4050_v49, %v3350_v37  ;;  %v3420_v52 = vadd.f32 %v4051_v32, %v3419_v43  ;;  %v3489_v63 = vadd.f32 %v4052_v28, %v3488_v20 }
 0x108   :  { %v3558_v58 = vadd.f32 %v4053_v60, %v3557_v19  ;;  %v785_v31 = vsub.f32 %v472_v41, %v5042_v45  ;;  %v786_v33 = vsub.f32 %v472_v41, %v5046_v47  ;;  %v787_v2 = vsub.f32 %v472_v41, %v5050_v54  ;;  %v327_v60 = vld [vmem:[%s10100_s1 + $0x188] sm:$0xff] }
 0x109   :  { %v788_v59 = vsub.f32 %v472_v41, %v5054_v55  ;;  %v4054_v37 = vsel %vm5906_vm12, 1.0, %v10716_v0  ;;  %v4055_v43 = vsel %vm5910_vm13, 1.0, %v10716_v0  ;;  %v4056_v20 = vsel %vm5914_vm14, 1.0, %v10716_v0  ;;  %1444 = vperm.xlu1 %4478, %v327_v60   ;;  %v328_v60 = vld [vmem:[%s10100_s1 + $0x190] sm:$0xff] }
 0x10a   :  { %v4057_v19 = vsel %vm5918_vm15, 1.0, %v10716_v0  ;;  %v3352_v49 = vadd.f32 %v4054_v37, %v3351_v53  ;;  %v3421_v41 = vadd.f32 %v4055_v43, %v3420_v52  ;;  %v3490_v32 = vadd.f32 %v4056_v20, %v3489_v63  ;;  %1449 = vperm.xlu0 %4477, %v328_v60   ;;  %v492_v60 = vpop.permute.xlu1 %491 }
 0x10b   :  { %v3559_v28 = vadd.f32 %v4057_v19, %v3558_v58  ;;  %v781_v51 = vsub.f32 %v467_v46, %v5042_v45  ;;  %v782_v61 = vsub.f32 %v467_v46, %v5046_v47  ;;  %v783_v1 = vsub.f32 %v467_v46, %v5050_v54 }
 0x10c   :  { %v784_v39 = vsub.f32 %v467_v46, %v5054_v55  ;;  %vm5982_vm3 = vcmp.lt.f32.partialorder %v785_v31, 0.0  ;;  %v10885_v53 = vmov 0  ;;  %vm5986_vm2 = vcmp.lt.f32.partialorder %v786_v33, 0.0 }
 0x10d   :  { %v10886_v53 = vsel %vm5982_vm3, 4294967295, %v10885_v53  ;;  %v10888_v52 = vmov 0  ;;  %vm5990_vm1 = vcmp.lt.f32.partialorder %v787_v2, 0.0  ;;  %v10891_v63 = vmov 0 }
 0x10e   :  { %10887 = vst [vmem:[#allocation69_spill] sm:$0xff] %v10886_v53  ;;  %v10889_v52 = vsel %vm5986_vm2, 4294967295, %v10888_v52  ;;  %v10892_v63 = vsel %vm5990_vm1, 4294967295, %v10891_v63  ;;  %vm5994_vm0 = vcmp.lt.f32.partialorder %v788_v59, 0.0  ;;  %v10894_v58 = vmov 0  ;;  %v329_v59 = vld [vmem:[%s10100_s1 + $0x198] sm:$0xff] }
 0x10f   :  { %10890 = vst [vmem:[#allocation70_spill] sm:$0xff] %v10889_v52  ;;  %10893 = vst [vmem:[#allocation71_spill] sm:$0xff] %v10892_v63  ;;  %v10895_v58 = vsel %vm5994_vm0, 4294967295, %v10894_v58  ;;  %vm5998_vm15 = vcmp.lt.f32.partialorder %v781_v51, 0.0  ;;  %v10897_v46 = vmov 0  ;;  %vm6002_vm14 = vcmp.lt.f32.partialorder %v782_v61, 0.0  ;;  %1454 = vperm.xlu1 %4478, %v329_v59  }
 0x110   :  { %10896 = vst [vmem:[#allocation72_spill] sm:$0xff] %v10895_v58  ;;  %v10898_v46 = vsel %vm5998_vm15, 4294967295, %v10897_v46  ;;  %v10900_v31 = vmov 0  ;;  %vm6006_vm13 = vcmp.lt.f32.partialorder %v783_v1, 0.0  ;;  %v10903_v33 = vmov 0  ;;  %v330_v59 = vld [vmem:[%s10100_s1 + $0x1a0] sm:$0xff] }
 0x111   :  { %10899 = vst [vmem:[#allocation73_spill] sm:$0xff] %v10898_v46  ;;  %v10901_v31 = vsel %vm6002_vm14, 4294967295, %v10900_v31  ;;  %v10904_v33 = vsel %vm6006_vm13, 4294967295, %v10903_v33  ;;  %vm6010_vm12 = vcmp.lt.f32.partialorder %v784_v39, 0.0  ;;  %v10906_v2 = vmov 0  ;;  %v477_v46 = vpop.permute.xlu0 %476  ;;  %1459 = vperm.xlu0 %4477, %v330_v59  }
 0x112   :  { %10902 = vst [vmem:[#allocation74_spill] sm:$0xff] %v10901_v31  ;;  %10905 = vst [vmem:[#allocation75_spill] sm:$0xff] %v10904_v33  ;;  %v10907_v2 = vsel %vm6010_vm12, 4294967295, %v10906_v2  ;;  %v4058_v51 = vsel %vm5998_vm15, 1.0, %v10716_v0  ;;  %v4059_v61 = vsel %vm6002_vm14, 1.0, %v10716_v0  ;;  %v4060_v1 = vsel %vm6006_vm13, 1.0, %v10716_v0 }
 0x113   :  { %10908 = vst [vmem:[#allocation76_spill] sm:$0xff] %v10907_v2  ;;  %v4061_v39 = vsel %vm6010_vm12, 1.0, %v10716_v0  ;;  %v3353_v37 = vadd.f32 %v4058_v51, %v3352_v49  ;;  %v3422_v43 = vadd.f32 %v4059_v61, %v3421_v41  ;;  %v3491_v20 = vadd.f32 %v4060_v1, %v3490_v32 }
 0x114   :  { %v3560_v19 = vadd.f32 %v4061_v39, %v3559_v28  ;;  %v793_v33 = vsub.f32 %v482_v50, %v5042_v45  ;;  %v794_v31 = vsub.f32 %v482_v50, %v5046_v47  ;;  %v795_v2 = vsub.f32 %v482_v50, %v5050_v54  ;;  %v331_v39 = vld [vmem:[%s10100_s1 + $0x1a8] sm:$0xff] }
 0x115   :  { %v796_v56 = vsub.f32 %v482_v50, %v5054_v55  ;;  %v4062_v49 = vsel %vm5982_vm3, 1.0, %v10716_v0  ;;  %v4063_v41 = vsel %vm5986_vm2, 1.0, %v10716_v0  ;;  %v4064_v32 = vsel %vm5990_vm1, 1.0, %v10716_v0  ;;  %1464 = vperm.xlu1 %4478, %v331_v39   ;;  %v332_v39 = vld [vmem:[%s10100_s1 + $0x1b0] sm:$0xff] }
 0x116   :  { %v4065_v28 = vsel %vm5994_vm0, 1.0, %v10716_v0  ;;  %v3354_v51 = vadd.f32 %v4062_v49, %v3353_v37  ;;  %v3423_v50 = vadd.f32 %v4063_v41, %v3422_v43  ;;  %v3492_v61 = vadd.f32 %v4064_v32, %v3491_v20  ;;  %1469 = vperm.xlu0 %4477, %v332_v39   ;;  %v502_v39 = vpop.permute.xlu1 %501 }
 0x117   :  { %v3561_v1 = vadd.f32 %v4065_v28, %v3560_v19  ;;  %v789_v52 = vsub.f32 %v477_v46, %v5042_v45  ;;  %v790_v53 = vsub.f32 %v477_v46, %v5046_v47  ;;  %v791_v63 = vsub.f32 %v477_v46, %v5050_v54 }
 0x118   :  { %v792_v23 = vsub.f32 %v477_v46, %v5054_v55  ;;  %vm6058_vm12 = vcmp.lt.f32.partialorder %v793_v33, 0.0  ;;  %v10909_v37 = vmov 0  ;;  %vm6062_vm13 = vcmp.lt.f32.partialorder %v794_v31, 0.0 }
 0x119   :  { %v10910_v37 = vsel %vm6058_vm12, 4294967295, %v10909_v37  ;;  %v10912_v43 = vmov 0  ;;  %vm6066_vm14 = vcmp.lt.f32.partialorder %v795_v2, 0.0  ;;  %v10915_v20 = vmov 0 }
 0x11a   :  { %10911 = vst [vmem:[#allocation77_spill] sm:$0xff] %v10910_v37  ;;  %v10913_v43 = vsel %vm6062_vm13, 4294967295, %v10912_v43  ;;  %v10916_v20 = vsel %vm6066_vm14, 4294967295, %v10915_v20  ;;  %vm6070_vm15 = vcmp.lt.f32.partialorder %v796_v56, 0.0  ;;  %v10918_v19 = vmov 0  ;;  %v333_v56 = vld [vmem:[%s10100_s1 + $0x1b8] sm:$0xff] }
 0x11b   :  { %10914 = vst [vmem:[#allocation78_spill] sm:$0xff] %v10913_v43  ;;  %10917 = vst [vmem:[#allocation79_spill] sm:$0xff] %v10916_v20  ;;  %v10919_v19 = vsel %vm6070_vm15, 4294967295, %v10918_v19  ;;  %vm6074_vm0 = vcmp.lt.f32.partialorder %v789_v52, 0.0  ;;  %v10921_v46 = vmov 0  ;;  %vm6078_vm1 = vcmp.lt.f32.partialorder %v790_v53, 0.0  ;;  %1474 = vperm.xlu1 %4478, %v333_v56  }
 0x11c   :  { %10920 = vst [vmem:[#allocation80_spill] sm:$0xff] %v10919_v19  ;;  %v10922_v46 = vsel %vm6074_vm0, 4294967295, %v10921_v46  ;;  %v10924_v33 = vmov 0  ;;  %vm6082_vm2 = vcmp.lt.f32.partialorder %v791_v63, 0.0  ;;  %v10927_v31 = vmov 0  ;;  %v334_v56 = vld [vmem:[%s10100_s1 + $0x1c0] sm:$0xff] }
 0x11d   :  { %10923 = vst [vmem:[#allocation81_spill] sm:$0xff] %v10922_v46  ;;  %v10925_v33 = vsel %vm6078_vm1, 4294967295, %v10924_v33  ;;  %v10928_v31 = vsel %vm6082_vm2, 4294967295, %v10927_v31  ;;  %vm6086_vm3 = vcmp.lt.f32.partialorder %v792_v23, 0.0  ;;  %v10930_v2 = vmov 0  ;;  %v487_v46 = vpop.permute.xlu0 %486  ;;  %1479 = vperm.xlu0 %4477, %v334_v56  }
 0x11e   :  { %10926 = vst [vmem:[#allocation82_spill] sm:$0xff] %v10925_v33  ;;  %10929 = vst [vmem:[#allocation83_spill] sm:$0xff] %v10928_v31  ;;  %v10931_v2 = vsel %vm6086_vm3, 4294967295, %v10930_v2  ;;  %v4066_v52 = vsel %vm6074_vm0, 1.0, %v10716_v0  ;;  %v4067_v53 = vsel %vm6078_vm1, 1.0, %v10716_v0  ;;  %v4068_v63 = vsel %vm6082_vm2, 1.0, %v10716_v0 }
 0x11f   :  { %10932 = vst [vmem:[#allocation84_spill] sm:$0xff] %v10931_v2  ;;  %v4069_v23 = vsel %vm6086_vm3, 1.0, %v10716_v0  ;;  %v3355_v49 = vadd.f32 %v4066_v52, %v3354_v51  ;;  %v3424_v41 = vadd.f32 %v4067_v53, %v3423_v50  ;;  %v3493_v32 = vadd.f32 %v4068_v63, %v3492_v61 }
 0x120   :  { %v3562_v28 = vadd.f32 %v4069_v23, %v3561_v1  ;;  %v801_v31 = vsub.f32 %v492_v60, %v5042_v45  ;;  %v802_v33 = vsub.f32 %v492_v60, %v5046_v47  ;;  %v803_v2 = vsub.f32 %v492_v60, %v5050_v54  ;;  %v335_v23 = vld [vmem:[%s10100_s1 + $0x1c8] sm:$0xff] }
 0x121   :  { %v804_v59 = vsub.f32 %v492_v60, %v5054_v55  ;;  %v4070_v51 = vsel %vm6058_vm12, 1.0, %v10716_v0  ;;  %v4071_v50 = vsel %vm6062_vm13, 1.0, %v10716_v0  ;;  %v4072_v61 = vsel %vm6066_vm14, 1.0, %v10716_v0  ;;  %1484 = vperm.xlu1 %4478, %v335_v23   ;;  %v336_v23 = vld [vmem:[%s10100_s1 + $0x1d0] sm:$0xff] }
 0x122   :  { %v4073_v1 = vsel %vm6070_vm15, 1.0, %v10716_v0  ;;  %v3356_v52 = vadd.f32 %v4070_v51, %v3355_v49  ;;  %v3425_v60 = vadd.f32 %v4071_v50, %v3424_v41  ;;  %v3494_v53 = vadd.f32 %v4072_v61, %v3493_v32  ;;  %1489 = vperm.xlu0 %4477, %v336_v23   ;;  %v512_v23 = vpop.permute.xlu1 %511 }
 0x123   :  { %v3563_v63 = vadd.f32 %v4073_v1, %v3562_v28  ;;  %v797_v43 = vsub.f32 %v487_v46, %v5042_v45  ;;  %v798_v37 = vsub.f32 %v487_v46, %v5046_v47  ;;  %v799_v20 = vsub.f32 %v487_v46, %v5050_v54 }
 0x124   :  { %v800_v58 = vsub.f32 %v487_v46, %v5054_v55  ;;  %vm6134_vm3 = vcmp.lt.f32.partialorder %v801_v31, 0.0  ;;  %v10933_v49 = vmov 0  ;;  %vm6138_vm2 = vcmp.lt.f32.partialorder %v802_v33, 0.0 }
 0x125   :  { %v10934_v49 = vsel %vm6134_vm3, 4294967295, %v10933_v49  ;;  %v10936_v41 = vmov 0  ;;  %vm6142_vm1 = vcmp.lt.f32.partialorder %v803_v2, 0.0  ;;  %v10939_v32 = vmov 0 }
 0x126   :  { %10935 = vst [vmem:[#allocation85_spill] sm:$0xff] %v10934_v49  ;;  %v10937_v41 = vsel %vm6138_vm2, 4294967295, %v10936_v41  ;;  %v10940_v32 = vsel %vm6142_vm1, 4294967295, %v10939_v32  ;;  %vm6146_vm0 = vcmp.lt.f32.partialorder %v804_v59, 0.0  ;;  %v10942_v28 = vmov 0  ;;  %v337_v59 = vld [vmem:[%s10100_s1 + $0x1d8] sm:$0xff] }
 0x127   :  { %10938 = vst [vmem:[#allocation86_spill] sm:$0xff] %v10937_v41  ;;  %10941 = vst [vmem:[#allocation87_spill] sm:$0xff] %v10940_v32  ;;  %v10943_v28 = vsel %vm6146_vm0, 4294967295, %v10942_v28  ;;  %vm6150_vm15 = vcmp.lt.f32.partialorder %v797_v43, 0.0  ;;  %v10945_v46 = vmov 0  ;;  %vm6154_vm14 = vcmp.lt.f32.partialorder %v798_v37, 0.0  ;;  %1494 = vperm.xlu1 %4478, %v337_v59  }
 0x128   :  { %10944 = vst [vmem:[#allocation88_spill] sm:$0xff] %v10943_v28  ;;  %v10946_v46 = vsel %vm6150_vm15, 4294967295, %v10945_v46  ;;  %v10948_v31 = vmov 0  ;;  %vm6158_vm13 = vcmp.lt.f32.partialorder %v799_v20, 0.0  ;;  %v10951_v33 = vmov 0  ;;  %v338_v59 = vld [vmem:[%s10100_s1 + $0x1e0] sm:$0xff] }
 0x129   :  { %10947 = vst [vmem:[#allocation89_spill] sm:$0xff] %v10946_v46  ;;  %v10949_v31 = vsel %vm6154_vm14, 4294967295, %v10948_v31  ;;  %v10952_v33 = vsel %vm6158_vm13, 4294967295, %v10951_v33  ;;  %vm6162_vm12 = vcmp.lt.f32.partialorder %v800_v58, 0.0  ;;  %v10954_v2 = vmov 0  ;;  %v497_v46 = vpop.permute.xlu0 %496  ;;  %1499 = vperm.xlu0 %4477, %v338_v59   ;;  %v340_v59 = vld [vmem:[%s10100_s1 + $0x1f0] sm:$0xff] }
 0x12a   :  { %10950 = vst [vmem:[#allocation90_spill] sm:$0xff] %v10949_v31  ;;  %10953 = vst [vmem:[#allocation91_spill] sm:$0xff] %v10952_v33  ;;  %v10955_v2 = vsel %vm6162_vm12, 4294967295, %v10954_v2  ;;  %v4074_v43 = vsel %vm6150_vm15, 1.0, %v10716_v0  ;;  %v4075_v37 = vsel %vm6154_vm14, 1.0, %v10716_v0  ;;  %v4076_v20 = vsel %vm6158_vm13, 1.0, %v10716_v0 }
 0x12b   :  { %10956 = vst [vmem:[#allocation92_spill] sm:$0xff] %v10955_v2  ;;  %v4077_v58 = vsel %vm6162_vm12, 1.0, %v10716_v0  ;;  %v3357_v51 = vadd.f32 %v4074_v43, %v3356_v52  ;;  %v3426_v50 = vadd.f32 %v4075_v37, %v3425_v60  ;;  %v3495_v61 = vadd.f32 %v4076_v20, %v3494_v53 }
 0x12c   :  { %v3564_v1 = vadd.f32 %v4077_v58, %v3563_v63  ;;  %v809_v33 = vsub.f32 %v502_v39, %v5042_v45  ;;  %v810_v31 = vsub.f32 %v502_v39, %v5046_v47  ;;  %v811_v2 = vsub.f32 %v502_v39, %v5050_v54  ;;  %v339_v58 = vld [vmem:[%s10100_s1 + $0x1e8] sm:$0xff] }
 0x12d   :  { %v812_v56 = vsub.f32 %v502_v39, %v5054_v55  ;;  %v4078_v52 = vsel %vm6134_vm3, 1.0, %v10716_v0  ;;  %v4079_v60 = vsel %vm6138_vm2, 1.0, %v10716_v0  ;;  %v4080_v53 = vsel %vm6142_vm1, 1.0, %v10716_v0  ;;  %1504 = vperm.xlu1 %4478, %v339_v58   ;;  %v507_v28 = vpop.permute.xlu0 %506  ;;  %1509 = vperm.xlu0 %4477, %v340_v59  }
 0x12e   :  { %v4081_v63 = vsel %vm6146_vm0, 1.0, %v10716_v0  ;;  %v3358_v43 = vadd.f32 %v4078_v52, %v3357_v51  ;;  %v3427_v39 = vadd.f32 %v4079_v60, %v3426_v50  ;;  %v3496_v37 = vadd.f32 %v4080_v53, %v3495_v61 }
 0x12f   :  { %v3565_v20 = vadd.f32 %v4081_v63, %v3564_v1  ;;  %v805_v41 = vsub.f32 %v497_v46, %v5042_v45  ;;  %v806_v49 = vsub.f32 %v497_v46, %v5046_v47  ;;  %v807_v32 = vsub.f32 %v497_v46, %v5050_v54 }
 0x130   :  { %v808_v19 = vsub.f32 %v497_v46, %v5054_v55  ;;  %vm6210_vm12 = vcmp.lt.f32.partialorder %v809_v33, 0.0  ;;  %v10957_v51 = vmov 0  ;;  %vm6214_vm13 = vcmp.lt.f32.partialorder %v810_v31, 0.0 }
 0x131   :  { %v10958_v51 = vsel %vm6210_vm12, 4294967295, %v10957_v51  ;;  %v10960_v50 = vmov 0  ;;  %vm6218_vm14 = vcmp.lt.f32.partialorder %v811_v2, 0.0  ;;  %v10963_v61 = vmov 0 }
 0x132   :  { %10959 = vst [vmem:[#allocation93_spill] sm:$0xff] %v10958_v51  ;;  %v10961_v50 = vsel %vm6214_vm13, 4294967295, %v10960_v50  ;;  %v10964_v61 = vsel %vm6218_vm14, 4294967295, %v10963_v61  ;;  %vm6222_vm15 = vcmp.lt.f32.partialorder %v812_v56, 0.0  ;;  %v10966_v1 = vmov 0 }
 0x133   :  { %10962 = vst [vmem:[#allocation94_spill] sm:$0xff] %v10961_v50  ;;  %10965 = vst [vmem:[#allocation95_spill] sm:$0xff] %v10964_v61  ;;  %v10967_v1 = vsel %vm6222_vm15, 4294967295, %v10966_v1  ;;  %vm6226_vm0 = vcmp.lt.f32.partialorder %v805_v41, 0.0  ;;  %v10969_v46 = vmov 0  ;;  %vm6230_vm1 = vcmp.lt.f32.partialorder %v806_v49, 0.0 }
 0x134   :  { %10968 = vst [vmem:[#allocation96_spill] sm:$0xff] %v10967_v1  ;;  %v10970_v46 = vsel %vm6226_vm0, 4294967295, %v10969_v46  ;;  %v10972_v33 = vmov 0  ;;  %vm6234_vm2 = vcmp.lt.f32.partialorder %v807_v32, 0.0  ;;  %v10975_v31 = vmov 0 }
 0x135   :  { %10971 = vst [vmem:[#allocation97_spill] sm:$0xff] %v10970_v46  ;;  %v10973_v33 = vsel %vm6230_vm1, 4294967295, %v10972_v33  ;;  %v10976_v31 = vsel %vm6234_vm2, 4294967295, %v10975_v31  ;;  %vm6238_vm3 = vcmp.lt.f32.partialorder %v808_v19, 0.0  ;;  %v10978_v2 = vmov 0 }
 0x136   :  { %10974 = vst [vmem:[#allocation98_spill] sm:$0xff] %v10973_v33  ;;  %10977 = vst [vmem:[#allocation99_spill] sm:$0xff] %v10976_v31  ;;  %v10979_v2 = vsel %vm6238_vm3, 4294967295, %v10978_v2  ;;  %v4082_v41 = vsel %vm6226_vm0, 1.0, %v10716_v0  ;;  %v4083_v49 = vsel %vm6230_vm1, 1.0, %v10716_v0  ;;  %v4084_v32 = vsel %vm6234_vm2, 1.0, %v10716_v0 }
 0x137   :  { %10980 = vst [vmem:[#allocation100_spill] sm:$0xff] %v10979_v2  ;;  %v4085_v19 = vsel %vm6238_vm3, 1.0, %v10716_v0  ;;  %v3359_v56 = vadd.f32 %v4082_v41, %v3358_v43  ;;  %v3428_v52 = vadd.f32 %v4083_v49, %v3427_v39  ;;  %v3497_v60 = vadd.f32 %v4084_v32, %v3496_v37 }
 0x138   :  { %v3566_v53 = vadd.f32 %v4085_v19, %v3565_v20  ;;  %v817_v63 = vsub.f32 %v512_v23, %v5042_v45  ;;  %v818_v58 = vsub.f32 %v512_v23, %v5046_v47  ;;  %v819_v33 = vsub.f32 %v512_v23, %v5050_v54  ;;  %v341_v20 = vld [vmem:[%s10100_s1 + $0x1f8] sm:$0xff] }
 0x139   :  { %v820_v46 = vsub.f32 %v512_v23, %v5054_v55  ;;  %v4086_v31 = vsel %vm6210_vm12, 1.0, %v10716_v0  ;;  %v4087_v43 = vsel %vm6214_vm13, 1.0, %v10716_v0  ;;  %v4088_v39 = vsel %vm6218_vm14, 1.0, %v10716_v0  ;;  %1514 = vperm.xlu1 %4478, %v341_v20  }
 0x13a   :  { %v4089_v37 = vsel %vm6222_vm15, 1.0, %v10716_v0  ;;  %v3360_v23 = vadd.f32 %v4086_v31, %v3359_v56  ;;  %v3429_v41 = vadd.f32 %v4087_v43, %v3428_v52  ;;  %v3498_v49 = vadd.f32 %v4088_v39, %v3497_v60 }
 0x13b   :  { %v3567_v32 = vadd.f32 %v4089_v37, %v3566_v53  ;;  %v813_v19 = vsub.f32 %v507_v28, %v5042_v45  ;;  %v814_v2 = vsub.f32 %v507_v28, %v5046_v47  ;;  %v815_v1 = vsub.f32 %v507_v28, %v5050_v54 }
 0x13c   :  { %v816_v61 = vsub.f32 %v507_v28, %v5054_v55  ;;  %vm6280_vm3 = vcmp.lt.f32.partialorder %v817_v63, 0.0  ;;  %v10981_v50 = vmov 0  ;;  %vm6284_vm2 = vcmp.lt.f32.partialorder %v818_v58, 0.0 }
 0x13d   :  { %v10982_v50 = vsel %vm6280_vm3, 4294967295, %v10981_v50  ;;  %v10984_v51 = vmov 0  ;;  %vm6288_vm1 = vcmp.lt.f32.partialorder %v819_v33, 0.0  ;;  %v10987_v31 = vmov 0 }
 0x13e   :  { %10983 = vst [vmem:[#allocation101_spill] sm:$0xff] %v10982_v50  ;;  %v10985_v51 = vsel %vm6284_vm2, 4294967295, %v10984_v51  ;;  %v10988_v31 = vsel %vm6288_vm1, 4294967295, %v10987_v31  ;;  %vm6292_vm0 = vcmp.lt.f32.partialorder %v820_v46, 0.0  ;;  %v10990_v56 = vmov 0  ;;  %v522_v46 = vpop.permute.xlu1 %521 }
 0x13f   :  { %10986 = vst [vmem:[#allocation102_spill] sm:$0xff] %v10985_v51  ;;  %10989 = vst [vmem:[#allocation103_spill] sm:$0xff] %v10988_v31  ;;  %v10991_v56 = vsel %vm6292_vm0, 4294967295, %v10990_v56  ;;  %vm6296_vm15 = vcmp.lt.f32.partialorder %v813_v19, 0.0  ;;  %v10993_v52 = vmov 0  ;;  %vm6300_vm14 = vcmp.lt.f32.partialorder %v814_v2, 0.0 }
 0x140   :  { %10992 = vst [vmem:[#allocation104_spill] sm:$0xff] %v10991_v56  ;;  %v10994_v52 = vsel %vm6296_vm15, 4294967295, %v10993_v52  ;;  %v10996_v28 = vmov 0  ;;  %vm6304_vm13 = vcmp.lt.f32.partialorder %v815_v1, 0.0  ;;  %v10999_v60 = vmov 0 }
 0x141   :  { %10995 = vst [vmem:[#allocation105_spill] sm:$0xff] %v10994_v52  ;;  %v10997_v28 = vsel %vm6300_vm14, 4294967295, %v10996_v28  ;;  %v11000_v60 = vsel %vm6304_vm13, 4294967295, %v10999_v60  ;;  %vm6308_vm12 = vcmp.lt.f32.partialorder %v816_v61, 0.0  ;;  %v11002_v33 = vmov 0 }
 0x142   :  { %10998 = vst [vmem:[#allocation106_spill] sm:$0xff] %v10997_v28  ;;  %11001 = vst [vmem:[#allocation107_spill] sm:$0xff] %v11000_v60  ;;  %v11003_v33 = vsel %vm6308_vm12, 4294967295, %v11002_v33  ;;  %v4090_v53 = vsel %vm6296_vm15, 1.0, %v10716_v0  ;;  %v4091_v2 = vsel %vm6300_vm14, 1.0, %v10716_v0  ;;  %v4092_v1 = vsel %vm6304_vm13, 1.0, %v10716_v0  ;;  %v517_v28 = vpop.permute.xlu0 %516 }
 0x143   :  { %11004 = vst [vmem:[#allocation108_spill] sm:$0xff] %v11003_v33  ;;  %v4093_v61 = vsel %vm6308_vm12, 1.0, %v10716_v0  ;;  %v3361_v63 = vadd.f32 %v4090_v53, %v3360_v23  ;;  %v3430_v58 = vadd.f32 %v4091_v2, %v3429_v41  ;;  %v3499_v43 = vadd.f32 %v4092_v1, %v3498_v49 }
 0x144   :  { %v3568_v39 = vadd.f32 %v4093_v61, %v3567_v32  ;;  %v825_v37 = vsub.f32 %v522_v46, %v5042_v45  ;;  %v826_v20 = vsub.f32 %v522_v46, %v5046_v47  ;;  %v827_v59 = vsub.f32 %v522_v46, %v5050_v54 }
 0x145   :  { %v828_v19 = vsub.f32 %v522_v46, %v5054_v55  ;;  %v4094_v60 = vsel %vm6280_vm3, 1.0, %v10716_v0  ;;  %v4095_v23 = vsel %vm6284_vm2, 1.0, %v10716_v0  ;;  %v4096_v41 = vsel %vm6288_vm1, 1.0, %v10716_v0 }
 0x146   :  { %v4097_v49 = vsel %vm6292_vm0, 1.0, %v10716_v0  ;;  %v3362_v32 = vadd.f32 %v4094_v60, %v3361_v63  ;;  %v3431_v53 = vadd.f32 %v4095_v23, %v3430_v58  ;;  %v3500_v46 = vadd.f32 %v4096_v41, %v3499_v43  ;;  %v527_v56 = vpop.permute.xlu0 %526 }
 0x147   :  { %v3569_v2 = vadd.f32 %v4097_v49, %v3568_v39  ;;  %v821_v1 = vsub.f32 %v517_v28, %v5042_v45  ;;  %v822_v61 = vsub.f32 %v517_v28, %v5046_v47  ;;  %v823_v33 = vsub.f32 %v517_v28, %v5050_v54 }
 0x148   :  { %v824_v52 = vsub.f32 %v517_v28, %v5054_v55  ;;  %vm6344_vm12 = vcmp.lt.f32.partialorder %v825_v37, 0.0  ;;  %v11005_v51 = vmov 0  ;;  %vm6348_vm13 = vcmp.lt.f32.partialorder %v826_v20, 0.0  ;;  %v532_v37 = vpop.permute.xlu1 %531 }
 0x149   :  { %v11006_v51 = vsel %vm6344_vm12, 4294967295, %v11005_v51  ;;  %v11008_v31 = vmov 0  ;;  %vm6352_vm14 = vcmp.lt.f32.partialorder %v827_v59, 0.0  ;;  %v11011_v60 = vmov 0 }
 0x14a   :  { %11007 = vst [vmem:[#allocation109_spill] sm:$0xff] %v11006_v51  ;;  %v11009_v31 = vsel %vm6348_vm13, 4294967295, %v11008_v31  ;;  %v11012_v60 = vsel %vm6352_vm14, 4294967295, %v11011_v60  ;;  %vm6356_vm15 = vcmp.lt.f32.partialorder %v828_v19, 0.0  ;;  %v11014_v63 = vmov 0 }
 0x14b   :  { %11010 = vst [vmem:[#allocation110_spill] sm:$0xff] %v11009_v31  ;;  %11013 = vst [vmem:[#allocation111_spill] sm:$0xff] %v11012_v60  ;;  %v11015_v63 = vsel %vm6356_vm15, 4294967295, %v11014_v63  ;;  %vm6360_vm0 = vcmp.lt.f32.partialorder %v821_v1, 0.0  ;;  %v11017_v58 = vmov 0  ;;  %vm6364_vm1 = vcmp.lt.f32.partialorder %v822_v61, 0.0 }
 0x14c   :  { %11016 = vst [vmem:[#allocation112_spill] sm:$0xff] %v11015_v63  ;;  %v11018_v58 = vsel %vm6360_vm0, 4294967295, %v11017_v58  ;;  %v11020_v28 = vmov 0  ;;  %vm6368_vm2 = vcmp.lt.f32.partialorder %v823_v33, 0.0  ;;  %v11023_v43 = vmov 0 }
 0x14d   :  { %11019 = vst [vmem:[#allocation113_spill] sm:$0xff] %v11018_v58  ;;  %v11021_v28 = vsel %vm6364_vm1, 4294967295, %v11020_v28  ;;  %v11024_v43 = vsel %vm6368_vm2, 4294967295, %v11023_v43  ;;  %vm6372_vm3 = vcmp.lt.f32.partialorder %v824_v52, 0.0  ;;  %v11026_v39 = vmov 0 }
 0x14e   :  { %11022 = vst [vmem:[#allocation114_spill] sm:$0xff] %v11021_v28  ;;  %11025 = vst [vmem:[#allocation115_spill] sm:$0xff] %v11024_v43  ;;  %v11027_v39 = vsel %vm6372_vm3, 4294967295, %v11026_v39  ;;  %v4098_v20 = vsel %vm6360_vm0, 1.0, %v10716_v0  ;;  %v4099_v59 = vsel %vm6364_vm1, 1.0, %v10716_v0  ;;  %v4100_v33 = vsel %vm6368_vm2, 1.0, %v10716_v0 }
 0x14f   :  { %11028 = vst [vmem:[#allocation116_spill] sm:$0xff] %v11027_v39  ;;  %v4101_v52 = vsel %vm6372_vm3, 1.0, %v10716_v0  ;;  %v3363_v19 = vadd.f32 %v4098_v20, %v3362_v32  ;;  %v3432_v23 = vadd.f32 %v4099_v59, %v3431_v53  ;;  %v3501_v41 = vadd.f32 %v4100_v33, %v3500_v46 }
 0x150   :  { %v3570_v49 = vadd.f32 %v4101_v52, %v3569_v2  ;;  %v833_v1 = vsub.f32 %v532_v37, %v5042_v45  ;;  %v834_v61 = vsub.f32 %v532_v37, %v5046_v47  ;;  %v835_v58 = vsub.f32 %v532_v37, %v5050_v54 }
 0x151   :  { %v836_v28 = vsub.f32 %v532_v37, %v5054_v55  ;;  %v4102_v43 = vsel %vm6344_vm12, 1.0, %v10716_v0  ;;  %v4103_v32 = vsel %vm6348_vm13, 1.0, %v10716_v0  ;;  %v4104_v53 = vsel %vm6352_vm14, 1.0, %v10716_v0 }
 0x152   :  { %v4105_v46 = vsel %vm6356_vm15, 1.0, %v10716_v0  ;;  %v3364_v2 = vadd.f32 %v4102_v43, %v3363_v19  ;;  %v3433_v20 = vadd.f32 %v4103_v32, %v3432_v23  ;;  %v3502_v37 = vadd.f32 %v4104_v53, %v3501_v41 }
 0x153   :  { %v3571_v59 = vadd.f32 %v4105_v46, %v3570_v49  ;;  %v829_v33 = vsub.f32 %v527_v56, %v5042_v45  ;;  %v830_v52 = vsub.f32 %v527_v56, %v5046_v47  ;;  %v831_v39 = vsub.f32 %v527_v56, %v5050_v54 }
 0x154   :  { %v832_v31 = vsub.f32 %v527_v56, %v5054_v55  ;;  %vm6408_vm3 = vcmp.lt.f32.partialorder %v833_v1, 0.0  ;;  %v11029_v51 = vmov 0  ;;  %vm6412_vm2 = vcmp.lt.f32.partialorder %v834_v61, 0.0 }
 0x155   :  { %v11030_v51 = vsel %vm6408_vm3, 4294967295, %v11029_v51  ;;  %v11032_v60 = vmov 0  ;;  %vm6416_vm1 = vcmp.lt.f32.partialorder %v835_v58, 0.0  ;;  %v11035_v43 = vmov 0 }
 0x156   :  { %11031 = vst [vmem:[#allocation117_spill] sm:$0xff] %v11030_v51  ;;  %v11033_v60 = vsel %vm6412_vm2, 4294967295, %v11032_v60  ;;  %v11036_v43 = vsel %vm6416_vm1, 4294967295, %v11035_v43  ;;  %vm6420_vm0 = vcmp.lt.f32.partialorder %v836_v28, 0.0  ;;  %v11038_v19 = vmov 0  ;;  %v542_v28 = vpop.permute.xlu1 %541 }
 0x157   :  { %11034 = vst [vmem:[#allocation118_spill] sm:$0xff] %v11033_v60  ;;  %11037 = vst [vmem:[#allocation119_spill] sm:$0xff] %v11036_v43  ;;  %v11039_v19 = vsel %vm6420_vm0, 4294967295, %v11038_v19  ;;  %vm6424_vm15 = vcmp.lt.f32.partialorder %v829_v33, 0.0  ;;  %v11041_v23 = vmov 0  ;;  %vm6428_vm14 = vcmp.lt.f32.partialorder %v830_v52, 0.0 }
 0x158   :  { %11040 = vst [vmem:[#allocation120_spill] sm:$0xff] %v11039_v19  ;;  %v11042_v23 = vsel %vm6424_vm15, 4294967295, %v11041_v23  ;;  %v11044_v56 = vmov 0  ;;  %vm6432_vm13 = vcmp.lt.f32.partialorder %v831_v39, 0.0  ;;  %v11047_v41 = vmov 0 }
 0x159   :  { %11043 = vst [vmem:[#allocation121_spill] sm:$0xff] %v11042_v23  ;;  %v11045_v56 = vsel %vm6428_vm14, 4294967295, %v11044_v56  ;;  %v11048_v41 = vsel %vm6432_vm13, 4294967295, %v11047_v41  ;;  %vm6436_vm12 = vcmp.lt.f32.partialorder %v832_v31, 0.0  ;;  %v11050_v58 = vmov 0 }
 0x15a   :  { %11046 = vst [vmem:[#allocation122_spill] sm:$0xff] %v11045_v56  ;;  %11049 = vst [vmem:[#allocation123_spill] sm:$0xff] %v11048_v41  ;;  %v11051_v58 = vsel %vm6436_vm12, 4294967295, %v11050_v58  ;;  %v4106_v49 = vsel %vm6424_vm15, 1.0, %v10716_v0  ;;  %v4107_v1 = vsel %vm6428_vm14, 1.0, %v10716_v0  ;;  %v4108_v39 = vsel %vm6432_vm13, 1.0, %v10716_v0  ;;  %v537_v41 = vpop.permute.xlu0 %536  ;;  %v552_v43 = vpop.permute.xlu1 %551 }
 0x15b   :  { %11052 = vst [vmem:[#allocation124_spill] sm:$0xff] %v11051_v58  ;;  %v4109_v31 = vsel %vm6436_vm12, 1.0, %v10716_v0  ;;  %v3365_v61 = vadd.f32 %v4106_v49, %v3364_v2  ;;  %v3434_v32 = vadd.f32 %v4107_v1, %v3433_v20  ;;  %v3503_v53 = vadd.f32 %v4108_v39, %v3502_v37 }
 0x15c   :  { %v3572_v46 = vadd.f32 %v4109_v31, %v3571_v59  ;;  %v4110_v33 = vsel %vm6408_vm3, 1.0, %v10716_v0  ;;  %v841_v52 = vsub.f32 %v542_v28, %v5042_v45  ;;  %v842_v56 = vsub.f32 %v542_v28, %v5046_v47 }
 0x15d   :  { %v843_v23 = vsub.f32 %v542_v28, %v5050_v54  ;;  %v4111_v58 = vsel %vm6412_vm2, 1.0, %v10716_v0  ;;  %v4112_v2 = vsel %vm6416_vm1, 1.0, %v10716_v0  ;;  %v4113_v20 = vsel %vm6420_vm0, 1.0, %v10716_v0 }
 0x15e   :  { %v844_v37 = vsub.f32 %v542_v28, %v5054_v55  ;;  %v3366_v59 = vadd.f32 %v4110_v33, %v3365_v61  ;;  %v3435_v49 = vadd.f32 %v4111_v58, %v3434_v32  ;;  %v3504_v1 = vadd.f32 %v4112_v2, %v3503_v53 }
 0x15f   :  { %v3573_v39 = vadd.f32 %v4113_v20, %v3572_v46  ;;  %v837_v31 = vsub.f32 %v537_v41, %v5042_v45  ;;  %v838_v51 = vsub.f32 %v537_v41, %v5046_v47  ;;  %v839_v60 = vsub.f32 %v537_v41, %v5050_v54 }
 0x160   :  { %v840_v63 = vsub.f32 %v537_v41, %v5054_v55  ;;  %vm6472_vm12 = vcmp.lt.f32.partialorder %v841_v52, 0.0  ;;  %v11053_v50 = vmov 0  ;;  %vm6476_vm13 = vcmp.lt.f32.partialorder %v842_v56, 0.0 }
 0x161   :  { %v11054_v50 = vsel %vm6472_vm12, 4294967295, %v11053_v50  ;;  %v11056_v19 = vmov 0  ;;  %vm6480_vm14 = vcmp.lt.f32.partialorder %v843_v23, 0.0  ;;  %v11059_v58 = vmov 0 }
 0x162   :  { %11055 = vst [vmem:[#allocation125_spill] sm:$0xff] %v11054_v50  ;;  %v11057_v19 = vsel %vm6476_vm13, 4294967295, %v11056_v19  ;;  %v11060_v58 = vsel %vm6480_vm14, 4294967295, %v11059_v58  ;;  %vm6484_vm15 = vcmp.lt.f32.partialorder %v837_v31, 0.0  ;;  %v11062_v28 = vmov 0  ;;  %v547_v31 = vpop.permute.xlu0 %546 }
 0x163   :  { %11058 = vst [vmem:[#allocation126_spill] sm:$0xff] %v11057_v19  ;;  %11061 = vst [vmem:[#allocation127_spill] sm:$0xff] %v11060_v58  ;;  %v11063_v28 = vsel %vm6484_vm15, 4294967295, %v11062_v28  ;;  %vm6488_vm0 = vcmp.lt.f32.partialorder %v838_v51, 0.0  ;;  %v11065_v61 = vmov 0  ;;  %vm6492_vm1 = vcmp.lt.f32.partialorder %v839_v60, 0.0 }
 0x164   :  { %11064 = vst [vmem:[#allocation128_spill] sm:$0xff] %v11063_v28  ;;  %v11066_v61 = vsel %vm6488_vm0, 4294967295, %v11065_v61  ;;  %v11068_v41 = vmov 0  ;;  %vm6496_vm2 = vcmp.lt.f32.partialorder %v840_v63, 0.0  ;;  %v11071_v56 = vmov 0 }
 0x165   :  { %11067 = vst [vmem:[#allocation129_spill] sm:$0xff] %v11066_v61  ;;  %v11069_v41 = vsel %vm6492_vm1, 4294967295, %v11068_v41  ;;  %v11072_v56 = vsel %vm6496_vm2, 4294967295, %v11071_v56  ;;  %vm6500_vm3 = vcmp.lt.f32.partialorder %v844_v37, 0.0  ;;  %v11074_v23 = vmov 0 }
 0x166   :  { %11070 = vst [vmem:[#allocation130_spill] sm:$0xff] %v11069_v41  ;;  %11073 = vst [vmem:[#allocation131_spill] sm:$0xff] %v11072_v56  ;;  %v11075_v23 = vsel %vm6500_vm3, 4294967295, %v11074_v23  ;;  %v849_v32 = vsub.f32 %v552_v43, %v5042_v45  ;;  %v850_v53 = vsub.f32 %v552_v43, %v5046_v47  ;;  %v851_v51 = vsub.f32 %v552_v43, %v5050_v54 }
 0x167   :  { %11076 = vst [vmem:[#allocation132_spill] sm:$0xff] %v11075_v23  ;;  %v4114_v60 = vsel %vm6484_vm15, 1.0, %v10716_v0  ;;  %v4115_v63 = vsel %vm6488_vm0, 1.0, %v10716_v0  ;;  %v4116_v46 = vsel %vm6492_vm1, 1.0, %v10716_v0  ;;  %v4117_v33 = vsel %vm6496_vm2, 1.0, %v10716_v0 }
 0x168   :  { %v3367_v52 = vadd.f32 %v4114_v60, %v3366_v59  ;;  %v3436_v2 = vadd.f32 %v4115_v63, %v3435_v49  ;;  %v3505_v20 = vadd.f32 %v4116_v46, %v3504_v1  ;;  %v3574_v37 = vadd.f32 %v4117_v33, %v3573_v39 }
 0x169   :  { %v4118_v28 = vsel %vm6472_vm12, 1.0, %v10716_v0  ;;  %v4119_v61 = vsel %vm6476_vm13, 1.0, %v10716_v0  ;;  %v4120_v41 = vsel %vm6480_vm14, 1.0, %v10716_v0  ;;  %v4121_v59 = vsel %vm6500_vm3, 1.0, %v10716_v0 }
 0x16a   :  { %v852_v49 = vsub.f32 %v552_v43, %v5054_v55  ;;  %vm6532_vm2 = vcmp.lt.f32.partialorder %v849_v32, 0.0  ;;  %v11077_v1 = vmov 0  ;;  %vm6536_vm1 = vcmp.lt.f32.partialorder %v850_v53, 0.0  ;;  %v562_v32 = vpop.permute.xlu1 %561 }
 0x16b   :  { %v11078_v1 = vsel %vm6532_vm2, 4294967295, %v11077_v1  ;;  %v11080_v39 = vmov 0  ;;  %vm6540_vm0 = vcmp.lt.f32.partialorder %v851_v51, 0.0  ;;  %v11083_v60 = vmov 0 }
 0x16c   :  { %11079 = vst [vmem:[#allocation133_spill] sm:$0xff] %v11078_v1  ;;  %v11081_v39 = vsel %vm6536_vm1, 4294967295, %v11080_v39  ;;  %v11084_v60 = vsel %vm6540_vm0, 4294967295, %v11083_v60  ;;  %v845_v63 = vsub.f32 %v547_v31, %v5042_v45  ;;  %v846_v46 = vsub.f32 %v547_v31, %v5046_v47 }
 0x16d   :  { %11082 = vst [vmem:[#allocation134_spill] sm:$0xff] %v11081_v39  ;;  %11085 = vst [vmem:[#allocation135_spill] sm:$0xff] %v11084_v60  ;;  %v847_v33 = vsub.f32 %v547_v31, %v5050_v54  ;;  %v848_v43 = vsub.f32 %v547_v31, %v5054_v55  ;;  %v3368_v56 = vadd.f32 %v4118_v28, %v3367_v52  ;;  %v11086_v19 = vmov 0 }
 0x16e   :  { %v3437_v23 = vadd.f32 %v4119_v61, %v3436_v2  ;;  %v3506_v58 = vadd.f32 %v4120_v41, %v3505_v20  ;;  %v3575_v53 = vadd.f32 %v4121_v59, %v3574_v37  ;;  %vm6548_vm15 = vcmp.lt.f32.partialorder %v845_v63, 0.0 }
 0x16f   :  { %v11087_v19 = vsel %vm6548_vm15, 4294967295, %v11086_v19  ;;  %vm6552_vm3 = vcmp.lt.f32.partialorder %v846_v46, 0.0  ;;  %v11089_v51 = vmov 0  ;;  %vm6556_vm14 = vcmp.lt.f32.partialorder %v847_v33, 0.0  ;;  %v557_v33 = vpop.permute.xlu0 %556 }
 0x170   :  { %11088 = vst [vmem:[#allocation136_spill] sm:$0xff] %v11087_v19  ;;  %v11090_v51 = vsel %vm6552_vm3, 4294967295, %v11089_v51  ;;  %v11092_v50 = vmov 0  ;;  %vm6560_vm13 = vcmp.lt.f32.partialorder %v848_v43, 0.0  ;;  %v11095_v48 = vmov 0 }
 0x171   :  { %11091 = vst [vmem:[#allocation137_spill] sm:$0xff] %v11090_v51  ;;  %v11093_v50 = vsel %vm6556_vm14, 4294967295, %v11092_v50  ;;  %v11096_v48 = vsel %vm6560_vm13, 4294967295, %v11095_v48  ;;  %vm6564_vm12 = vcmp.lt.f32.partialorder %v852_v49, 0.0  ;;  %v11098_v28 = vmov 0 }
 0x172   :  { %11094 = vst [vmem:[#allocation138_spill] sm:$0xff] %v11093_v50  ;;  %11097 = vst [vmem:[#allocation139_spill] sm:$0xff] %v11096_v48  ;;  %v11099_v28 = vsel %vm6564_vm12, 4294967295, %v11098_v28  ;;  %v857_v61 = vsub.f32 %v562_v32, %v5042_v45  ;;  %v858_v41 = vsub.f32 %v562_v32, %v5046_v47  ;;  %v859_v52 = vsub.f32 %v562_v32, %v5050_v54 }
 0x173   :  { %11100 = vst [vmem:[#allocation140_spill] sm:$0xff] %v11099_v28  ;;  %v4122_v2 = vsel %vm6548_vm15, 1.0, %v10716_v0  ;;  %v4123_v20 = vsel %vm6552_vm3, 1.0, %v10716_v0  ;;  %v4124_v37 = vsel %vm6556_vm14, 1.0, %v10716_v0  ;;  %v4125_v31 = vsel %vm6560_vm13, 1.0, %v10716_v0 }
 0x174   :  { %v3369_v59 = vadd.f32 %v4122_v2, %v3368_v56  ;;  %v3438_v49 = vadd.f32 %v4123_v20, %v3437_v23  ;;  %v3507_v63 = vadd.f32 %v4124_v37, %v3506_v58  ;;  %v3576_v46 = vadd.f32 %v4125_v31, %v3575_v53 }
 0x175   :  { %v4126_v43 = vsel %vm6532_vm2, 1.0, %v10716_v0  ;;  %v4127_v51 = vsel %vm6536_vm1, 1.0, %v10716_v0  ;;  %v4128_v50 = vsel %vm6540_vm0, 1.0, %v10716_v0  ;;  %v4129_v56 = vsel %vm6564_vm12, 1.0, %v10716_v0 }
 0x176   :  { %v860_v58 = vsub.f32 %v562_v32, %v5054_v55  ;;  %vm6596_vm13 = vcmp.lt.f32.partialorder %v857_v61, 0.0  ;;  %v11101_v23 = vmov 0  ;;  %vm6600_vm14 = vcmp.lt.f32.partialorder %v858_v41, 0.0  ;;  %v572_v61 = vpop.permute.xlu1 %571 }
 0x177   :  { %v11102_v23 = vsel %vm6596_vm13, 4294967295, %v11101_v23  ;;  %v11104_v53 = vmov 0  ;;  %vm6604_vm3 = vcmp.lt.f32.partialorder %v859_v52, 0.0  ;;  %v11107_v2 = vmov 0 }
 0x178   :  { %11103 = vst [vmem:[#allocation141_spill] sm:$0xff] %v11102_v23  ;;  %v11105_v53 = vsel %vm6600_vm14, 4294967295, %v11104_v53  ;;  %v11108_v2 = vsel %vm6604_vm3, 4294967295, %v11107_v2  ;;  %v853_v20 = vsub.f32 %v557_v33, %v5042_v45  ;;  %v854_v37 = vsub.f32 %v557_v33, %v5046_v47 }
 0x179   :  { %11106 = vst [vmem:[#allocation142_spill] sm:$0xff] %v11105_v53  ;;  %11109 = vst [vmem:[#allocation143_spill] sm:$0xff] %v11108_v2  ;;  %v855_v31 = vsub.f32 %v557_v33, %v5050_v54  ;;  %v856_v32 = vsub.f32 %v557_v33, %v5054_v55  ;;  %v3370_v48 = vadd.f32 %v4126_v43, %v3369_v59  ;;  %v11110_v60 = vmov 0 }
 0x17a   :  { %v3439_v19 = vadd.f32 %v4127_v51, %v3438_v49  ;;  %v3508_v28 = vadd.f32 %v4128_v50, %v3507_v63  ;;  %v3577_v41 = vadd.f32 %v4129_v56, %v3576_v46  ;;  %vm6612_vm15 = vcmp.lt.f32.partialorder %v853_v20, 0.0 }
 0x17b   :  { %v11111_v60 = vsel %vm6612_vm15, 4294967295, %v11110_v60  ;;  %vm6616_vm12 = vcmp.lt.f32.partialorder %v854_v37, 0.0  ;;  %v11113_v52 = vmov 0  ;;  %vm6620_vm0 = vcmp.lt.f32.partialorder %v855_v31, 0.0  ;;  %v567_v31 = vpop.permute.xlu0 %566 }
 0x17c   :  { %11112 = vst [vmem:[#allocation144_spill] sm:$0xff] %v11111_v60  ;;  %v11114_v52 = vsel %vm6616_vm12, 4294967295, %v11113_v52  ;;  %v11116_v39 = vmov 0  ;;  %vm6624_vm1 = vcmp.lt.f32.partialorder %v856_v32, 0.0  ;;  %v11119_v1 = vmov 0 }
 0x17d   :  { %11115 = vst [vmem:[#allocation145_spill] sm:$0xff] %v11114_v52  ;;  %v11117_v39 = vsel %vm6620_vm0, 4294967295, %v11116_v39  ;;  %v11120_v1 = vsel %vm6624_vm1, 4294967295, %v11119_v1  ;;  %vm6628_vm2 = vcmp.lt.f32.partialorder %v860_v58, 0.0  ;;  %v11122_v51 = vmov 0 }
 0x17e   :  { %11118 = vst [vmem:[#allocation146_spill] sm:$0xff] %v11117_v39  ;;  %11121 = vst [vmem:[#allocation147_spill] sm:$0xff] %v11120_v1  ;;  %v11123_v51 = vsel %vm6628_vm2, 4294967295, %v11122_v51  ;;  %v865_v50 = vsub.f32 %v572_v61, %v5042_v45  ;;  %v866_v59 = vsub.f32 %v572_v61, %v5046_v47  ;;  %v867_v49 = vsub.f32 %v572_v61, %v5050_v54 }
 0x17f   :  { %11124 = vst [vmem:[#allocation148_spill] sm:$0xff] %v11123_v51  ;;  %v4130_v63 = vsel %vm6612_vm15, 1.0, %v10716_v0  ;;  %v4131_v46 = vsel %vm6616_vm12, 1.0, %v10716_v0  ;;  %v4132_v33 = vsel %vm6620_vm0, 1.0, %v10716_v0  ;;  %v4133_v43 = vsel %vm6624_vm1, 1.0, %v10716_v0 }
 0x180   :  { %v3371_v56 = vadd.f32 %v4130_v63, %v3370_v48  ;;  %v3440_v58 = vadd.f32 %v4131_v46, %v3439_v19  ;;  %v3509_v20 = vadd.f32 %v4132_v33, %v3508_v28  ;;  %v3578_v37 = vadd.f32 %v4133_v43, %v3577_v41 }
 0x181   :  { %v4134_v32 = vsel %vm6596_vm13, 1.0, %v10716_v0  ;;  %v4135_v52 = vsel %vm6600_vm14, 1.0, %v10716_v0  ;;  %v4136_v39 = vsel %vm6604_vm3, 1.0, %v10716_v0  ;;  %v4137_v48 = vsel %vm6628_vm2, 1.0, %v10716_v0 }
 0x182   :  { %v868_v19 = vsub.f32 %v572_v61, %v5054_v55  ;;  %vm6660_vm1 = vcmp.lt.f32.partialorder %v865_v50, 0.0  ;;  %v11125_v28 = vmov 0  ;;  %vm6664_vm0 = vcmp.lt.f32.partialorder %v866_v59, 0.0  ;;  %v582_v50 = vpop.permute.xlu1 %581 }
 0x183   :  { %v11126_v28 = vsel %vm6660_vm1, 4294967295, %v11125_v28  ;;  %v11128_v41 = vmov 0  ;;  %vm6668_vm12 = vcmp.lt.f32.partialorder %v867_v49, 0.0  ;;  %v11131_v63 = vmov 0 }
 0x184   :  { %11127 = vst [vmem:[#allocation149_spill] sm:$0xff] %v11126_v28  ;;  %v11129_v41 = vsel %vm6664_vm0, 4294967295, %v11128_v41  ;;  %v11132_v63 = vsel %vm6668_vm12, 4294967295, %v11131_v63  ;;  %v861_v46 = vsub.f32 %v567_v31, %v5042_v45  ;;  %v862_v33 = vsub.f32 %v567_v31, %v5046_v47 }
 0x185   :  { %11130 = vst [vmem:[#allocation150_spill] sm:$0xff] %v11129_v41  ;;  %11133 = vst [vmem:[#allocation151_spill] sm:$0xff] %v11132_v63  ;;  %v863_v43 = vsub.f32 %v567_v31, %v5050_v54  ;;  %v864_v61 = vsub.f32 %v567_v31, %v5054_v55  ;;  %v3372_v1 = vadd.f32 %v4134_v32, %v3371_v56  ;;  %v11134_v2 = vmov 0 }
 0x186   :  { %v3441_v60 = vadd.f32 %v4135_v52, %v3440_v58  ;;  %v3510_v51 = vadd.f32 %v4136_v39, %v3509_v20  ;;  %v3579_v59 = vadd.f32 %v4137_v48, %v3578_v37  ;;  %vm6676_vm15 = vcmp.lt.f32.partialorder %v861_v46, 0.0 }
 0x187   :  { %v11135_v2 = vsel %vm6676_vm15, 4294967295, %v11134_v2  ;;  %vm6680_vm2 = vcmp.lt.f32.partialorder %v862_v33, 0.0  ;;  %v11137_v49 = vmov 0  ;;  %vm6684_vm3 = vcmp.lt.f32.partialorder %v863_v43, 0.0  ;;  %v577_v43 = vpop.permute.xlu0 %576 }
 0x188   :  { %11136 = vst [vmem:[#allocation152_spill] sm:$0xff] %v11135_v2  ;;  %v11138_v49 = vsel %vm6680_vm2, 4294967295, %v11137_v49  ;;  %v11140_v53 = vmov 0  ;;  %vm6688_vm14 = vcmp.lt.f32.partialorder %v864_v61, 0.0  ;;  %v11143_v23 = vmov 0 }
 0x189   :  { %11139 = vst [vmem:[#allocation153_spill] sm:$0xff] %v11138_v49  ;;  %v11141_v53 = vsel %vm6684_vm3, 4294967295, %v11140_v53  ;;  %v11144_v23 = vsel %vm6688_vm14, 4294967295, %v11143_v23  ;;  %vm6692_vm13 = vcmp.lt.f32.partialorder %v868_v19, 0.0  ;;  %v11146_v52 = vmov 0 }
 0x18a   :  { %11142 = vst [vmem:[#allocation154_spill] sm:$0xff] %v11141_v53  ;;  %11145 = vst [vmem:[#allocation155_spill] sm:$0xff] %v11144_v23  ;;  %v11147_v52 = vsel %vm6692_vm13, 4294967295, %v11146_v52  ;;  %v873_v39 = vsub.f32 %v582_v50, %v5042_v45  ;;  %v874_v56 = vsub.f32 %v582_v50, %v5046_v47  ;;  %v875_v58 = vsub.f32 %v582_v50, %v5050_v54 }
 0x18b   :  { %11148 = vst [vmem:[#allocation156_spill] sm:$0xff] %v11147_v52  ;;  %v4138_v20 = vsel %vm6676_vm15, 1.0, %v10716_v0  ;;  %v4139_v37 = vsel %vm6680_vm2, 1.0, %v10716_v0  ;;  %v4140_v31 = vsel %vm6684_vm3, 1.0, %v10716_v0  ;;  %v4141_v32 = vsel %vm6688_vm14, 1.0, %v10716_v0 }
 0x18c   :  { %v3373_v48 = vadd.f32 %v4138_v20, %v3372_v1  ;;  %v3442_v19 = vadd.f32 %v4139_v37, %v3441_v60  ;;  %v3511_v46 = vadd.f32 %v4140_v31, %v3510_v51  ;;  %v3580_v33 = vadd.f32 %v4141_v32, %v3579_v59 }
 0x18d   :  { %v4142_v61 = vsel %vm6660_vm1, 1.0, %v10716_v0  ;;  %v4143_v49 = vsel %vm6664_vm0, 1.0, %v10716_v0  ;;  %v4144_v53 = vsel %vm6668_vm12, 1.0, %v10716_v0  ;;  %v4145_v1 = vsel %vm6692_vm13, 1.0, %v10716_v0 }
 0x18e   :  { %v876_v60 = vsub.f32 %v582_v50, %v5054_v55  ;;  %vm6724_vm14 = vcmp.lt.f32.partialorder %v873_v39, 0.0  ;;  %v11149_v51 = vmov 0  ;;  %vm6728_vm3 = vcmp.lt.f32.partialorder %v874_v56, 0.0  ;;  %v592_v39 = vpop.permute.xlu1 %591 }
 0x18f   :  { %v11150_v51 = vsel %vm6724_vm14, 4294967295, %v11149_v51  ;;  %v11152_v59 = vmov 0  ;;  %vm6732_vm2 = vcmp.lt.f32.partialorder %v875_v58, 0.0  ;;  %v11155_v20 = vmov 0 }
 0x190   :  { %11151 = vst [vmem:[#allocation157_spill] sm:$0xff] %v11150_v51  ;;  %v11153_v59 = vsel %vm6728_vm3, 4294967295, %v11152_v59  ;;  %v11156_v20 = vsel %vm6732_vm2, 4294967295, %v11155_v20  ;;  %v869_v37 = vsub.f32 %v577_v43, %v5042_v45  ;;  %v870_v31 = vsub.f32 %v577_v43, %v5046_v47 }
 0x191   :  { %11154 = vst [vmem:[#allocation158_spill] sm:$0xff] %v11153_v59  ;;  %11157 = vst [vmem:[#allocation159_spill] sm:$0xff] %v11156_v20  ;;  %v871_v32 = vsub.f32 %v577_v43, %v5050_v54  ;;  %v872_v50 = vsub.f32 %v577_v43, %v5054_v55  ;;  %v3374_v23 = vadd.f32 %v4142_v61, %v3373_v48  ;;  %v11158_v63 = vmov 0 }
 0x192   :  { %v3443_v2 = vadd.f32 %v4143_v49, %v3442_v19  ;;  %v3512_v52 = vadd.f32 %v4144_v53, %v3511_v46  ;;  %v3581_v56 = vadd.f32 %v4145_v1, %v3580_v33  ;;  %vm6740_vm15 = vcmp.lt.f32.partialorder %v869_v37, 0.0 }
 0x193   :  { %v11159_v63 = vsel %vm6740_vm15, 4294967295, %v11158_v63  ;;  %vm6744_vm13 = vcmp.lt.f32.partialorder %v870_v31, 0.0  ;;  %v11161_v58 = vmov 0  ;;  %vm6748_vm12 = vcmp.lt.f32.partialorder %v871_v32, 0.0  ;;  %v587_v32 = vpop.permute.xlu0 %586 }
 0x194   :  { %11160 = vst [vmem:[#allocation160_spill] sm:$0xff] %v11159_v63  ;;  %v11162_v58 = vsel %vm6744_vm13, 4294967295, %v11161_v58  ;;  %v11164_v41 = vmov 0  ;;  %vm6752_vm0 = vcmp.lt.f32.partialorder %v872_v50, 0.0  ;;  %v11167_v28 = vmov 0 }
 0x195   :  { %11163 = vst [vmem:[#allocation161_spill] sm:$0xff] %v11162_v58  ;;  %v11165_v41 = vsel %vm6748_vm12, 4294967295, %v11164_v41  ;;  %v11168_v28 = vsel %vm6752_vm0, 4294967295, %v11167_v28  ;;  %vm6756_vm1 = vcmp.lt.f32.partialorder %v876_v60, 0.0  ;;  %v11170_v49 = vmov 0 }
 0x196   :  { %11166 = vst [vmem:[#allocation162_spill] sm:$0xff] %v11165_v41  ;;  %11169 = vst [vmem:[#allocation163_spill] sm:$0xff] %v11168_v28  ;;  %v11171_v49 = vsel %vm6756_vm1, 4294967295, %v11170_v49  ;;  %v881_v53 = vsub.f32 %v592_v39, %v5042_v45  ;;  %v882_v48 = vsub.f32 %v592_v39, %v5046_v47  ;;  %v883_v19 = vsub.f32 %v592_v39, %v5050_v54 }
 0x197   :  { %11172 = vst [vmem:[#allocation164_spill] sm:$0xff] %v11171_v49  ;;  %v4146_v46 = vsel %vm6740_vm15, 1.0, %v10716_v0  ;;  %v4147_v33 = vsel %vm6744_vm13, 1.0, %v10716_v0  ;;  %v4148_v43 = vsel %vm6748_vm12, 1.0, %v10716_v0  ;;  %v4149_v61 = vsel %vm6752_vm0, 1.0, %v10716_v0 }
 0x198   :  { %v3375_v1 = vadd.f32 %v4146_v46, %v3374_v23  ;;  %v3444_v60 = vadd.f32 %v4147_v33, %v3443_v2  ;;  %v3513_v37 = vadd.f32 %v4148_v43, %v3512_v52  ;;  %v3582_v31 = vadd.f32 %v4149_v61, %v3581_v56 }
 0x199   :  { %v4150_v50 = vsel %vm6724_vm14, 1.0, %v10716_v0  ;;  %v4151_v58 = vsel %vm6728_vm3, 1.0, %v10716_v0  ;;  %v4152_v41 = vsel %vm6732_vm2, 1.0, %v10716_v0  ;;  %v4153_v23 = vsel %vm6756_vm1, 1.0, %v10716_v0 }
 0x19a   :  { %v884_v2 = vsub.f32 %v592_v39, %v5054_v55  ;;  %vm6788_vm0 = vcmp.lt.f32.partialorder %v881_v53, 0.0  ;;  %v11173_v52 = vmov 0  ;;  %vm6792_vm12 = vcmp.lt.f32.partialorder %v882_v48, 0.0  ;;  %v602_v53 = vpop.permute.xlu1 %601 }
 0x19b   :  { %v11174_v52 = vsel %vm6788_vm0, 4294967295, %v11173_v52  ;;  %v11176_v56 = vmov 0  ;;  %vm6796_vm13 = vcmp.lt.f32.partialorder %v883_v19, 0.0  ;;  %v11179_v46 = vmov 0 }
 0x19c   :  { %11175 = vst [vmem:[#allocation165_spill] sm:$0xff] %v11174_v52  ;;  %v11177_v56 = vsel %vm6792_vm12, 4294967295, %v11176_v56  ;;  %v11180_v46 = vsel %vm6796_vm13, 4294967295, %v11179_v46  ;;  %v877_v33 = vsub.f32 %v587_v32, %v5042_v45  ;;  %v878_v43 = vsub.f32 %v587_v32, %v5046_v47 }
 0x19d   :  { %11178 = vst [vmem:[#allocation166_spill] sm:$0xff] %v11177_v56  ;;  %11181 = vst [vmem:[#allocation167_spill] sm:$0xff] %v11180_v46  ;;  %v879_v61 = vsub.f32 %v587_v32, %v5050_v54  ;;  %v880_v39 = vsub.f32 %v587_v32, %v5054_v55  ;;  %v3376_v28 = vadd.f32 %v4150_v50, %v3375_v1  ;;  %v11182_v20 = vmov 0 }
 0x19e   :  { %v3445_v63 = vadd.f32 %v4151_v58, %v3444_v60  ;;  %v3514_v49 = vadd.f32 %v4152_v41, %v3513_v37  ;;  %v3583_v48 = vadd.f32 %v4153_v23, %v3582_v31  ;;  %vm6804_vm15 = vcmp.lt.f32.partialorder %v877_v33, 0.0 }
 0x19f   :  { %v11183_v20 = vsel %vm6804_vm15, 4294967295, %v11182_v20  ;;  %vm6808_vm1 = vcmp.lt.f32.partialorder %v878_v43, 0.0  ;;  %v11185_v19 = vmov 0  ;;  %vm6812_vm2 = vcmp.lt.f32.partialorder %v879_v61, 0.0  ;;  %v597_v61 = vpop.permute.xlu0 %596 }
 0x1a0   :  { %11184 = vst [vmem:[#allocation168_spill] sm:$0xff] %v11183_v20  ;;  %v11186_v19 = vsel %vm6808_vm1, 4294967295, %v11185_v19  ;;  %v11188_v59 = vmov 0  ;;  %vm6816_vm3 = vcmp.lt.f32.partialorder %v880_v39, 0.0  ;;  %v11191_v51 = vmov 0 }
 0x1a1   :  { %11187 = vst [vmem:[#allocation169_spill] sm:$0xff] %v11186_v19  ;;  %v11189_v59 = vsel %vm6812_vm2, 4294967295, %v11188_v59  ;;  %v11192_v51 = vsel %vm6816_vm3, 4294967295, %v11191_v51  ;;  %vm6820_vm14 = vcmp.lt.f32.partialorder %v884_v2, 0.0  ;;  %v11194_v58 = vmov 0 }
 0x1a2   :  { %11190 = vst [vmem:[#allocation170_spill] sm:$0xff] %v11189_v59  ;;  %11193 = vst [vmem:[#allocation171_spill] sm:$0xff] %v11192_v51  ;;  %v11195_v58 = vsel %vm6820_vm14, 4294967295, %v11194_v58  ;;  %v889_v41 = vsub.f32 %v602_v53, %v5042_v45  ;;  %v890_v1 = vsub.f32 %v602_v53, %v5046_v47  ;;  %v891_v60 = vsub.f32 %v602_v53, %v5050_v54 }
 0x1a3   :  { %11196 = vst [vmem:[#allocation172_spill] sm:$0xff] %v11195_v58  ;;  %v4154_v37 = vsel %vm6804_vm15, 1.0, %v10716_v0  ;;  %v4155_v31 = vsel %vm6808_vm1, 1.0, %v10716_v0  ;;  %v4156_v32 = vsel %vm6812_vm2, 1.0, %v10716_v0  ;;  %v4157_v50 = vsel %vm6816_vm3, 1.0, %v10716_v0 }
 0x1a4   :  { %v3377_v23 = vadd.f32 %v4154_v37, %v3376_v28  ;;  %v3446_v2 = vadd.f32 %v4155_v31, %v3445_v63  ;;  %v3515_v33 = vadd.f32 %v4156_v32, %v3514_v49  ;;  %v3584_v43 = vadd.f32 %v4157_v50, %v3583_v48 }
 0x1a5   :  { %v4158_v39 = vsel %vm6788_vm0, 1.0, %v10716_v0  ;;  %v4159_v19 = vsel %vm6792_vm12, 1.0, %v10716_v0  ;;  %v4160_v59 = vsel %vm6796_vm13, 1.0, %v10716_v0  ;;  %v4161_v28 = vsel %vm6820_vm14, 1.0, %v10716_v0 }
 0x1a6   :  { %v892_v63 = vsub.f32 %v602_v53, %v5054_v55  ;;  %vm6852_vm3 = vcmp.lt.f32.partialorder %v889_v41, 0.0  ;;  %v11197_v49 = vmov 0  ;;  %vm6856_vm2 = vcmp.lt.f32.partialorder %v890_v1, 0.0  ;;  %v612_v41 = vpop.permute.xlu1 %611 }
 0x1a7   :  { %v11198_v49 = vsel %vm6852_vm3, 4294967295, %v11197_v49  ;;  %v11200_v48 = vmov 0  ;;  %vm6860_vm1 = vcmp.lt.f32.partialorder %v891_v60, 0.0  ;;  %v11203_v37 = vmov 0 }
 0x1a8   :  { %11199 = vst [vmem:[#allocation173_spill] sm:$0xff] %v11198_v49  ;;  %v11201_v48 = vsel %vm6856_vm2, 4294967295, %v11200_v48  ;;  %v11204_v37 = vsel %vm6860_vm1, 4294967295, %v11203_v37  ;;  %v885_v31 = vsub.f32 %v597_v61, %v5042_v45  ;;  %v886_v32 = vsub.f32 %v597_v61, %v5046_v47 }
 0x1a9   :  { %11202 = vst [vmem:[#allocation174_spill] sm:$0xff] %v11201_v48  ;;  %11205 = vst [vmem:[#allocation175_spill] sm:$0xff] %v11204_v37  ;;  %v887_v50 = vsub.f32 %v597_v61, %v5050_v54  ;;  %v888_v53 = vsub.f32 %v597_v61, %v5054_v55  ;;  %v3378_v51 = vadd.f32 %v4158_v39, %v3377_v23  ;;  %v11206_v46 = vmov 0 }
 0x1aa   :  { %v3447_v20 = vadd.f32 %v4159_v19, %v3446_v2  ;;  %v3516_v58 = vadd.f32 %v4160_v59, %v3515_v33  ;;  %v3585_v1 = vadd.f32 %v4161_v28, %v3584_v43  ;;  %vm6868_vm15 = vcmp.lt.f32.partialorder %v885_v31, 0.0 }
 0x1ab   :  { %v11207_v46 = vsel %vm6868_vm15, 4294967295, %v11206_v46  ;;  %vm6872_vm14 = vcmp.lt.f32.partialorder %v886_v32, 0.0  ;;  %v11209_v60 = vmov 0  ;;  %vm6876_vm13 = vcmp.lt.f32.partialorder %v887_v50, 0.0  ;;  %v607_v50 = vpop.permute.xlu0 %606 }
 0x1ac   :  { %11208 = vst [vmem:[#allocation176_spill] sm:$0xff] %v11207_v46  ;;  %v11210_v60 = vsel %vm6872_vm14, 4294967295, %v11209_v60  ;;  %v11212_v56 = vmov 0  ;;  %vm6880_vm12 = vcmp.lt.f32.partialorder %v888_v53, 0.0  ;;  %v11215_v52 = vmov 0 }
 0x1ad   :  { %11211 = vst [vmem:[#allocation177_spill] sm:$0xff] %v11210_v60  ;;  %v11213_v56 = vsel %vm6876_vm13, 4294967295, %v11212_v56  ;;  %v11216_v52 = vsel %vm6880_vm12, 4294967295, %v11215_v52  ;;  %vm6884_vm0 = vcmp.lt.f32.partialorder %v892_v63, 0.0  ;;  %v11218_v19 = vmov 0 }
 0x1ae   :  { %11214 = vst [vmem:[#allocation178_spill] sm:$0xff] %v11213_v56  ;;  %11217 = vst [vmem:[#allocation179_spill] sm:$0xff] %v11216_v52  ;;  %v11219_v19 = vsel %vm6884_vm0, 4294967295, %v11218_v19  ;;  %v897_v59 = vsub.f32 %v612_v41, %v5042_v45  ;;  %v898_v23 = vsub.f32 %v612_v41, %v5046_v47  ;;  %v899_v2 = vsub.f32 %v612_v41, %v5050_v54 }
 0x1af   :  { %11220 = vst [vmem:[#allocation180_spill] sm:$0xff] %v11219_v19  ;;  %v4162_v33 = vsel %vm6868_vm15, 1.0, %v10716_v0  ;;  %v4163_v43 = vsel %vm6872_vm14, 1.0, %v10716_v0  ;;  %v4164_v61 = vsel %vm6876_vm13, 1.0, %v10716_v0  ;;  %v4165_v39 = vsel %vm6880_vm12, 1.0, %v10716_v0 }
 0x1b0   :  { %v3379_v28 = vadd.f32 %v4162_v33, %v3378_v51  ;;  %v3448_v63 = vadd.f32 %v4163_v43, %v3447_v20  ;;  %v3517_v31 = vadd.f32 %v4164_v61, %v3516_v58  ;;  %v3586_v32 = vadd.f32 %v4165_v39, %v3585_v1 }
 0x1b1   :  { %v4166_v53 = vsel %vm6852_vm3, 1.0, %v10716_v0  ;;  %v4167_v60 = vsel %vm6856_vm2, 1.0, %v10716_v0  ;;  %v4168_v56 = vsel %vm6860_vm1, 1.0, %v10716_v0  ;;  %v4169_v51 = vsel %vm6884_vm0, 1.0, %v10716_v0 }
 0x1b2   :  { %v900_v20 = vsub.f32 %v612_v41, %v5054_v55  ;;  %vm6916_vm12 = vcmp.lt.f32.partialorder %v897_v59, 0.0  ;;  %v11221_v58 = vmov 0  ;;  %vm6920_vm13 = vcmp.lt.f32.partialorder %v898_v23, 0.0  ;;  %v622_v59 = vpop.permute.xlu1 %621 }
 0x1b3   :  { %v11222_v58 = vsel %vm6916_vm12, 4294967295, %v11221_v58  ;;  %v11224_v1 = vmov 0  ;;  %vm6924_vm14 = vcmp.lt.f32.partialorder %v899_v2, 0.0  ;;  %v11227_v33 = vmov 0 }
 0x1b4   :  { %11223 = vst [vmem:[#allocation181_spill] sm:$0xff] %v11222_v58  ;;  %v11225_v1 = vsel %vm6920_vm13, 4294967295, %v11224_v1  ;;  %v11228_v33 = vsel %vm6924_vm14, 4294967295, %v11227_v33  ;;  %v893_v43 = vsub.f32 %v607_v50, %v5042_v45  ;;  %v894_v61 = vsub.f32 %v607_v50, %v5046_v47 }
 0x1b5   :  { %11226 = vst [vmem:[#allocation182_spill] sm:$0xff] %v11225_v1  ;;  %11229 = vst [vmem:[#allocation183_spill] sm:$0xff] %v11228_v33  ;;  %v895_v39 = vsub.f32 %v607_v50, %v5050_v54  ;;  %v896_v41 = vsub.f32 %v607_v50, %v5054_v55  ;;  %v3380_v52 = vadd.f32 %v4166_v53, %v3379_v28  ;;  %v11230_v37 = vmov 0 }
 0x1b6   :  { %v3449_v46 = vadd.f32 %v4167_v60, %v3448_v63  ;;  %v3518_v19 = vadd.f32 %v4168_v56, %v3517_v31  ;;  %v3587_v23 = vadd.f32 %v4169_v51, %v3586_v32  ;;  %vm6932_vm15 = vcmp.lt.f32.partialorder %v893_v43, 0.0 }
 0x1b7   :  { %v11231_v37 = vsel %vm6932_vm15, 4294967295, %v11230_v37  ;;  %vm6936_vm0 = vcmp.lt.f32.partialorder %v894_v61, 0.0  ;;  %v11233_v2 = vmov 0  ;;  %vm6940_vm1 = vcmp.lt.f32.partialorder %v895_v39, 0.0  ;;  %v617_v39 = vpop.permute.xlu0 %616 }
 0x1b8   :  { %11232 = vst [vmem:[#allocation184_spill] sm:$0xff] %v11231_v37  ;;  %v11234_v2 = vsel %vm6936_vm0, 4294967295, %v11233_v2  ;;  %v11236_v48 = vmov 0  ;;  %vm6944_vm2 = vcmp.lt.f32.partialorder %v896_v41, 0.0  ;;  %v11239_v49 = vmov 0 }
 0x1b9   :  { %11235 = vst [vmem:[#allocation185_spill] sm:$0xff] %v11234_v2  ;;  %v11237_v48 = vsel %vm6940_vm1, 4294967295, %v11236_v48  ;;  %v11240_v49 = vsel %vm6944_vm2, 4294967295, %v11239_v49  ;;  %vm6948_vm3 = vcmp.lt.f32.partialorder %v900_v20, 0.0  ;;  %v11242_v60 = vmov 0 }
 0x1ba   :  { %11238 = vst [vmem:[#allocation186_spill] sm:$0xff] %v11237_v48  ;;  %11241 = vst [vmem:[#allocation187_spill] sm:$0xff] %v11240_v49  ;;  %v11243_v60 = vsel %vm6948_vm3, 4294967295, %v11242_v60  ;;  %v905_v56 = vsub.f32 %v622_v59, %v5042_v45  ;;  %v906_v28 = vsub.f32 %v622_v59, %v5046_v47  ;;  %v907_v63 = vsub.f32 %v622_v59, %v5050_v54 }
 0x1bb   :  { %11244 = vst [vmem:[#allocation188_spill] sm:$0xff] %v11243_v60  ;;  %v4170_v31 = vsel %vm6932_vm15, 1.0, %v10716_v0  ;;  %v4171_v32 = vsel %vm6936_vm0, 1.0, %v10716_v0  ;;  %v4172_v50 = vsel %vm6940_vm1, 1.0, %v10716_v0  ;;  %v4173_v53 = vsel %vm6944_vm2, 1.0, %v10716_v0 }
 0x1bc   :  { %v3381_v51 = vadd.f32 %v4170_v31, %v3380_v52  ;;  %v3450_v20 = vadd.f32 %v4171_v32, %v3449_v46  ;;  %v3519_v43 = vadd.f32 %v4172_v50, %v3518_v19  ;;  %v3588_v61 = vadd.f32 %v4173_v53, %v3587_v23 }
 0x1bd   :  { %v4174_v41 = vsel %vm6916_vm12, 1.0, %v10716_v0  ;;  %v4175_v2 = vsel %vm6920_vm13, 1.0, %v10716_v0  ;;  %v4176_v48 = vsel %vm6924_vm14, 1.0, %v10716_v0  ;;  %v4177_v52 = vsel %vm6948_vm3, 1.0, %v10716_v0 }
 0x1be   :  { %v908_v46 = vsub.f32 %v622_v59, %v5054_v55  ;;  %vm6980_vm2 = vcmp.lt.f32.partialorder %v905_v56, 0.0  ;;  %v11245_v19 = vmov 0  ;;  %vm6984_vm1 = vcmp.lt.f32.partialorder %v906_v28, 0.0  ;;  %v632_v56 = vpop.permute.xlu1 %631 }
 0x1bf   :  { %v11246_v19 = vsel %vm6980_vm2, 4294967295, %v11245_v19  ;;  %v11248_v23 = vmov 0  ;;  %vm6988_vm0 = vcmp.lt.f32.partialorder %v907_v63, 0.0  ;;  %v11251_v31 = vmov 0 }
 0x1c0   :  { %11247 = vst [vmem:[#allocation189_spill] sm:$0xff] %v11246_v19  ;;  %v11249_v23 = vsel %vm6984_vm1, 4294967295, %v11248_v23  ;;  %v11252_v31 = vsel %vm6988_vm0, 4294967295, %v11251_v31  ;;  %v901_v32 = vsub.f32 %v617_v39, %v5042_v45  ;;  %v902_v50 = vsub.f32 %v617_v39, %v5046_v47 }
 0x1c1   :  { %11250 = vst [vmem:[#allocation190_spill] sm:$0xff] %v11249_v23  ;;  %11253 = vst [vmem:[#allocation191_spill] sm:$0xff] %v11252_v31  ;;  %v903_v53 = vsub.f32 %v617_v39, %v5050_v54  ;;  %v904_v59 = vsub.f32 %v617_v39, %v5054_v55  ;;  %v3382_v49 = vadd.f32 %v4174_v41, %v3381_v51  ;;  %v11254_v33 = vmov 0 }
 0x1c2   :  { %v3451_v37 = vadd.f32 %v4175_v2, %v3450_v20  ;;  %v3520_v60 = vadd.f32 %v4176_v48, %v3519_v43  ;;  %v3589_v28 = vadd.f32 %v4177_v52, %v3588_v61  ;;  %vm6996_vm15 = vcmp.lt.f32.partialorder %v901_v32, 0.0 }
 0x1c3   :  { %v11255_v33 = vsel %vm6996_vm15, 4294967295, %v11254_v33  ;;  %vm7000_vm3 = vcmp.lt.f32.partialorder %v902_v50, 0.0  ;;  %v11257_v63 = vmov 0  ;;  %vm7004_vm14 = vcmp.lt.f32.partialorder %v903_v53, 0.0  ;;  %v627_v53 = vpop.permute.xlu0 %626 }
 0x1c4   :  { %11256 = vst [vmem:[#allocation192_spill] sm:$0xff] %v11255_v33  ;;  %v11258_v63 = vsel %vm7000_vm3, 4294967295, %v11257_v63  ;;  %v11260_v1 = vmov 0  ;;  %vm7008_vm13 = vcmp.lt.f32.partialorder %v904_v59, 0.0  ;;  %v11263_v58 = vmov 0 }
 0x1c5   :  { %11259 = vst [vmem:[#allocation193_spill] sm:$0xff] %v11258_v63  ;;  %v11261_v1 = vsel %vm7004_vm14, 4294967295, %v11260_v1  ;;  %v11264_v58 = vsel %vm7008_vm13, 4294967295, %v11263_v58  ;;  %vm7012_vm12 = vcmp.lt.f32.partialorder %v908_v46, 0.0  ;;  %v11266_v2 = vmov 0 }
 0x1c6   :  { %11262 = vst [vmem:[#allocation194_spill] sm:$0xff] %v11261_v1  ;;  %11265 = vst [vmem:[#allocation195_spill] sm:$0xff] %v11264_v58  ;;  %v11267_v2 = vsel %vm7012_vm12, 4294967295, %v11266_v2  ;;  %v913_v48 = vsub.f32 %v632_v56, %v5042_v45  ;;  %v914_v51 = vsub.f32 %v632_v56, %v5046_v47  ;;  %v915_v20 = vsub.f32 %v632_v56, %v5050_v54 }
 0x1c7   :  { %11268 = vst [vmem:[#allocation196_spill] sm:$0xff] %v11267_v2  ;;  %v4178_v43 = vsel %vm6996_vm15, 1.0, %v10716_v0  ;;  %v4179_v61 = vsel %vm7000_vm3, 1.0, %v10716_v0  ;;  %v4180_v39 = vsel %vm7004_vm14, 1.0, %v10716_v0  ;;  %v916_v41 = vsub.f32 %v632_v56, %v5054_v55 }
 0x1c8   :  { %v4181_v52 = vsel %vm7008_vm13, 1.0, %v10716_v0  ;;  %v3383_v46 = vadd.f32 %v4178_v43, %v3382_v49  ;;  %v3452_v32 = vadd.f32 %v4179_v61, %v3451_v37  ;;  %v3521_v50 = vadd.f32 %v4180_v39, %v3520_v60 }
 0x1c9   :  { %v4182_v59 = vsel %vm6980_vm2, 1.0, %v10716_v0  ;;  %v4183_v63 = vsel %vm6984_vm1, 1.0, %v10716_v0  ;;  %v4184_v56 = vsel %vm6988_vm0, 1.0, %v10716_v0  ;;  %v3590_v1 = vadd.f32 %v4181_v52, %v3589_v28 }
 0x1ca   :  { %v4185_v49 = vsel %vm7012_vm12, 1.0, %v10716_v0  ;;  %vm7044_vm13 = vcmp.lt.f32.partialorder %v913_v48, 0.0  ;;  %v11269_v37 = vmov 0  ;;  %vm7048_vm14 = vcmp.lt.f32.partialorder %v914_v51, 0.0  ;;  %v642_v48 = vpop.permute.xlu1 %641 }
 0x1cb   :  { %v11270_v37 = vsel %vm7044_vm13, 4294967295, %v11269_v37  ;;  %v11272_v60 = vmov 0  ;;  %vm7052_vm3 = vcmp.lt.f32.partialorder %v915_v20, 0.0  ;;  %v11275_v43 = vmov 0 }
 0x1cc   :  { %11271 = vst [vmem:[#allocation197_spill] sm:$0xff] %v11270_v37  ;;  %v11273_v60 = vsel %vm7048_vm14, 4294967295, %v11272_v60  ;;  %v11276_v43 = vsel %vm7052_vm3, 4294967295, %v11275_v43  ;;  %v909_v61 = vsub.f32 %v627_v53, %v5042_v45  ;;  %v910_v28 = vsub.f32 %v627_v53, %v5046_v47 }
 0x1cd   :  { %11274 = vst [vmem:[#allocation198_spill] sm:$0xff] %v11273_v60  ;;  %11277 = vst [vmem:[#allocation199_spill] sm:$0xff] %v11276_v43  ;;  %v911_v39 = vsub.f32 %v627_v53, %v5050_v54  ;;  %v912_v52 = vsub.f32 %v627_v53, %v5054_v55  ;;  %vm7060_vm15 = vcmp.lt.f32.partialorder %v916_v41, 0.0  ;;  %v11278_v58 = vmov 0 }
 0x1ce   :  { %v11279_v58 = vsel %vm7060_vm15, 4294967295, %v11278_v58  ;;  %v3384_v51 = vadd.f32 %v4182_v59, %v3383_v46  ;;  %v3453_v33 = vadd.f32 %v4183_v63, %v3452_v32  ;;  %v3522_v2 = vadd.f32 %v4184_v56, %v3521_v50  ;;  %v637_v32 = vpop.permute.xlu0 %636  ;;  %v652_v37 = vpop.permute.xlu1 %651 }
 0x1cf   :  { %11280 = vst [vmem:[#allocation200_spill] sm:$0xff] %v11279_v58  ;;  %v3591_v20 = vadd.f32 %v4185_v49, %v3590_v1  ;;  %vm7064_vm12 = vcmp.lt.f32.partialorder %v909_v61, 0.0  ;;  %v11281_v31 = vmov 0  ;;  %vm7068_vm0 = vcmp.lt.f32.partialorder %v910_v28, 0.0 }
 0x1d0   :  { %v11282_v31 = vsel %vm7064_vm12, 4294967295, %v11281_v31  ;;  %v11284_v23 = vmov 0  ;;  %vm7072_vm1 = vcmp.lt.f32.partialorder %v911_v39, 0.0  ;;  %v11287_v19 = vmov 0 }
 0x1d1   :  { %11283 = vst [vmem:[#allocation201_spill] sm:$0xff] %v11282_v31  ;;  %v11285_v23 = vsel %vm7068_vm0, 4294967295, %v11284_v23  ;;  %v11288_v19 = vsel %vm7072_vm1, 4294967295, %v11287_v19  ;;  %vm7076_vm2 = vcmp.lt.f32.partialorder %v912_v52, 0.0  ;;  %v11290_v41 = vmov 0 }
 0x1d2   :  { %11286 = vst [vmem:[#allocation202_spill] sm:$0xff] %v11285_v23  ;;  %11289 = vst [vmem:[#allocation203_spill] sm:$0xff] %v11288_v19  ;;  %v11291_v41 = vsel %vm7076_vm2, 4294967295, %v11290_v41  ;;  %v921_v63 = vsub.f32 %v642_v48, %v5042_v45  ;;  %v922_v1 = vsub.f32 %v642_v48, %v5046_v47  ;;  %v923_v46 = vsub.f32 %v642_v48, %v5050_v54 }
 0x1d3   :  { %11292 = vst [vmem:[#allocation204_spill] sm:$0xff] %v11291_v41  ;;  %v4190_v50 = vsel %vm7044_vm13, 1.0, %v10716_v0  ;;  %v4191_v53 = vsel %vm7048_vm14, 1.0, %v10716_v0  ;;  %v4192_v59 = vsel %vm7052_vm3, 1.0, %v10716_v0  ;;  %v4186_v56 = vsel %vm7064_vm12, 1.0, %v10716_v0 }
 0x1d4   :  { %v4193_v49 = vsel %vm7060_vm15, 1.0, %v10716_v0  ;;  %v4187_v61 = vsel %vm7068_vm0, 1.0, %v10716_v0  ;;  %v4188_v28 = vsel %vm7072_vm1, 1.0, %v10716_v0  ;;  %v3385_v39 = vadd.f32 %v4186_v56, %v3384_v51 }
 0x1d5   :  { %v4189_v52 = vsel %vm7076_vm2, 1.0, %v10716_v0  ;;  %v3454_v43 = vadd.f32 %v4187_v61, %v3453_v33  ;;  %v3523_v31 = vadd.f32 %v4188_v28, %v3522_v2  ;;  %v924_v60 = vsub.f32 %v642_v48, %v5054_v55  ;;  %v647_v28 = vpop.permute.xlu0 %646 }
 0x1d6   :  { %v3592_v58 = vadd.f32 %v4189_v52, %v3591_v20  ;;  %vm7108_vm12 = vcmp.lt.f32.partialorder %v921_v63, 0.0  ;;  %v11293_v29 = vmov 0  ;;  %vm7112_vm0 = vcmp.lt.f32.partialorder %v922_v1, 0.0 }
 0x1d7   :  { %v11294_v29 = vsel %vm7108_vm12, 4294967295, %v11293_v29  ;;  %v11295_v23 = vmov 0  ;;  %vm7116_vm1 = vcmp.lt.f32.partialorder %v923_v46, 0.0  ;;  %v11298_v51 = vmov 0 }
 0x1d8   :  { %v11296_v23 = vsel %vm7112_vm0, 4294967295, %v11295_v23  ;;  %v11299_v51 = vsel %vm7116_vm1, 4294967295, %v11298_v51  ;;  %v917_v56 = vsub.f32 %v637_v32, %v5042_v45  ;;  %v918_v33 = vsub.f32 %v637_v32, %v5046_v47 }
 0x1d9   :  { %11297 = vst [vmem:[#allocation205_spill] sm:$0xff] %v11296_v23  ;;  %11300 = vst [vmem:[#allocation206_spill] sm:$0xff] %v11299_v51  ;;  %v919_v2 = vsub.f32 %v637_v32, %v5050_v54  ;;  %v920_v48 = vsub.f32 %v637_v32, %v5054_v55  ;;  %v3386_v20 = vadd.f32 %v4190_v50, %v3385_v39  ;;  %v11301_v46 = vmov 0 }
 0x1da   :  { %v929_v63 = vsub.f32 %v652_v37, %v5042_v45  ;;  %v930_v1 = vsub.f32 %v652_v37, %v5046_v47  ;;  %v931_v61 = vsub.f32 %v652_v37, %v5050_v54  ;;  %vm7127_vm2 = vcmp.lt.f32.partialorder %v917_v56, 0.0 }
 0x1db   :  { %v11302_v46 = vsel %vm7127_vm2, 4294967295, %v11301_v46  ;;  %vm7131_vm15 = vcmp.lt.f32.partialorder %v918_v33, 0.0  ;;  %v11304_v52 = vmov 0  ;;  %vm7135_vm3 = vcmp.lt.f32.partialorder %v919_v2, 0.0 }
 0x1dc   :  { %11303 = vst [vmem:[#allocation207_spill] sm:$0xff] %v11302_v46  ;;  %v11305_v52 = vsel %vm7131_vm15, 4294967295, %v11304_v52  ;;  %v11307_v41 = vmov 0  ;;  %vm7139_vm14 = vcmp.lt.f32.partialorder %v920_v48, 0.0  ;;  %v11310_v32 = vmov 0 }
 0x1dd   :  { %11306 = vst [vmem:[#allocation208_spill] sm:$0xff] %v11305_v52  ;;  %v11308_v41 = vsel %vm7135_vm3, 4294967295, %v11307_v41  ;;  %v11311_v32 = vsel %vm7139_vm14, 4294967295, %v11310_v32  ;;  %v3455_v50 = vadd.f32 %v4191_v53, %v3454_v43  ;;  %v3524_v39 = vadd.f32 %v4192_v59, %v3523_v31  ;;  %v7157_v31 = vpop.permute.xlu1 %661 }
 0x1de   :  { %11309 = vst [vmem:[#allocation209_spill] sm:$0xff] %v11308_v41  ;;  %v3593_v19 = vadd.f32 %v4193_v49, %v3592_v58  ;;  %v932_v56 = vsub.f32 %v652_v37, %v5054_v55  ;;  %vm7144_vm13 = vcmp.lt.f32.partialorder %v924_v60, 0.0  ;;  %v11312_v25 = vmov 0 }
 0x1df   :  { %v11313_v25 = vsel %vm7144_vm13, 4294967295, %v11312_v25  ;;  %v4198_v33 = vsel %vm7108_vm12, 1.0, %v10716_v0  ;;  %v4199_v2 = vsel %vm7112_vm0, 1.0, %v10716_v0  ;;  %v4200_v43 = vsel %vm7116_vm1, 1.0, %v10716_v0 }
 0x1e0   :  { %v4194_v58 = vsel %vm7127_vm2, 1.0, %v10716_v0  ;;  %v4195_v37 = vsel %vm7131_vm15, 1.0, %v10716_v0  ;;  %v4196_v60 = vsel %vm7135_vm3, 1.0, %v10716_v0  ;;  %v4197_v53 = vsel %vm7139_vm14, 1.0, %v10716_v0 }
 0x1e1   :  { %v3387_v59 = vadd.f32 %v4194_v58, %v3386_v20  ;;  %vm7171_vm1 = vcmp.lt.f32.partialorder %v929_v63, 0.0  ;;  %v11314_v49 = vmov 0  ;;  %vm7175_vm0 = vcmp.lt.f32.partialorder %v930_v1, 0.0  ;;  %v7187_v20 = vpop.permute.xlu0 %656 }
 0x1e2   :  { %v11315_v49 = vsel %vm7171_vm1, 4294967295, %v11314_v49  ;;  %v11317_v48 = vmov 0  ;;  %vm7179_vm2 = vcmp.lt.f32.partialorder %v931_v61, 0.0  ;;  %v11320_v52 = vmov 0 }
 0x1e3   :  { %11316 = vst [vmem:[#allocation210_spill] sm:$0xff] %v11315_v49  ;;  %v11318_v48 = vsel %vm7175_vm0, 4294967295, %v11317_v48  ;;  %v11321_v52 = vsel %vm7179_vm2, 4294967295, %v11320_v52  ;;  %v3456_v46 = vadd.f32 %v4195_v37, %v3455_v50  ;;  %v3525_v41 = vadd.f32 %v4196_v60, %v3524_v39 }
 0x1e4   :  { %11319 = vst [vmem:[#allocation211_spill] sm:$0xff] %v11318_v48  ;;  %11322 = vst [vmem:[#allocation212_spill] sm:$0xff] %v11321_v52  ;;  %v3594_v51 = vadd.f32 %v4197_v53, %v3593_v19  ;;  %vm7183_vm3 = vcmp.lt.f32.partialorder %v932_v56, 0.0  ;;  %v11323_v23 = vmov 0  ;;  %v925_v63 = vsub.f32 %v647_v28, %v5042_v45 }
 0x1e5   :  { %v11324_v23 = vsel %vm7183_vm3, 4294967295, %v11323_v23  ;;  %v926_v1 = vsub.f32 %v647_v28, %v5046_v47  ;;  %v927_v58 = vsub.f32 %v647_v28, %v5050_v54  ;;  %v928_v61 = vsub.f32 %v647_v28, %v5054_v55 }
 0x1e6   :  { %11325 = vst [vmem:[#allocation213_spill] sm:$0xff] %v11324_v23  ;;  %v4201_v50 = vsel %vm7144_vm13, 1.0, %v10716_v0  ;;  %v7199_v19 = vsel %vm7171_vm1, 1.0, %v10716_v0  ;;  %v7204_v39 = vsel %vm7175_vm0, 1.0, %v10716_v0  ;;  %v7209_v56 = vsel %vm7179_vm2, 1.0, %v10716_v0 }
 0x1e7   :  { %11326 = vst [vmem:[#allocation214_spill] sm:$0xff] %v7199_v19  ;;  %11327 = vst [vmem:[#allocation215_spill] sm:$0xff] %v7204_v39  ;;  %v7214_v28 = vsel %vm7183_vm3, 1.0, %v10716_v0  ;;  %vm7216_vm14 = vcmp.lt.f32.partialorder %v925_v63, 0.0  ;;  %v11330_v37 = vmov 0  ;;  %vm7220_vm1 = vcmp.lt.f32.partialorder %v926_v1, 0.0  ;;  %v1205_v39 = vpop.permute.xlu1 %1204 }
 0x1e8   :  { %11328 = vst [vmem:[#allocation216_spill] sm:$0xff] %v7209_v56  ;;  %11329 = vst [vmem:[#allocation217_spill] sm:$0xff] %v7214_v28  ;;  %v11331_v37 = vsel %vm7216_vm14, 4294967295, %v11330_v37  ;;  %v11333_v60 = vmov 0  ;;  %vm7224_vm0 = vcmp.lt.f32.partialorder %v927_v58, 0.0  ;;  %v11336_v53 = vmov 0 }
 0x1e9   :  { %11332 = vst [vmem:[#allocation218_spill] sm:$0xff] %v11331_v37  ;;  %v11334_v60 = vsel %vm7220_vm1, 4294967295, %v11333_v60  ;;  %v11337_v53 = vsel %vm7224_vm0, 4294967295, %v11336_v53  ;;  %v3388_v19 = vadd.f32 %v4198_v33, %v3387_v59  ;;  %v3457_v56 = vadd.f32 %v4199_v2, %v3456_v46  ;;  %v343_v63 = vld [vmem:[%s10101_s4] sm:$0xf] }
 0x1ea   :  { %11335 = vst [vmem:[#allocation219_spill] sm:$0xff] %v11334_v60  ;;  %11338 = vst [vmem:[#allocation220_spill] sm:$0xff] %v11337_v53  ;;  %v3526_v52 = vadd.f32 %v4200_v43, %v3525_v41  ;;  %v3595_v48 = vadd.f32 %v4201_v50, %v3594_v51  ;;  %vm7231_vm3 = vcmp.lt.f32.partialorder %v928_v61, 0.0  ;;  %v11339_v28 = vmov 0  ;;  %v1200_v43 = vpop.permute.xlu0 %1199 }
 0x1eb   :  { %v11340_v28 = vsel %vm7231_vm3, 4294967295, %v11339_v28  ;;  %v4202_v41 = vsel %vm7216_vm14, 1.0, %v10716_v0  ;;  %v4203_v51 = vsel %vm7220_vm1, 1.0, %v10716_v0  ;;  %v4204_v46 = vsel %vm7224_vm0, 1.0, %v10716_v0 }
 0x1ec   :  { %11341 = vst [vmem:[#allocation221_spill] sm:$0xff] %v11340_v28  ;;  %v11342_v59 = vsub.s32 0, %v5030_v30  ;;  %v11343_v50 = vsub.s32 1, %v5030_v30  ;;  %v11344_v58 = vsub.s32 2, %v5030_v30  ;;  %v11345_v60 = vsub.s32 3, %v5030_v30 }
 0x1ed   :  { %v4205_v2 = vsel %vm7231_vm3, 1.0, %v10716_v0  ;;  %v7271_v37 = vadd.f32 %v4202_v41, %v3388_v19  ;;  %v7275_v23 = vadd.f32 %v4204_v46, %v3526_v52 }
 0x1ee   :  { %v7254_v61 = vrot.slane %v343_v63, %v11342_v59  ;;  %v7258_v33 = vrot.slane %v343_v63, %v11343_v50  ;;  %v7262_v1 = vrot.slane %v343_v63, %v11344_v58  ;;  %v7266_v53 = vrot.slane %v343_v63, %v11345_v60  ;;  %v1215_v60 = vpop.permute.xlu1 %1214 }
 0x1ef   :  { %v7273_v59 = vadd.f32 %v4203_v51, %v3457_v56  ;;  %11346 = vst [vmem:[#allocation222_spill] sm:$0xff] %v7275_v23  ;;  %v7281_v63 = vadd.f32 %v4205_v2, %v3595_v48 }
 0x1f0   :  { %v1542_v50 = vsub.f32 %v1205_v39, %v7254_v61  ;;  %v1543_v49 = vsub.f32 %v1205_v39, %v7258_v33  ;;  %v1544_v58 = vsub.f32 %v1205_v39, %v7262_v1  ;;  %v1545_v30 = vsub.f32 %v1205_v39, %v7266_v53 }
 0x1f1   :  { %11347 = vst [vmem:[#allocation223_spill] sm:$0xff] %v7281_v63  ;;  %v1538_v28 = vsub.f32 %v1200_v43, %v7254_v61  ;;  %v1539_v19 = vsub.f32 %v1200_v43, %v7258_v33  ;;  %v1540_v56 = vsub.f32 %v1200_v43, %v7262_v1  ;;  %v1541_v48 = vsub.f32 %v1200_v43, %v7266_v53 }
 0x1f2   :  { %vm7286_vm3 = vcmp.lt.f32.partialorder %v1542_v50, 0.0  ;;  %vm7290_vm0 = vcmp.lt.f32.partialorder %v1543_v49, 0.0  ;;  %vm7294_vm1 = vcmp.lt.f32.partialorder %v1544_v58, 0.0  ;;  %vm7305_vm14 = vcmp.lt.f32.partialorder %v1545_v30, 0.0  ;;  %v1210_v50 = vpop.permute.xlu0 %1209  ;;  %v1225_v51 = vpop.permute.xlu1 %1224 }
 0x1f3   :  { %vm2566_vm2 = vmand %vm5143_vm8, %vm7286_vm3  ;;  %vm7317_vm13 = vcmp.lt.f32.partialorder %v1538_v28, 0.0  ;;  %v1550_v30 = vsub.f32 %v1215_v60, %v7254_v61  ;;  %v1551_v58 = vsub.f32 %v1215_v60, %v7258_v33  ;;  %v1552_v2 = vsub.f32 %v1215_v60, %v7262_v1 }
 0x1f4   :  { %vm2567_vm15 = vmand %vm5147_vm9, %vm7290_vm0  ;;  %vm7330_vm8 = vcmp.lt.f32.partialorder %v1539_v19, 0.0  ;;  %vm7334_vm0 = vcmp.lt.f32.partialorder %v1540_v56, 0.0  ;;  %v1553_v52 = vsub.f32 %v1215_v60, %v7266_v53  ;;  %v4222_v41 = vsel %vm2566_vm2, 1.0, %v10716_v0 }
 0x1f5   :  { %vm2568_vm3 = vmand %vm5151_vm10, %vm7294_vm1  ;;  %v4223_v11 = vsel %vm2567_vm15, 1.0, %v10716_v0  ;;  %vm7345_vm1 = vcmp.lt.f32.partialorder %v1541_v48, 0.0  ;;  %v1546_v56 = vsub.f32 %v1210_v50, %v7254_v61  ;;  %vm7355_vm12 = vcmp.lt.f32.partialorder %v1550_v30, 0.0 }
 0x1f6   :  { %vm2569_vm9 = vmand %vm5155_vm11, %vm7305_vm14  ;;  %v4224_v9 = vsel %vm2568_vm3, 1.0, %v10716_v0  ;;  %vm7359_vm2 = vcmp.lt.f32.partialorder %v1551_v58, 0.0  ;;  %v1547_v48 = vsub.f32 %v1210_v50, %v7258_v33  ;;  %vm7369_vm3 = vcmp.lt.f32.partialorder %v1552_v2, 0.0 }
 0x1f7   :  { %vm2562_vm10 = vmand %vm5086_vm4, %vm7317_vm13  ;;  %v1548_v30 = vsub.f32 %v1210_v50, %v7262_v1  ;;  %v1549_v58 = vsub.f32 %v1210_v50, %v7266_v53  ;;  %v4225_v10 = vsel %vm2569_vm9, 1.0, %v10716_v0  ;;  %v1558_v50 = vsub.f32 %v1225_v51, %v7254_v61 }
 0x1f8   :  { %vm2563_vm15 = vmand %vm5090_vm5, %vm7330_vm8  ;;  %v4218_v43 = vsel %vm2562_vm10, 1.0, %v10716_v0  ;;  %vm7386_vm5 = vcmp.lt.f32.partialorder %v1553_v52, 0.0  ;;  %vm7396_vm11 = vcmp.lt.f32.partialorder %v1546_v56, 0.0  ;;  %v1559_v17 = vsub.f32 %v1225_v51, %v7258_v33  ;;  %v1220_v56 = vpop.permute.xlu0 %1219 }
 0x1f9   :  { %vm2564_vm4 = vmand %vm5094_vm6, %vm7334_vm0  ;;  %v4219_v42 = vsel %vm2563_vm15, 1.0, %v10716_v0  ;;  %v1560_v28 = vsub.f32 %v1225_v51, %v7262_v1  ;;  %v3610_v39 = vadd.f32 %v4222_v41, %v4218_v43  ;;  %vm11374_vm6 = vnez %v10651_v3 }
 0x1fa   :  { %vm2565_vm13 = vmand %vm5098_vm7, %vm7345_vm1  ;;  %v4220_v12 = vsel %vm2564_vm4, 1.0, %v10716_v0  ;;  %vm7407_vm8 = vcmp.lt.f32.partialorder %v1547_v48, 0.0  ;;  %v1561_v19 = vsub.f32 %v1225_v51, %v7266_v53  ;;  %v3679_v63 = vadd.f32 %v4223_v11, %v4219_v42  ;;  %v1235_v11 = vpop.permute.xlu1 %1234 }
 0x1fb   :  { %v4221_v52 = vsel %vm2565_vm13, 1.0, %v10716_v0  ;;  %vm2574_vm14 = vmand %vm11374_vm6, %vm7355_vm12  ;;  %v3748_v23 = vadd.f32 %v4224_v9, %v4220_v12  ;;  %vm11377_vm7 = vnez %v10653_v4  ;;  %vm7416_vm9 = vcmp.lt.f32.partialorder %v1548_v30, 0.0 }
 0x1fc   :  { %vm2575_vm0 = vmand %vm11377_vm7, %vm7359_vm2  ;;  %vm7420_vm1 = vcmp.lt.f32.partialorder %v1549_v58, 0.0  ;;  %v3817_v60 = vadd.f32 %v4225_v10, %v4221_v52  ;;  %vm11382_vm12 = vnez %v10655_v5  ;;  %v4230_v9 = vsel %vm2574_vm14, 1.0, %v10716_v0 }
 0x1fd   :  { %vm2576_vm10 = vmand %vm11382_vm12, %vm7369_vm3  ;;  %vm7429_vm15 = vcmp.lt.f32.partialorder %v1558_v50, 0.0  ;;  %vm7433_vm2 = vcmp.lt.f32.partialorder %v1559_v17, 0.0  ;;  %vm11387_vm4 = vnez %v10657_v7  ;;  %v4231_v51 = vsel %vm2575_vm0, 1.0, %v10716_v0 }
 0x1fe   :  { %vm2577_vm13 = vmand %vm11387_vm4, %vm7386_vm5  ;;  %vm7442_vm6 = vcmp.lt.f32.partialorder %v1560_v28, 0.0  ;;  %v1554_v48 = vsub.f32 %v1220_v56, %v7254_v61  ;;  %v1555_v43 = vsub.f32 %v1220_v56, %v7258_v33  ;;  %v4232_v40 = vsel %vm2576_vm10, 1.0, %v10716_v0  ;;  %v1245_v4 = vpop.permute.xlu1 %1244 }
 0x1ff   :  { %vm11390_vm3 = vnez %v10627_v34  ;;  %vm7453_vm7 = vcmp.lt.f32.partialorder %v1561_v19, 0.0  ;;  %v1556_v30 = vsub.f32 %v1220_v56, %v7262_v1  ;;  %v1557_v58 = vsub.f32 %v1220_v56, %v7266_v53 }
 0x200   :  { %vm2570_vm14 = vmand %vm11390_vm3, %vm7396_vm11  ;;  %v4233_v10 = vsel %vm2577_vm13, 1.0, %v10716_v0  ;;  %vm11393_vm5 = vnez %v10629_v35  ;;  %v1566_v34 = vsub.f32 %v1235_v11, %v7254_v61  ;;  %v1567_v2 = vsub.f32 %v1235_v11, %v7258_v33  ;;  %v1230_v35 = vpop.permute.xlu0 %1229 }
 0x201   :  { %vm2571_vm0 = vmand %vm11393_vm5, %vm7407_vm8  ;;  %v4226_v42 = vsel %vm2570_vm14, 1.0, %v10716_v0  ;;  %vm11394_vm11 = vnez %v10631_v36  ;;  %v1568_v49 = vsub.f32 %v1235_v11, %v7262_v1  ;;  %v1569_v17 = vsub.f32 %v1235_v11, %v7266_v53 }
 0x202   :  { %vm2572_vm12 = vmand %vm11394_vm11, %vm7416_vm9  ;;  %v4227_v50 = vsel %vm2571_vm0, 1.0, %v10716_v0  ;;  %v3611_v12 = vadd.f32 %v4226_v42, %v3610_v39  ;;  %vm11395_vm8 = vnez %v10633_v38  ;;  %vm7479_vm4 = vcmp.lt.f32.partialorder %v1554_v48, 0.0  ;;  %v1255_v38 = vpop.permute.xlu1 %1254 }
 0x203   :  { %vm2573_vm10 = vmand %vm11395_vm8, %vm7420_vm1  ;;  %v4228_v28 = vsel %vm2572_vm12, 1.0, %v10716_v0  ;;  %v3680_v52 = vadd.f32 %v4227_v50, %v3679_v63  ;;  %vm7483_vm9 = vcmp.lt.f32.partialorder %v1555_v43, 0.0  ;;  %vm11400_vm13 = vnez %v10659_v6 }
 0x204   :  { %v4229_v39 = vsel %vm2573_vm10, 1.0, %v10716_v0  ;;  %v3749_v19 = vadd.f32 %v4228_v28, %v3748_v23  ;;  %vm2582_vm3 = vmand %vm11400_vm13, %vm7429_vm15  ;;  %vm7492_vm1 = vcmp.lt.f32.partialorder %v1556_v30, 0.0  ;;  %vm7496_vm14 = vcmp.lt.f32.partialorder %v1557_v58, 0.0  ;;  %v1240_v50 = vpop.permute.xlu0 %1239 }
 0x205   :  { %v3818_v56 = vadd.f32 %v4229_v39, %v3817_v60  ;;  %vm11405_vm5 = vnez %v10661_v8  ;;  %vm7504_vm11 = vcmp.lt.f32.partialorder %v1566_v34, 0.0  ;;  %vm7508_vm12 = vcmp.lt.f32.partialorder %v1567_v2, 0.0 }
 0x206   :  { %vm2583_vm0 = vmand %vm11405_vm5, %vm7433_vm2  ;;  %v1562_v41 = vsub.f32 %v1230_v35, %v7254_v61  ;;  %vm11410_vm15 = vnez %v10663_v13  ;;  %v4238_v3 = vsel %vm2582_vm3, 1.0, %v10716_v0  ;;  %v3612_v60 = vadd.f32 %v4230_v9, %v3611_v12 }
 0x207   :  { %vm2584_vm8 = vmand %vm11410_vm15, %vm7442_vm6  ;;  %vm7518_vm10 = vcmp.lt.f32.partialorder %v1568_v49, 0.0  ;;  %vm7522_vm2 = vcmp.lt.f32.partialorder %v1569_v17, 0.0  ;;  %vm11415_vm13 = vnez %v10665_v14  ;;  %v4239_v13 = vsel %vm2583_vm0, 1.0, %v10716_v0  ;;  %v11518_v14 = vld [vmem:[#allocation21_spill] sm:$0xff] }
 0x208   :  { %v3681_v11 = vadd.f32 %v4231_v51, %v3680_v52  ;;  %v3750_v5 = vadd.f32 %v4232_v40, %v3749_v19  ;;  %v1563_v9 = vsub.f32 %v1230_v35, %v7258_v33  ;;  %v4240_v48 = vsel %vm2584_vm8, 1.0, %v10716_v0  ;;  %v11485_v19 = vld [vmem:[#allocation13_spill] sm:$0xff] }
 0x209   :  { %v3819_v43 = vadd.f32 %v4233_v10, %v3818_v56  ;;  %vm11416_vm6 = vnez %v10667_v21  ;;  %v1564_v30 = vsub.f32 %v1230_v35, %v7262_v1  ;;  %v1565_v58 = vsub.f32 %v1230_v35, %v7266_v53 }
 0x20a   :  { %vm2578_vm3 = vmand %vm11416_vm6, %vm7479_vm4  ;;  %vm11417_vm0 = vnez %v10669_v22  ;;  %vm7544_vm5 = vcmp.lt.f32.partialorder %v1562_v41, 0.0  ;;  %v1574_v10 = vsub.f32 %v1245_v4, %v7254_v61  ;;  %v1575_v21 = vsub.f32 %v1245_v4, %v7258_v33 }
 0x20b   :  { %vm2579_vm15 = vmand %vm11417_vm0, %vm7483_vm9  ;;  %v4234_v51 = vsel %vm2578_vm3, 1.0, %v10716_v0  ;;  %vm11420_vm4 = vnez %v10671_v26  ;;  %v1576_v22 = vsub.f32 %v1245_v4, %v7262_v1  ;;  %v1577_v2 = vsub.f32 %v1245_v4, %v7266_v53 }
 0x20c   :  { %vm2580_vm8 = vmand %vm11420_vm4, %vm7492_vm1  ;;  %v4235_v42 = vsel %vm2579_vm15, 1.0, %v10716_v0  ;;  %v3613_v34 = vadd.f32 %v4234_v51, %v3612_v60  ;;  %vm11422_vm6 = vnez %v10673_v27  ;;  %vm7568_vm3 = vcmp.lt.f32.partialorder %v1563_v9, 0.0  ;;  %v1265_v27 = vpop.permute.xlu1 %1264 }
 0x20d   :  { %vm11421_vm9 = vmand %vm11415_vm13, %vm7453_vm7  ;;  %v4236_v26 = vsel %vm2580_vm8, 1.0, %v10716_v0  ;;  %v3682_v49 = vadd.f32 %v4235_v42, %v3681_v11  ;;  %vm11425_vm7 = vnez %v10675_v44  ;;  %vm7577_vm0 = vcmp.lt.f32.partialorder %v1564_v30, 0.0  ;;  %v11445_v11 = vld [vmem:[#allocation3_spill] sm:$0xff] }
 0x20e   :  { %v4241_v12 = vsel %vm11421_vm9, 1.0, %v10716_v0  ;;  %vm2581_vm1 = vmand %vm11422_vm6, %vm7496_vm14  ;;  %v3751_v28 = vadd.f32 %v4236_v26, %v3750_v5  ;;  %vm7581_vm14 = vcmp.lt.f32.partialorder %v1565_v58, 0.0  ;;  %vm11430_vm15 = vnez %v10677_v57  ;;  %v11448_v58 = vld [vmem:[#allocation4_spill] sm:$0xff] }
 0x20f   :  { %v4237_v35 = vsel %vm2581_vm1, 1.0, %v10716_v0  ;;  %vm2590_vm13 = vmand %vm11425_vm7, %vm7504_vm11  ;;  %vm7589_vm8 = vcmp.lt.f32.partialorder %v1574_v10, 0.0  ;;  %vm7593_vm9 = vcmp.lt.f32.partialorder %v1575_v21, 0.0  ;;  %v1570_v18 = vsub.f32 %v1240_v50, %v7254_v61 }
 0x210   :  { %v3820_v7 = vadd.f32 %v4237_v35, %v3819_v43  ;;  %vm2591_vm4 = vmand %vm11430_vm15, %vm7508_vm12  ;;  %vm11435_vm11 = vnez %v10679_v62  ;;  %v4246_v36 = vsel %vm2590_vm13, 1.0, %v10716_v0  ;;  %v3614_v39 = vadd.f32 %v4238_v3, %v3613_v34  ;;  %v1250_v43 = vpop.permute.xlu0 %1249  ;;  %v11497_v34 = vld [vmem:[#allocation15_spill] sm:$0xff] }
 0x211   :  { %vm2592_vm6 = vmand %vm11435_vm11, %vm7518_vm10  ;;  %vm7603_vm1 = vcmp.lt.f32.partialorder %v1576_v22, 0.0  ;;  %vm7607_vm12 = vcmp.lt.f32.partialorder %v1577_v2, 0.0  ;;  %vm11440_vm7 = vnez %v10681_v16  ;;  %v4247_v62 = vsel %vm2591_vm4, 1.0, %v10716_v0  ;;  %v11452_v16 = vld [vmem:[#allocation5_spill] sm:$0xff]  ;;  %v11458_v2 = vld [vmem:[#allocation6_spill] sm:$0xff] }
 0x212   :  { %v3683_v63 = vadd.f32 %v4239_v13, %v3682_v49  ;;  %v3752_v56 = vadd.f32 %v4240_v48, %v3751_v28  ;;  %v1571_v23 = vsub.f32 %v1240_v50, %v7258_v33  ;;  %v4248_v6 = vsel %vm2592_vm6, 1.0, %v10716_v0  ;;  %v11464_v49 = vld [vmem:[#allocation7_spill] sm:$0xff] }
 0x213   :  { %v3821_v41 = vadd.f32 %v4241_v12, %v3820_v7  ;;  %vm11441_vm10 = vnez %v10683_v24  ;;  %v1572_v3 = vsub.f32 %v1240_v50, %v7262_v1  ;;  %v1573_v60 = vsub.f32 %v1240_v50, %v7266_v53  ;;  %v11470_v7 = vld [vmem:[#allocation8_spill] sm:$0xff]  ;;  %v11551_v12 = vld [vmem:[#allocation29_spill] sm:$0xff] }
 0x214   :  { %vm2586_vm13 = vmand %vm11441_vm10, %vm7544_vm5  ;;  %vm11442_vm4 = vnez %v10685_v15  ;;  %vm7629_vm15 = vcmp.lt.f32.partialorder %v1570_v18, 0.0  ;;  %v1582_v13 = vsub.f32 %v1255_v38, %v7254_v61  ;;  %v1583_v24 = vsub.f32 %v1255_v38, %v7258_v33 }
 0x215   :  { %vm2587_vm11 = vmand %vm11442_vm4, %vm7568_vm3  ;;  %v4242_v8 = vsel %vm2586_vm13, 1.0, %v10716_v0  ;;  %vm11446_vm5 = vnez %v11445_v11  ;;  %v1584_v15 = vsub.f32 %v1255_v38, %v7262_v1  ;;  %v1585_v48 = vsub.f32 %v1255_v38, %v7266_v53  ;;  %v11472_v38 = vld [vmem:[#allocation9_spill] sm:$0xff]  ;;  %v1260_v11 = vpop.permute.xlu0 %1259 }
 0x216   :  { %vm2588_vm6 = vmand %vm11446_vm5, %vm7577_vm0  ;;  %v4243_v5 = vsel %vm2587_vm11, 1.0, %v10716_v0  ;;  %v3615_v9 = vadd.f32 %v4242_v8, %v3614_v39  ;;  %vm11449_vm10 = vnez %v11448_v58  ;;  %vm7653_vm13 = vcmp.lt.f32.partialorder %v1571_v23, 0.0  ;;  %v11474_v23 = vld [vmem:[#allocation10_spill] sm:$0xff] }
 0x217   :  { %vm11447_vm3 = vmand %vm11440_vm7, %vm7522_vm2  ;;  %v4244_v51 = vsel %vm2588_vm6, 1.0, %v10716_v0  ;;  %v3684_v40 = vadd.f32 %v4243_v5, %v3683_v63  ;;  %vm11453_vm2 = vnez %v11452_v16  ;;  %vm7662_vm4 = vcmp.lt.f32.partialorder %v1572_v3, 0.0  ;;  %v11584_v16 = vld [vmem:[#allocation37_spill] sm:$0xff] }
 0x218   :  { %v4249_v30 = vsel %vm11447_vm3, 1.0, %v10716_v0  ;;  %vm2589_vm0 = vmand %vm11449_vm10, %vm7581_vm14  ;;  %v3753_v42 = vadd.f32 %v4244_v51, %v3752_v56  ;;  %vm7666_vm14 = vcmp.lt.f32.partialorder %v1573_v60, 0.0  ;;  %vm11459_vm11 = vnez %v11458_v2  ;;  %v11478_v60 = vld [vmem:[#allocation11_spill] sm:$0xff] }
 0x219   :  { %v4245_v21 = vsel %vm2589_vm0, 1.0, %v10716_v0  ;;  %vm2598_vm7 = vmand %vm11453_vm2, %vm7589_vm8  ;;  %vm7674_vm6 = vcmp.lt.f32.partialorder %v1582_v13, 0.0  ;;  %vm7678_vm3 = vcmp.lt.f32.partialorder %v1583_v24, 0.0  ;;  %v1578_v26 = vsub.f32 %v1250_v43, %v7254_v61 }
 0x21a   :  { %v3822_v22 = vadd.f32 %v4245_v21, %v3821_v41  ;;  %vm2599_vm5 = vmand %vm11459_vm11, %vm7593_vm9  ;;  %vm11465_vm8 = vnez %v11464_v49  ;;  %v4254_v17 = vsel %vm2598_vm7, 1.0, %v10716_v0  ;;  %v3616_v35 = vadd.f32 %v4246_v36, %v3615_v9  ;;  %v11481_v9 = vld [vmem:[#allocation12_spill] sm:$0xff]  ;;  %v11491_v21 = vld [vmem:[#allocation14_spill] sm:$0xff] }
 0x21b   :  { %vm2600_vm10 = vmand %vm11465_vm8, %vm7603_vm1  ;;  %vm7688_vm0 = vcmp.lt.f32.partialorder %v1584_v15, 0.0  ;;  %vm7692_vm9 = vcmp.lt.f32.partialorder %v1585_v48, 0.0  ;;  %vm11471_vm2 = vnez %v11470_v7  ;;  %v4255_v52 = vsel %vm2599_vm5, 1.0, %v10716_v0  ;;  %v11503_v49 = vld [vmem:[#allocation16_spill] sm:$0xff] }
 0x21c   :  { %v3685_v44 = vadd.f32 %v4247_v62, %v3684_v40  ;;  %v3754_v18 = vadd.f32 %v4248_v6, %v3753_v42  ;;  %v1579_v36 = vsub.f32 %v1250_v43, %v7258_v33  ;;  %v4256_v39 = vsel %vm2600_vm10, 1.0, %v10716_v0  ;;  %v11530_v40 = vld [vmem:[#allocation23_spill] sm:$0xff] }
 0x21d   :  { %v3823_v57 = vadd.f32 %v4249_v30, %v3822_v22  ;;  %vm11473_vm1 = vnez %v11472_v38  ;;  %v1580_v63 = vsub.f32 %v1250_v43, %v7262_v1  ;;  %v1581_v56 = vsub.f32 %v1250_v43, %v7266_v53  ;;  %v11507_v38 = vld [vmem:[#allocation18_spill] sm:$0xff] }
 0x21e   :  { %vm2594_vm7 = vmand %vm11473_vm1, %vm7629_vm15  ;;  %vm11475_vm5 = vnez %v11474_v23  ;;  %vm7714_vm11 = vcmp.lt.f32.partialorder %v1578_v26, 0.0  ;;  %v1590_v41 = vsub.f32 %v1265_v27, %v7254_v61  ;;  %v1591_v3 = vsub.f32 %v1265_v27, %v7258_v33  ;;  %v1275_v26 = vpop.permute.xlu1 %1274  ;;  %v11511_v23 = vld [vmem:[#allocation19_spill] sm:$0xff] }
 0x21f   :  { %vm2595_vm8 = vmand %vm11475_vm5, %vm7653_vm13  ;;  %v4250_v62 = vsel %vm2594_vm7, 1.0, %v10716_v0  ;;  %vm11479_vm15 = vnez %v11478_v60  ;;  %v1592_v13 = vsub.f32 %v1265_v27, %v7262_v1  ;;  %v1593_v24 = vsub.f32 %v1265_v27, %v7266_v53  ;;  %v1270_v60 = vpop.permute.xlu0 %1269 }
 0x220   :  { %vm2596_vm10 = vmand %vm11479_vm15, %vm7662_vm4  ;;  %v4251_v8 = vsel %vm2595_vm8, 1.0, %v10716_v0  ;;  %v3617_v4 = vadd.f32 %v4250_v62, %v3616_v35  ;;  %vm11482_vm1 = vnez %v11481_v9  ;;  %vm7738_vm7 = vcmp.lt.f32.partialorder %v1579_v36, 0.0 }
 0x221   :  { %vm11480_vm13 = vmand %vm11471_vm2, %vm7607_vm12  ;;  %v4252_v15 = vsel %vm2596_vm10, 1.0, %v10716_v0  ;;  %v3686_v48 = vadd.f32 %v4251_v8, %v3685_v44  ;;  %vm11486_vm12 = vnez %v11485_v19  ;;  %vm7747_vm5 = vcmp.lt.f32.partialorder %v1580_v63, 0.0  ;;  %v11617_v19 = vld [vmem:[#allocation45_spill] sm:$0xff] }
 0x222   :  { %v4257_v5 = vsel %vm11480_vm13, 1.0, %v10716_v0  ;;  %vm2597_vm4 = vmand %vm11482_vm1, %vm7666_vm14  ;;  %v3755_v58 = vadd.f32 %v4252_v15, %v3754_v18  ;;  %vm7751_vm14 = vcmp.lt.f32.partialorder %v1581_v56, 0.0  ;;  %vm11492_vm8 = vnez %v11491_v21  ;;  %v11505_v18 = vld [vmem:[#allocation17_spill] sm:$0xff] }
 0x223   :  { %v4253_v30 = vsel %vm2597_vm4, 1.0, %v10716_v0  ;;  %vm2606_vm2 = vmand %vm11486_vm12, %vm7674_vm6  ;;  %vm7759_vm10 = vcmp.lt.f32.partialorder %v1590_v41, 0.0  ;;  %vm7763_vm13 = vcmp.lt.f32.partialorder %v1591_v3, 0.0  ;;  %v1586_v46 = vsub.f32 %v1260_v11, %v7254_v61 }
 0x224   :  { %v3824_v10 = vadd.f32 %v4253_v30, %v3823_v57  ;;  %vm2607_vm15 = vmand %vm11492_vm8, %vm7678_vm3  ;;  %vm11498_vm6 = vnez %v11497_v34  ;;  %v4262_v22 = vsel %vm2606_vm2, 1.0, %v10716_v0  ;;  %v3618_v2 = vadd.f32 %v4254_v17, %v3617_v4  ;;  %v11514_v4 = vld [vmem:[#allocation20_spill] sm:$0xff]  ;;  %v11524_v30 = vld [vmem:[#allocation22_spill] sm:$0xff] }
 0x225   :  { %vm2608_vm1 = vmand %vm11498_vm6, %vm7688_vm0  ;;  %vm7773_vm4 = vcmp.lt.f32.partialorder %v1592_v13, 0.0  ;;  %vm7777_vm3 = vcmp.lt.f32.partialorder %v1593_v24, 0.0  ;;  %vm11504_vm12 = vnez %v11503_v49  ;;  %v4263_v35 = vsel %vm2607_vm15, 1.0, %v10716_v0  ;;  %v11536_v34 = vld [vmem:[#allocation24_spill] sm:$0xff] }
 0x226   :  { %v3687_v28 = vadd.f32 %v4255_v52, %v3686_v48  ;;  %v3756_v27 = vadd.f32 %v4256_v39, %v3755_v58  ;;  %v1587_v17 = vsub.f32 %v1260_v11, %v7258_v33  ;;  %v4264_v7 = vsel %vm2608_vm1, 1.0, %v10716_v0  ;;  %v11563_v48 = vld [vmem:[#allocation31_spill] sm:$0xff] }
 0x227   :  { %v3825_v44 = vadd.f32 %v4257_v5, %v3824_v10  ;;  %vm11506_vm0 = vnez %v11505_v18  ;;  %v1588_v36 = vsub.f32 %v1260_v11, %v7262_v1  ;;  %v1589_v57 = vsub.f32 %v1260_v11, %v7266_v53  ;;  %v11540_v18 = vld [vmem:[#allocation26_spill] sm:$0xff] }
 0x228   :  { %vm2602_vm2 = vmand %vm11506_vm0, %vm7714_vm11  ;;  %vm11508_vm15 = vnez %v11507_v38  ;;  %vm7799_vm8 = vcmp.lt.f32.partialorder %v1586_v46, 0.0  ;;  %v1598_v63 = vsub.f32 %v1275_v26, %v7254_v61  ;;  %v1599_v56 = vsub.f32 %v1275_v26, %v7258_v33  ;;  %v1285_v46 = vpop.permute.xlu1 %1284  ;;  %v11544_v38 = vld [vmem:[#allocation27_spill] sm:$0xff] }
 0x229   :  { %vm2603_vm6 = vmand %vm11508_vm15, %vm7738_vm7  ;;  %v4258_v52 = vsel %vm2602_vm2, 1.0, %v10716_v0  ;;  %vm11512_vm11 = vnez %v11511_v23  ;;  %v1600_v41 = vsub.f32 %v1275_v26, %v7262_v1  ;;  %v1601_v3 = vsub.f32 %v1275_v26, %v7266_v53  ;;  %v1280_v23 = vpop.permute.xlu0 %1279 }
 0x22a   :  { %vm2604_vm1 = vmand %vm11512_vm11, %vm7747_vm5  ;;  %v4259_v62 = vsel %vm2603_vm6, 1.0, %v10716_v0  ;;  %v3619_v6 = vadd.f32 %v4258_v52, %v3618_v2  ;;  %vm11515_vm0 = vnez %v11514_v4  ;;  %vm7823_vm2 = vcmp.lt.f32.partialorder %v1587_v17, 0.0 }
 0x22b   :  { %vm11513_vm7 = vmand %vm11504_vm12, %vm7692_vm9  ;;  %v4260_v13 = vsel %vm2604_vm1, 1.0, %v10716_v0  ;;  %v3688_v24 = vadd.f32 %v4259_v62, %v3687_v28  ;;  %vm11519_vm9 = vnez %v11518_v14  ;;  %vm7832_vm15 = vcmp.lt.f32.partialorder %v1588_v36, 0.0  ;;  %v11650_v14 = vld [vmem:[#allocation53_spill] sm:$0xff] }
 0x22c   :  { %v4265_v8 = vsel %vm11513_vm7, 1.0, %v10716_v0  ;;  %vm2605_vm5 = vmand %vm11515_vm0, %vm7751_vm14  ;;  %v3757_v9 = vadd.f32 %v4260_v13, %v3756_v27  ;;  %vm7836_vm14 = vcmp.lt.f32.partialorder %v1589_v57, 0.0  ;;  %vm11525_vm6 = vnez %v11524_v30  ;;  %v11538_v27 = vld [vmem:[#allocation25_spill] sm:$0xff] }
 0x22d   :  { %v4261_v5 = vsel %vm2605_vm5, 1.0, %v10716_v0  ;;  %vm2614_vm12 = vmand %vm11519_vm9, %vm7759_vm10  ;;  %vm7844_vm1 = vcmp.lt.f32.partialorder %v1598_v63, 0.0  ;;  %vm7848_vm7 = vcmp.lt.f32.partialorder %v1599_v56, 0.0  ;;  %v1594_v51 = vsub.f32 %v1270_v60, %v7254_v61 }
 0x22e   :  { %v3826_v43 = vadd.f32 %v4261_v5, %v3825_v44  ;;  %vm2615_vm11 = vmand %vm11525_vm6, %vm7763_vm13  ;;  %vm11531_vm10 = vnez %v11530_v40  ;;  %v4270_v10 = vsel %vm2614_vm12, 1.0, %v10716_v0  ;;  %v3620_v21 = vadd.f32 %v4262_v22, %v3619_v6  ;;  %v11547_v6 = vld [vmem:[#allocation28_spill] sm:$0xff]  ;;  %v11557_v5 = vld [vmem:[#allocation30_spill] sm:$0xff] }
 0x22f   :  { %vm2616_vm0 = vmand %vm11531_vm10, %vm7773_vm4  ;;  %vm7858_vm5 = vcmp.lt.f32.partialorder %v1600_v41, 0.0  ;;  %vm7862_vm13 = vcmp.lt.f32.partialorder %v1601_v3, 0.0  ;;  %vm11537_vm9 = vnez %v11536_v34  ;;  %v4271_v2 = vsel %vm2615_vm11, 1.0, %v10716_v0  ;;  %v11569_v40 = vld [vmem:[#allocation32_spill] sm:$0xff] }
 0x230   :  { %v3689_v50 = vadd.f32 %v4263_v35, %v3688_v24  ;;  %v3758_v26 = vadd.f32 %v4264_v7, %v3757_v9  ;;  %v1595_v22 = vsub.f32 %v1270_v60, %v7258_v33  ;;  %v4272_v49 = vsel %vm2616_vm0, 1.0, %v10716_v0  ;;  %v11596_v24 = vld [vmem:[#allocation39_spill] sm:$0xff] }
 0x231   :  { %v3827_v28 = vadd.f32 %v4265_v8, %v3826_v43  ;;  %vm11539_vm4 = vnez %v11538_v27  ;;  %v1596_v17 = vsub.f32 %v1270_v60, %v7262_v1  ;;  %v1597_v44 = vsub.f32 %v1270_v60, %v7266_v53  ;;  %v11573_v27 = vld [vmem:[#allocation34_spill] sm:$0xff] }
 0x232   :  { %vm2610_vm12 = vmand %vm11539_vm4, %vm7799_vm8  ;;  %vm11541_vm11 = vnez %v11540_v18  ;;  %vm7884_vm6 = vcmp.lt.f32.partialorder %v1594_v51, 0.0  ;;  %v1606_v36 = vsub.f32 %v1285_v46, %v7254_v61  ;;  %v1607_v57 = vsub.f32 %v1285_v46, %v7258_v33  ;;  %v1295_v51 = vpop.permute.xlu1 %1294  ;;  %v11577_v18 = vld [vmem:[#allocation35_spill] sm:$0xff] }
 0x233   :  { %vm2611_vm10 = vmand %vm11541_vm11, %vm7823_vm2  ;;  %v4266_v35 = vsel %vm2610_vm12, 1.0, %v10716_v0  ;;  %vm11545_vm8 = vnez %v11544_v38  ;;  %v1608_v63 = vsub.f32 %v1285_v46, %v7262_v1  ;;  %v1609_v56 = vsub.f32 %v1285_v46, %v7266_v53  ;;  %v1290_v38 = vpop.permute.xlu0 %1289 }
 0x234   :  { %vm2612_vm0 = vmand %vm11545_vm8, %vm7832_vm15  ;;  %v4267_v52 = vsel %vm2611_vm10, 1.0, %v10716_v0  ;;  %v3621_v39 = vadd.f32 %v4266_v35, %v3620_v21  ;;  %vm11548_vm4 = vnez %v11547_v6  ;;  %vm7908_vm12 = vcmp.lt.f32.partialorder %v1595_v22, 0.0 }
 0x235   :  { %vm11546_vm2 = vmand %vm11537_vm9, %vm7777_vm3  ;;  %v4268_v41 = vsel %vm2612_vm0, 1.0, %v10716_v0  ;;  %v3690_v3 = vadd.f32 %v4267_v52, %v3689_v50  ;;  %vm11552_vm3 = vnez %v11551_v12  ;;  %vm7917_vm11 = vcmp.lt.f32.partialorder %v1596_v17, 0.0  ;;  %v11683_v12 = vld [vmem:[#allocation61_spill] sm:$0xff] }
 0x236   :  { %v4273_v62 = vsel %vm11546_vm2, 1.0, %v10716_v0  ;;  %vm2613_vm15 = vmand %vm11548_vm4, %vm7836_vm14  ;;  %v3759_v4 = vadd.f32 %v4268_v41, %v3758_v26  ;;  %vm7921_vm14 = vcmp.lt.f32.partialorder %v1597_v44, 0.0  ;;  %vm11558_vm10 = vnez %v11557_v5  ;;  %v11571_v26 = vld [vmem:[#allocation33_spill] sm:$0xff] }
 0x237   :  { %v4269_v8 = vsel %vm2613_vm15, 1.0, %v10716_v0  ;;  %vm2622_vm9 = vmand %vm11552_vm3, %vm7844_vm1  ;;  %vm7929_vm0 = vcmp.lt.f32.partialorder %v1606_v36, 0.0  ;;  %vm7933_vm2 = vcmp.lt.f32.partialorder %v1607_v57, 0.0  ;;  %v1602_v15 = vsub.f32 %v1280_v23, %v7254_v61 }
 0x238   :  { %v3828_v11 = vadd.f32 %v4269_v8, %v3827_v28  ;;  %vm2623_vm8 = vmand %vm11558_vm10, %vm7848_vm7  ;;  %vm11564_vm1 = vnez %v11563_v48  ;;  %v4278_v43 = vsel %vm2622_vm9, 1.0, %v10716_v0  ;;  %v3622_v30 = vadd.f32 %v4270_v10, %v3621_v39  ;;  %v11580_v39 = vld [vmem:[#allocation36_spill] sm:$0xff]  ;;  %v11590_v8 = vld [vmem:[#allocation38_spill] sm:$0xff] }
 0x239   :  { %vm2624_vm4 = vmand %vm11564_vm1, %vm7858_vm5  ;;  %vm7943_vm15 = vcmp.lt.f32.partialorder %v1608_v63, 0.0  ;;  %vm7947_vm7 = vcmp.lt.f32.partialorder %v1609_v56, 0.0  ;;  %vm11570_vm3 = vnez %v11569_v40  ;;  %v4279_v21 = vsel %vm2623_vm8, 1.0, %v10716_v0  ;;  %v11602_v48 = vld [vmem:[#allocation40_spill] sm:$0xff] }
 0x23a   :  { %v3691_v42 = vadd.f32 %v4271_v2, %v3690_v3  ;;  %v3760_v46 = vadd.f32 %v4272_v49, %v3759_v4  ;;  %v1603_v10 = vsub.f32 %v1280_v23, %v7258_v33  ;;  %v4280_v34 = vsel %vm2624_vm4, 1.0, %v10716_v0  ;;  %v11629_v3 = vld [vmem:[#allocation47_spill] sm:$0xff] }
 0x23b   :  { %v3829_v50 = vadd.f32 %v4273_v62, %v3828_v11  ;;  %vm11572_vm5 = vnez %v11571_v26  ;;  %v1604_v22 = vsub.f32 %v1280_v23, %v7262_v1  ;;  %v1605_v28 = vsub.f32 %v1280_v23, %v7266_v53  ;;  %v11606_v26 = vld [vmem:[#allocation42_spill] sm:$0xff] }
 0x23c   :  { %vm2618_vm9 = vmand %vm11572_vm5, %vm7884_vm6  ;;  %vm11574_vm8 = vnez %v11573_v27  ;;  %vm7969_vm10 = vcmp.lt.f32.partialorder %v1602_v15, 0.0  ;;  %v1614_v17 = vsub.f32 %v1295_v51, %v7254_v61  ;;  %v1615_v44 = vsub.f32 %v1295_v51, %v7258_v33  ;;  %v1305_v15 = vpop.permute.xlu1 %1304  ;;  %v11610_v27 = vld [vmem:[#allocation43_spill] sm:$0xff] }
 0x23d   :  { %vm2619_vm1 = vmand %vm11574_vm8, %vm7908_vm12  ;;  %v4274_v2 = vsel %vm2618_vm9, 1.0, %v10716_v0  ;;  %vm11578_vm6 = vnez %v11577_v18  ;;  %v1616_v36 = vsub.f32 %v1295_v51, %v7262_v1  ;;  %v1617_v57 = vsub.f32 %v1295_v51, %v7266_v53  ;;  %v1300_v18 = vpop.permute.xlu0 %1299 }
 0x23e   :  { %vm2620_vm4 = vmand %vm11578_vm6, %vm7917_vm11  ;;  %v4275_v35 = vsel %vm2619_vm1, 1.0, %v10716_v0  ;;  %v3623_v7 = vadd.f32 %v4274_v2, %v3622_v30  ;;  %vm11581_vm5 = vnez %v11580_v39  ;;  %vm7993_vm9 = vcmp.lt.f32.partialorder %v1603_v10, 0.0 }
 0x23f   :  { %vm11579_vm12 = vmand %vm11570_vm3, %vm7862_vm13  ;;  %v4276_v63 = vsel %vm2620_vm4, 1.0, %v10716_v0  ;;  %v3692_v56 = vadd.f32 %v4275_v35, %v3691_v42  ;;  %vm11585_vm13 = vnez %v11584_v16  ;;  %vm8002_vm8 = vcmp.lt.f32.partialorder %v1604_v22, 0.0  ;;  %v11716_v16 = vld [vmem:[#allocation69_spill] sm:$0xff] }
 0x240   :  { %v4281_v52 = vsel %vm11579_vm12, 1.0, %v10716_v0  ;;  %vm2621_vm11 = vmand %vm11581_vm5, %vm7921_vm14  ;;  %v3761_v6 = vadd.f32 %v4276_v63, %v3760_v46  ;;  %vm8006_vm14 = vcmp.lt.f32.partialorder %v1605_v28, 0.0  ;;  %vm11591_vm1 = vnez %v11590_v8  ;;  %v11604_v46 = vld [vmem:[#allocation41_spill] sm:$0xff] }
 0x241   :  { %v4277_v62 = vsel %vm2621_vm11, 1.0, %v10716_v0  ;;  %vm2630_vm3 = vmand %vm11585_vm13, %vm7929_vm0  ;;  %vm8014_vm4 = vcmp.lt.f32.partialorder %v1614_v17, 0.0  ;;  %vm8018_vm12 = vcmp.lt.f32.partialorder %v1615_v44, 0.0  ;;  %v1610_v13 = vsub.f32 %v1290_v38, %v7254_v61 }
 0x242   :  { %v3830_v60 = vadd.f32 %v4277_v62, %v3829_v50  ;;  %vm2631_vm6 = vmand %vm11591_vm1, %vm7933_vm2  ;;  %vm11597_vm0 = vnez %v11596_v24  ;;  %v4286_v11 = vsel %vm2630_vm3, 1.0, %v10716_v0  ;;  %v3624_v5 = vadd.f32 %v4278_v43, %v3623_v7  ;;  %v11613_v7 = vld [vmem:[#allocation44_spill] sm:$0xff]  ;;  %v11623_v62 = vld [vmem:[#allocation46_spill] sm:$0xff] }
 0x243   :  { %vm2632_vm5 = vmand %vm11597_vm0, %vm7943_vm15  ;;  %vm8028_vm11 = vcmp.lt.f32.partialorder %v1616_v36, 0.0  ;;  %vm8032_vm2 = vcmp.lt.f32.partialorder %v1617_v57, 0.0  ;;  %vm11603_vm13 = vnez %v11602_v48  ;;  %v4287_v30 = vsel %vm2631_vm6, 1.0, %v10716_v0  ;;  %v11635_v24 = vld [vmem:[#allocation48_spill] sm:$0xff] }
 0x244   :  { %v3693_v58 = vadd.f32 %v4279_v21, %v3692_v56  ;;  %v3762_v51 = vadd.f32 %v4280_v34, %v3761_v6  ;;  %v1611_v43 = vsub.f32 %v1290_v38, %v7258_v33  ;;  %v4288_v40 = vsel %vm2632_vm5, 1.0, %v10716_v0  ;;  %v11662_v56 = vld [vmem:[#allocation55_spill] sm:$0xff] }
 0x245   :  { %v3831_v42 = vadd.f32 %v4281_v52, %v3830_v60  ;;  %vm11605_vm15 = vnez %v11604_v46  ;;  %v1612_v10 = vsub.f32 %v1290_v38, %v7262_v1  ;;  %v1613_v50 = vsub.f32 %v1290_v38, %v7266_v53  ;;  %v11639_v46 = vld [vmem:[#allocation50_spill] sm:$0xff] }
 0x246   :  { %vm2626_vm3 = vmand %vm11605_vm15, %vm7969_vm10  ;;  %vm11607_vm6 = vnez %v11606_v26  ;;  %vm8054_vm1 = vcmp.lt.f32.partialorder %v1610_v13, 0.0  ;;  %v1622_v22 = vsub.f32 %v1305_v15, %v7254_v61  ;;  %v1623_v28 = vsub.f32 %v1305_v15, %v7258_v33  ;;  %v1315_v13 = vpop.permute.xlu1 %1314  ;;  %v11643_v26 = vld [vmem:[#allocation51_spill] sm:$0xff] }
 0x247   :  { %vm2627_vm0 = vmand %vm11607_vm6, %vm7993_vm9  ;;  %v4282_v21 = vsel %vm2626_vm3, 1.0, %v10716_v0  ;;  %vm11611_vm10 = vnez %v11610_v27  ;;  %v1624_v17 = vsub.f32 %v1305_v15, %v7262_v1  ;;  %v1625_v44 = vsub.f32 %v1305_v15, %v7266_v53  ;;  %v1310_v27 = vpop.permute.xlu0 %1309 }
 0x248   :  { %vm2628_vm5 = vmand %vm11611_vm10, %vm8002_vm8  ;;  %v4283_v2 = vsel %vm2627_vm0, 1.0, %v10716_v0  ;;  %v3625_v49 = vadd.f32 %v4282_v21, %v3624_v5  ;;  %vm11614_vm15 = vnez %v11613_v7  ;;  %vm8078_vm3 = vcmp.lt.f32.partialorder %v1611_v43, 0.0 }
 0x249   :  { %vm11612_vm9 = vmand %vm11603_vm13, %vm7947_vm7  ;;  %v4284_v36 = vsel %vm2628_vm5, 1.0, %v10716_v0  ;;  %v3694_v57 = vadd.f32 %v4283_v2, %v3693_v58  ;;  %vm11618_vm7 = vnez %v11617_v19  ;;  %vm8087_vm6 = vcmp.lt.f32.partialorder %v1612_v10, 0.0  ;;  %v11749_v19 = vld [vmem:[#allocation77_spill] sm:$0xff] }
 0x24a   :  { %v4289_v35 = vsel %vm11612_vm9, 1.0, %v10716_v0  ;;  %vm2629_vm8 = vmand %vm11614_vm15, %vm8006_vm14  ;;  %v3763_v39 = vadd.f32 %v4284_v36, %v3762_v51  ;;  %vm8091_vm14 = vcmp.lt.f32.partialorder %v1613_v50, 0.0  ;;  %vm11624_vm0 = vnez %v11623_v62  ;;  %v11637_v51 = vld [vmem:[#allocation49_spill] sm:$0xff] }
 0x24b   :  { %v4285_v52 = vsel %vm2629_vm8, 1.0, %v10716_v0  ;;  %vm2638_vm13 = vmand %vm11618_vm7, %vm8014_vm4  ;;  %vm8099_vm5 = vcmp.lt.f32.partialorder %v1622_v22, 0.0  ;;  %vm8103_vm9 = vcmp.lt.f32.partialorder %v1623_v28, 0.0  ;;  %v1618_v41 = vsub.f32 %v1300_v18, %v7254_v61 }
 0x24c   :  { %v3832_v23 = vadd.f32 %v4285_v52, %v3831_v42  ;;  %vm2639_vm10 = vmand %vm11624_vm0, %vm8018_vm12  ;;  %vm11630_vm4 = vnez %v11629_v3  ;;  %v4294_v60 = vsel %vm2638_vm13, 1.0, %v10716_v0  ;;  %v3626_v8 = vadd.f32 %v4286_v11, %v3625_v49  ;;  %v11646_v49 = vld [vmem:[#allocation52_spill] sm:$0xff]  ;;  %v11656_v52 = vld [vmem:[#allocation54_spill] sm:$0xff] }
 0x24d   :  { %vm2640_vm15 = vmand %vm11630_vm4, %vm8028_vm11  ;;  %vm8113_vm8 = vcmp.lt.f32.partialorder %v1624_v17, 0.0  ;;  %vm8117_vm12 = vcmp.lt.f32.partialorder %v1625_v44, 0.0  ;;  %vm11636_vm7 = vnez %v11635_v24  ;;  %v4295_v5 = vsel %vm2639_vm10, 1.0, %v10716_v0  ;;  %v11668_v3 = vld [vmem:[#allocation56_spill] sm:$0xff] }
 0x24e   :  { %v3695_v9 = vadd.f32 %v4287_v30, %v3694_v57  ;;  %v3764_v15 = vadd.f32 %v4288_v40, %v3763_v39  ;;  %v1619_v11 = vsub.f32 %v1300_v18, %v7258_v33  ;;  %v4296_v48 = vsel %vm2640_vm15, 1.0, %v10716_v0  ;;  %v11695_v57 = vld [vmem:[#allocation63_spill] sm:$0xff] }
 0x24f   :  { %v3833_v58 = vadd.f32 %v4289_v35, %v3832_v23  ;;  %vm11638_vm11 = vnez %v11637_v51  ;;  %v1620_v43 = vsub.f32 %v1300_v18, %v7262_v1  ;;  %v1621_v42 = vsub.f32 %v1300_v18, %v7266_v53  ;;  %v11672_v51 = vld [vmem:[#allocation58_spill] sm:$0xff] }
 0x250   :  { %vm2634_vm13 = vmand %vm11638_vm11, %vm8054_vm1  ;;  %vm11640_vm10 = vnez %v11639_v46  ;;  %vm8139_vm0 = vcmp.lt.f32.partialorder %v1618_v41, 0.0  ;;  %v1630_v10 = vsub.f32 %v1315_v13, %v7254_v61  ;;  %v1631_v50 = vsub.f32 %v1315_v13, %v7258_v33  ;;  %v1325_v41 = vpop.permute.xlu1 %1324  ;;  %v11676_v46 = vld [vmem:[#allocation59_spill] sm:$0xff] }
 0x251   :  { %vm2635_vm4 = vmand %vm11640_vm10, %vm8078_vm3  ;;  %v4290_v30 = vsel %vm2634_vm13, 1.0, %v10716_v0  ;;  %vm11644_vm1 = vnez %v11643_v26  ;;  %v1632_v22 = vsub.f32 %v1315_v13, %v7262_v1  ;;  %v1633_v28 = vsub.f32 %v1315_v13, %v7266_v53  ;;  %v1320_v26 = vpop.permute.xlu0 %1319 }
 0x252   :  { %vm2636_vm15 = vmand %vm11644_vm1, %vm8087_vm6  ;;  %v4291_v21 = vsel %vm2635_vm4, 1.0, %v10716_v0  ;;  %v3627_v34 = vadd.f32 %v4290_v30, %v3626_v8  ;;  %vm11647_vm11 = vnez %v11646_v49  ;;  %vm8163_vm13 = vcmp.lt.f32.partialorder %v1619_v11, 0.0 }
 0x253   :  { %vm11645_vm3 = vmand %vm11636_vm7, %vm8032_vm2  ;;  %v4292_v17 = vsel %vm2636_vm15, 1.0, %v10716_v0  ;;  %v3696_v44 = vadd.f32 %v4291_v21, %v3695_v9  ;;  %vm11651_vm2 = vnez %v11650_v14  ;;  %vm8172_vm10 = vcmp.lt.f32.partialorder %v1620_v43, 0.0  ;;  %v11782_v14 = vld [vmem:[#allocation85_spill] sm:$0xff] }
 0x254   :  { %v4297_v2 = vsel %vm11645_vm3, 1.0, %v10716_v0  ;;  %vm2637_vm6 = vmand %vm11647_vm11, %vm8091_vm14  ;;  %v3765_v7 = vadd.f32 %v4292_v17, %v3764_v15  ;;  %vm8176_vm14 = vcmp.lt.f32.partialorder %v1621_v42, 0.0  ;;  %vm11657_vm4 = vnez %v11656_v52  ;;  %v11670_v15 = vld [vmem:[#allocation57_spill] sm:$0xff] }
 0x255   :  { %v4293_v35 = vsel %vm2637_vm6, 1.0, %v10716_v0  ;;  %vm2646_vm7 = vmand %vm11651_vm2, %vm8099_vm5  ;;  %vm8184_vm15 = vcmp.lt.f32.partialorder %v1630_v10, 0.0  ;;  %vm8188_vm3 = vcmp.lt.f32.partialorder %v1631_v50, 0.0  ;;  %v1626_v63 = vsub.f32 %v1310_v27, %v7254_v61 }
 0x256   :  { %v3834_v38 = vadd.f32 %v4293_v35, %v3833_v58  ;;  %vm2647_vm1 = vmand %vm11657_vm4, %vm8103_vm9  ;;  %vm11663_vm5 = vnez %v11662_v56  ;;  %v4302_v23 = vsel %vm2646_vm7, 1.0, %v10716_v0  ;;  %v3628_v62 = vadd.f32 %v4294_v60, %v3627_v34  ;;  %v11679_v34 = vld [vmem:[#allocation60_spill] sm:$0xff]  ;;  %v11689_v35 = vld [vmem:[#allocation62_spill] sm:$0xff] }
 0x257   :  { %vm2648_vm11 = vmand %vm11663_vm5, %vm8113_vm8  ;;  %vm8198_vm6 = vcmp.lt.f32.partialorder %v1632_v22, 0.0  ;;  %vm8202_vm9 = vcmp.lt.f32.partialorder %v1633_v28, 0.0  ;;  %vm11669_vm2 = vnez %v11668_v3  ;;  %v4303_v8 = vsel %vm2647_vm1, 1.0, %v10716_v0  ;;  %v11701_v56 = vld [vmem:[#allocation64_spill] sm:$0xff] }
 0x258   :  { %v3697_v4 = vadd.f32 %v4295_v5, %v3696_v44  ;;  %v3766_v13 = vadd.f32 %v4296_v48, %v3765_v7  ;;  %v1627_v60 = vsub.f32 %v1310_v27, %v7258_v33  ;;  %v4304_v24 = vsel %vm2648_vm11, 1.0, %v10716_v0  ;;  %v11728_v44 = vld [vmem:[#allocation71_spill] sm:$0xff] }
 0x259   :  { %v3835_v9 = vadd.f32 %v4297_v2, %v3834_v38  ;;  %vm11671_vm8 = vnez %v11670_v15  ;;  %v1628_v11 = vsub.f32 %v1310_v27, %v7262_v1  ;;  %v1629_v58 = vsub.f32 %v1310_v27, %v7266_v53  ;;  %v11705_v15 = vld [vmem:[#allocation66_spill] sm:$0xff] }
 0x25a   :  { %vm2642_vm7 = vmand %vm11671_vm8, %vm8139_vm0  ;;  %vm11673_vm1 = vnez %v11672_v51  ;;  %vm8224_vm4 = vcmp.lt.f32.partialorder %v1626_v63, 0.0  ;;  %v1638_v43 = vsub.f32 %v1325_v41, %v7254_v61  ;;  %v1639_v42 = vsub.f32 %v1325_v41, %v7258_v33  ;;  %v1335_v63 = vpop.permute.xlu1 %1334  ;;  %v11709_v51 = vld [vmem:[#allocation67_spill] sm:$0xff] }
 0x25b   :  { %vm2643_vm5 = vmand %vm11673_vm1, %vm8163_vm13  ;;  %v4298_v5 = vsel %vm2642_vm7, 1.0, %v10716_v0  ;;  %vm11677_vm0 = vnez %v11676_v46  ;;  %v1640_v10 = vsub.f32 %v1325_v41, %v7262_v1  ;;  %v1641_v50 = vsub.f32 %v1325_v41, %v7266_v53  ;;  %v1330_v46 = vpop.permute.xlu0 %1329 }
 0x25c   :  { %vm2644_vm11 = vmand %vm11677_vm0, %vm8172_vm10  ;;  %v4299_v30 = vsel %vm2643_vm5, 1.0, %v10716_v0  ;;  %v3629_v40 = vadd.f32 %v4298_v5, %v3628_v62  ;;  %vm11680_vm8 = vnez %v11679_v34  ;;  %vm8248_vm7 = vcmp.lt.f32.partialorder %v1627_v60, 0.0 }
 0x25d   :  { %vm11678_vm13 = vmand %vm11669_vm2, %vm8117_vm12  ;;  %v4300_v22 = vsel %vm2644_vm11, 1.0, %v10716_v0  ;;  %v3698_v28 = vadd.f32 %v4299_v30, %v3697_v4  ;;  %vm11684_vm12 = vnez %v11683_v12  ;;  %vm8257_vm1 = vcmp.lt.f32.partialorder %v1628_v11, 0.0  ;;  %v11815_v12 = vld [vmem:[#allocation93_spill] sm:$0xff] }
 0x25e   :  { %v4305_v21 = vsel %vm11678_vm13, 1.0, %v10716_v0  ;;  %vm2645_vm10 = vmand %vm11680_vm8, %vm8176_vm14  ;;  %v3767_v49 = vadd.f32 %v4300_v22, %v3766_v13  ;;  %vm8261_vm14 = vcmp.lt.f32.partialorder %v1629_v58, 0.0  ;;  %vm11690_vm5 = vnez %v11689_v35  ;;  %v11703_v13 = vld [vmem:[#allocation65_spill] sm:$0xff] }
 0x25f   :  { %v4301_v2 = vsel %vm2645_vm10, 1.0, %v10716_v0  ;;  %vm2654_vm2 = vmand %vm11684_vm12, %vm8184_vm15  ;;  %vm8269_vm11 = vcmp.lt.f32.partialorder %v1638_v43, 0.0  ;;  %vm8273_vm13 = vcmp.lt.f32.partialorder %v1639_v42, 0.0  ;;  %v1634_v36 = vsub.f32 %v1320_v26, %v7254_v61 }
 0x260   :  { %v3836_v18 = vadd.f32 %v4301_v2, %v3835_v9  ;;  %vm2655_vm0 = vmand %vm11690_vm5, %vm8188_vm3  ;;  %vm11696_vm15 = vnez %v11695_v57  ;;  %v4310_v38 = vsel %vm2654_vm2, 1.0, %v10716_v0  ;;  %v3630_v52 = vadd.f32 %v4302_v23, %v3629_v40  ;;  %v11712_v40 = vld [vmem:[#allocation68_spill] sm:$0xff]  ;;  %v11722_v2 = vld [vmem:[#allocation70_spill] sm:$0xff] }
 0x261   :  { %vm2656_vm8 = vmand %vm11696_vm15, %vm8198_vm6  ;;  %vm8283_vm10 = vcmp.lt.f32.partialorder %v1640_v10, 0.0  ;;  %vm8287_vm3 = vcmp.lt.f32.partialorder %v1641_v50, 0.0  ;;  %vm11702_vm12 = vnez %v11701_v56  ;;  %v4311_v62 = vsel %vm2655_vm0, 1.0, %v10716_v0  ;;  %v11734_v57 = vld [vmem:[#allocation72_spill] sm:$0xff] }
 0x262   :  { %v3699_v6 = vadd.f32 %v4303_v8, %v3698_v28  ;;  %v3768_v41 = vadd.f32 %v4304_v24, %v3767_v49  ;;  %v1635_v23 = vsub.f32 %v1320_v26, %v7258_v33  ;;  %v4312_v3 = vsel %vm2656_vm8, 1.0, %v10716_v0  ;;  %v11761_v28 = vld [vmem:[#allocation79_spill] sm:$0xff] }
 0x263   :  { %v3837_v4 = vadd.f32 %v4305_v21, %v3836_v18  ;;  %vm11704_vm6 = vnez %v11703_v13  ;;  %v1636_v60 = vsub.f32 %v1320_v26, %v7262_v1  ;;  %v1637_v9 = vsub.f32 %v1320_v26, %v7266_v53  ;;  %v11738_v13 = vld [vmem:[#allocation74_spill] sm:$0xff] }
 0x264   :  { %vm2650_vm2 = vmand %vm11704_vm6, %vm8224_vm4  ;;  %vm11706_vm0 = vnez %v11705_v15  ;;  %vm8309_vm5 = vcmp.lt.f32.partialorder %v1634_v36, 0.0  ;;  %v1646_v11 = vsub.f32 %v1335_v63, %v7254_v61  ;;  %v1647_v58 = vsub.f32 %v1335_v63, %v7258_v33  ;;  %v1345_v36 = vpop.permute.xlu1 %1344  ;;  %v11742_v15 = vld [vmem:[#allocation75_spill] sm:$0xff] }
 0x265   :  { %vm2651_vm15 = vmand %vm11706_vm0, %vm8248_vm7  ;;  %v4306_v8 = vsel %vm2650_vm2, 1.0, %v10716_v0  ;;  %vm11710_vm4 = vnez %v11709_v51  ;;  %v1648_v43 = vsub.f32 %v1335_v63, %v7262_v1  ;;  %v1649_v42 = vsub.f32 %v1335_v63, %v7266_v53  ;;  %v1340_v51 = vpop.permute.xlu0 %1339 }
 0x266   :  { %vm2652_vm8 = vmand %vm11710_vm4, %vm8257_vm1  ;;  %v4307_v5 = vsel %vm2651_vm15, 1.0, %v10716_v0  ;;  %v3631_v48 = vadd.f32 %v4306_v8, %v3630_v52  ;;  %vm11713_vm6 = vnez %v11712_v40  ;;  %vm8333_vm2 = vcmp.lt.f32.partialorder %v1635_v23, 0.0 }
 0x267   :  { %vm11711_vm7 = vmand %vm11702_vm12, %vm8202_vm9  ;;  %v4308_v10 = vsel %vm2652_vm8, 1.0, %v10716_v0  ;;  %v3700_v50 = vadd.f32 %v4307_v5, %v3699_v6  ;;  %vm11717_vm9 = vnez %v11716_v16  ;;  %vm8342_vm0 = vcmp.lt.f32.partialorder %v1636_v60, 0.0 }
 0x268   :  { %v4313_v30 = vsel %vm11711_vm7, 1.0, %v10716_v0  ;;  %vm2653_vm1 = vmand %vm11713_vm6, %vm8261_vm14  ;;  %v3769_v34 = vadd.f32 %v4308_v10, %v3768_v41  ;;  %vm8346_vm14 = vcmp.lt.f32.partialorder %v1637_v9, 0.0  ;;  %vm11723_vm15 = vnez %v11722_v2  ;;  %v11736_v41 = vld [vmem:[#allocation73_spill] sm:$0xff] }
 0x269   :  { %v4309_v21 = vsel %vm2653_vm1, 1.0, %v10716_v0  ;;  %vm2662_vm12 = vmand %vm11717_vm9, %vm8269_vm11  ;;  %vm8354_vm8 = vcmp.lt.f32.partialorder %v1646_v11, 0.0  ;;  %vm8358_vm7 = vcmp.lt.f32.partialorder %v1647_v58, 0.0  ;;  %v1642_v17 = vsub.f32 %v1330_v46, %v7254_v61 }
 0x26a   :  { %v3838_v27 = vadd.f32 %v4309_v21, %v3837_v4  ;;  %vm2663_vm4 = vmand %vm11723_vm15, %vm8273_vm13  ;;  %vm11729_vm11 = vnez %v11728_v44  ;;  %v4318_v18 = vsel %vm2662_vm12, 1.0, %v10716_v0  ;;  %v3632_v35 = vadd.f32 %v4310_v38, %v3631_v48  ;;  %v11745_v48 = vld [vmem:[#allocation76_spill] sm:$0xff]  ;;  %v11755_v21 = vld [vmem:[#allocation78_spill] sm:$0xff] }
 0x26b   :  { %vm2664_vm6 = vmand %vm11729_vm11, %vm8283_vm10  ;;  %vm8368_vm1 = vcmp.lt.f32.partialorder %v1648_v43, 0.0  ;;  %vm8372_vm13 = vcmp.lt.f32.partialorder %v1649_v42, 0.0  ;;  %vm11735_vm9 = vnez %v11734_v57  ;;  %v4319_v52 = vsel %vm2663_vm4, 1.0, %v10716_v0  ;;  %v11767_v44 = vld [vmem:[#allocation80_spill] sm:$0xff] }
 0x26c   :  { %v3701_v39 = vadd.f32 %v4311_v62, %v3700_v50  ;;  %v3770_v63 = vadd.f32 %v4312_v3, %v3769_v34  ;;  %v1643_v38 = vsub.f32 %v1330_v46, %v7258_v33  ;;  %v4320_v56 = vsel %vm2664_vm6, 1.0, %v10716_v0  ;;  %v11794_v50 = vld [vmem:[#allocation87_spill] sm:$0xff] }
 0x26d   :  { %v3839_v6 = vadd.f32 %v4313_v30, %v3838_v27  ;;  %vm11737_vm10 = vnez %v11736_v41  ;;  %v1644_v23 = vsub.f32 %v1330_v46, %v7262_v1  ;;  %v1645_v4 = vsub.f32 %v1330_v46, %v7266_v53  ;;  %v11771_v41 = vld [vmem:[#allocation82_spill] sm:$0xff] }
 0x26e   :  { %vm2658_vm12 = vmand %vm11737_vm10, %vm8309_vm5  ;;  %vm11739_vm4 = vnez %v11738_v13  ;;  %vm8394_vm15 = vcmp.lt.f32.partialorder %v1642_v17, 0.0  ;;  %v1654_v60 = vsub.f32 %v1345_v36, %v7254_v61  ;;  %v1655_v9 = vsub.f32 %v1345_v36, %v7258_v33  ;;  %v1355_v17 = vpop.permute.xlu1 %1354  ;;  %v11775_v13 = vld [vmem:[#allocation83_spill] sm:$0xff] }
 0x26f   :  { %vm2659_vm11 = vmand %vm11739_vm4, %vm8333_vm2  ;;  %v4314_v62 = vsel %vm2658_vm12, 1.0, %v10716_v0  ;;  %vm11743_vm5 = vnez %v11742_v15  ;;  %v1656_v11 = vsub.f32 %v1345_v36, %v7262_v1  ;;  %v1657_v58 = vsub.f32 %v1345_v36, %v7266_v53  ;;  %v1350_v15 = vpop.permute.xlu0 %1349 }
 0x270   :  { %vm2660_vm6 = vmand %vm11743_vm5, %vm8342_vm0  ;;  %v4315_v8 = vsel %vm2659_vm11, 1.0, %v10716_v0  ;;  %v3633_v24 = vadd.f32 %v4314_v62, %v3632_v35  ;;  %vm11746_vm10 = vnez %v11745_v48  ;;  %vm8418_vm12 = vcmp.lt.f32.partialorder %v1643_v38, 0.0 }
 0x271   :  { %vm11744_vm2 = vmand %vm11735_vm9, %vm8287_vm3  ;;  %v4316_v43 = vsel %vm2660_vm6, 1.0, %v10716_v0  ;;  %v3702_v42 = vadd.f32 %v4315_v8, %v3701_v39  ;;  %vm11750_vm3 = vnez %v11749_v19  ;;  %vm8427_vm4 = vcmp.lt.f32.partialorder %v1644_v23, 0.0 }
 0x272   :  { %v4321_v5 = vsel %vm11744_vm2, 1.0, %v10716_v0  ;;  %vm2661_vm0 = vmand %vm11746_vm10, %vm8346_vm14  ;;  %v3771_v40 = vadd.f32 %v4316_v43, %v3770_v63  ;;  %vm8431_vm14 = vcmp.lt.f32.partialorder %v1645_v4, 0.0  ;;  %vm11756_vm11 = vnez %v11755_v21  ;;  %v11769_v63 = vld [vmem:[#allocation81_spill] sm:$0xff] }
 0x273   :  { %v4317_v30 = vsel %vm2661_vm0, 1.0, %v10716_v0  ;;  %vm2670_vm9 = vmand %vm11750_vm3, %vm8354_vm8  ;;  %vm8439_vm6 = vcmp.lt.f32.partialorder %v1654_v60, 0.0  ;;  %vm8443_vm2 = vcmp.lt.f32.partialorder %v1655_v9, 0.0  ;;  %v1650_v22 = vsub.f32 %v1340_v51, %v7254_v61 }
 0x274   :  { %v3840_v26 = vadd.f32 %v4317_v30, %v3839_v6  ;;  %vm2671_vm5 = vmand %vm11756_vm11, %vm8358_vm7  ;;  %vm11762_vm8 = vnez %v11761_v28  ;;  %v4326_v27 = vsel %vm2670_vm9, 1.0, %v10716_v0  ;;  %v3634_v2 = vadd.f32 %v4318_v18, %v3633_v24  ;;  %v11778_v24 = vld [vmem:[#allocation84_spill] sm:$0xff]  ;;  %v11788_v30 = vld [vmem:[#allocation86_spill] sm:$0xff] }
 0x275   :  { %vm2672_vm10 = vmand %vm11762_vm8, %vm8368_vm1  ;;  %vm8453_vm0 = vcmp.lt.f32.partialorder %v1656_v11, 0.0  ;;  %vm8457_vm7 = vcmp.lt.f32.partialorder %v1657_v58, 0.0  ;;  %vm11768_vm3 = vnez %v11767_v44  ;;  %v4327_v35 = vsel %vm2671_vm5, 1.0, %v10716_v0  ;;  %v11800_v28 = vld [vmem:[#allocation88_spill] sm:$0xff] }
 0x276   :  { %v3703_v7 = vadd.f32 %v4319_v52, %v3702_v42  ;;  %v3772_v36 = vadd.f32 %v4320_v56, %v3771_v40  ;;  %v1651_v18 = vsub.f32 %v1340_v51, %v7258_v33  ;;  %v4328_v57 = vsel %vm2672_vm10, 1.0, %v10716_v0  ;;  %v11827_v42 = vld [vmem:[#allocation95_spill] sm:$0xff] }
 0x277   :  { %v3841_v39 = vadd.f32 %v4321_v5, %v3840_v26  ;;  %vm11770_vm1 = vnez %v11769_v63  ;;  %v1652_v38 = vsub.f32 %v1340_v51, %v7262_v1  ;;  %v1653_v6 = vsub.f32 %v1340_v51, %v7266_v53  ;;  %v11804_v63 = vld [vmem:[#allocation90_spill] sm:$0xff] }
 0x278   :  { %vm2666_vm9 = vmand %vm11770_vm1, %vm8394_vm15  ;;  %vm11772_vm5 = vnez %v11771_v41  ;;  %vm8479_vm11 = vcmp.lt.f32.partialorder %v1650_v22, 0.0  ;;  %v1662_v23 = vsub.f32 %v1355_v17, %v7254_v61  ;;  %v1663_v4 = vsub.f32 %v1355_v17, %v7258_v33  ;;  %v1365_v22 = vpop.permute.xlu1 %1364  ;;  %v11808_v41 = vld [vmem:[#allocation91_spill] sm:$0xff] }
 0x279   :  { %vm2667_vm8 = vmand %vm11772_vm5, %vm8418_vm12  ;;  %v4322_v52 = vsel %vm2666_vm9, 1.0, %v10716_v0  ;;  %vm11776_vm15 = vnez %v11775_v13  ;;  %v1664_v60 = vsub.f32 %v1355_v17, %v7262_v1  ;;  %v1665_v9 = vsub.f32 %v1355_v17, %v7266_v53  ;;  %v1360_v13 = vpop.permute.xlu0 %1359 }
 0x27a   :  { %vm2668_vm10 = vmand %vm11776_vm15, %vm8427_vm4  ;;  %v4323_v62 = vsel %vm2667_vm8, 1.0, %v10716_v0  ;;  %v3635_v3 = vadd.f32 %v4322_v52, %v3634_v2  ;;  %vm11779_vm1 = vnez %v11778_v24  ;;  %vm8503_vm9 = vcmp.lt.f32.partialorder %v1651_v18, 0.0 }
 0x27b   :  { %vm11777_vm12 = vmand %vm11768_vm3, %vm8372_vm13  ;;  %v4324_v11 = vsel %vm2668_vm10, 1.0, %v10716_v0  ;;  %v3704_v58 = vadd.f32 %v4323_v62, %v3703_v7  ;;  %vm11783_vm13 = vnez %v11782_v14  ;;  %vm8512_vm5 = vcmp.lt.f32.partialorder %v1652_v38, 0.0 }
 0x27c   :  { %v4329_v8 = vsel %vm11777_vm12, 1.0, %v10716_v0  ;;  %vm2669_vm4 = vmand %vm11779_vm1, %vm8431_vm14  ;;  %v3773_v48 = vadd.f32 %v4324_v11, %v3772_v36  ;;  %vm8516_vm14 = vcmp.lt.f32.partialorder %v1653_v6, 0.0  ;;  %vm11789_vm8 = vnez %v11788_v30  ;;  %v11802_v36 = vld [vmem:[#allocation89_spill] sm:$0xff] }
 0x27d   :  { %v4325_v5 = vsel %vm2669_vm4, 1.0, %v10716_v0  ;;  %vm2678_vm3 = vmand %vm11783_vm13, %vm8439_vm6  ;;  %vm8524_vm10 = vcmp.lt.f32.partialorder %v1662_v23, 0.0  ;;  %vm8528_vm12 = vcmp.lt.f32.partialorder %v1663_v4, 0.0  ;;  %v1658_v10 = vsub.f32 %v1350_v15, %v7254_v61 }
 0x27e   :  { %v3842_v46 = vadd.f32 %v4325_v5, %v3841_v39  ;;  %vm2679_vm15 = vmand %vm11789_vm8, %vm8443_vm2  ;;  %vm11795_vm6 = vnez %v11794_v50  ;;  %v4334_v26 = vsel %vm2678_vm3, 1.0, %v10716_v0  ;;  %v3636_v21 = vadd.f32 %v4326_v27, %v3635_v3  ;;  %v11811_v3 = vld [vmem:[#allocation92_spill] sm:$0xff]  ;;  %v11821_v5 = vld [vmem:[#allocation94_spill] sm:$0xff] }
 0x27f   :  { %vm2680_vm1 = vmand %vm11795_vm6, %vm8453_vm0  ;;  %vm8538_vm4 = vcmp.lt.f32.partialorder %v1664_v60, 0.0  ;;  %vm8542_vm2 = vcmp.lt.f32.partialorder %v1665_v9, 0.0  ;;  %vm11801_vm13 = vnez %v11800_v28  ;;  %v4335_v2 = vsel %vm2679_vm15, 1.0, %v10716_v0  ;;  %v11833_v50 = vld [vmem:[#allocation96_spill] sm:$0xff] }
 0x280   :  { %v3705_v49 = vadd.f32 %v4327_v35, %v3704_v58  ;;  %v3774_v17 = vadd.f32 %v4328_v57, %v3773_v48  ;;  %v1659_v27 = vsub.f32 %v1350_v15, %v7258_v33  ;;  %v4336_v44 = vsel %vm2680_vm1, 1.0, %v10716_v0  ;;  %v11855_v58 = vld [vmem:[#allocation103_spill] sm:$0xff] }
 0x281   :  { %v3843_v7 = vadd.f32 %v4329_v8, %v3842_v46  ;;  %vm11803_vm0 = vnez %v11802_v36  ;;  %v1660_v18 = vsub.f32 %v1350_v15, %v7262_v1  ;;  %v1661_v39 = vsub.f32 %v1350_v15, %v7266_v53 }
 0x282   :  { %vm2674_vm3 = vmand %vm11803_vm0, %vm8479_vm11  ;;  %vm11805_vm15 = vnez %v11804_v63  ;;  %vm8564_vm8 = vcmp.lt.f32.partialorder %v1658_v10, 0.0  ;;  %v1670_v38 = vsub.f32 %v1365_v22, %v7254_v61  ;;  %v1671_v6 = vsub.f32 %v1365_v22, %v7258_v33  ;;  %v1375_v10 = vpop.permute.xlu1 %1374 }
 0x283   :  { %vm2675_vm6 = vmand %vm11805_vm15, %vm8503_vm9  ;;  %v4330_v35 = vsel %vm2674_vm3, 1.0, %v10716_v0  ;;  %vm11809_vm11 = vnez %v11808_v41  ;;  %v1672_v23 = vsub.f32 %v1365_v22, %v7262_v1  ;;  %v1673_v4 = vsub.f32 %v1365_v22, %v7266_v53  ;;  %v11843_v41 = vld [vmem:[#allocation100_spill] sm:$0xff] }
 0x284   :  { %vm2676_vm1 = vmand %vm11809_vm11, %vm8512_vm5  ;;  %v4331_v52 = vsel %vm2675_vm6, 1.0, %v10716_v0  ;;  %v3637_v56 = vadd.f32 %v4330_v35, %v3636_v21  ;;  %vm11812_vm0 = vnez %v11811_v3  ;;  %vm8588_vm3 = vcmp.lt.f32.partialorder %v1659_v27, 0.0  ;;  %v11847_v3 = vld [vmem:[#allocation101_spill] sm:$0xff] }
 0x285   :  { %vm11810_vm9 = vmand %vm11801_vm13, %vm8457_vm7  ;;  %v4332_v60 = vsel %vm2676_vm1, 1.0, %v10716_v0  ;;  %v3706_v9 = vadd.f32 %v4331_v52, %v3705_v49  ;;  %vm11816_vm7 = vnez %v11815_v12  ;;  %vm8597_vm15 = vcmp.lt.f32.partialorder %v1660_v18, 0.0  ;;  %v11980_v12 = vld [vmem:[#allocation133_spill] sm:$0xff] }
 0x286   :  { %v4337_v62 = vsel %vm11810_vm9, 1.0, %v10716_v0  ;;  %vm2677_vm5 = vmand %vm11812_vm0, %vm8516_vm14  ;;  %v3775_v24 = vadd.f32 %v4332_v60, %v3774_v17  ;;  %vm8601_vm14 = vcmp.lt.f32.partialorder %v1661_v39, 0.0  ;;  %vm11822_vm6 = vnez %v11821_v5  ;;  %v11835_v17 = vld [vmem:[#allocation97_spill] sm:$0xff]  ;;  %v11841_v39 = vld [vmem:[#allocation99_spill] sm:$0xff] }
 0x287   :  { %v4333_v8 = vsel %vm2677_vm5, 1.0, %v10716_v0  ;;  %vm2686_vm13 = vmand %vm11816_vm7, %vm8524_vm10  ;;  %vm8609_vm1 = vcmp.lt.f32.partialorder %v1670_v38, 0.0  ;;  %vm8613_vm9 = vcmp.lt.f32.partialorder %v1671_v6, 0.0  ;;  %v1666_v43 = vsub.f32 %v1360_v13, %v7254_v61  ;;  %v1370_v6 = vpop.permute.xlu0 %1369 }
 0x288   :  { %v3844_v51 = vadd.f32 %v4333_v8, %v3843_v7  ;;  %vm2687_vm11 = vmand %vm11822_vm6, %vm8528_vm12  ;;  %vm11828_vm10 = vnez %v11827_v42  ;;  %v4342_v46 = vsel %vm2686_vm13, 1.0, %v10716_v0  ;;  %v3638_v30 = vadd.f32 %v4334_v26, %v3637_v56  ;;  %v11851_v8 = vld [vmem:[#allocation102_spill] sm:$0xff]  ;;  %v1385_v42 = vpop.permute.xlu1 %1384 }
 0x289   :  { %vm2688_vm0 = vmand %vm11828_vm10, %vm8538_vm4  ;;  %vm8623_vm5 = vcmp.lt.f32.partialorder %v1672_v23, 0.0  ;;  %vm8627_vm12 = vcmp.lt.f32.partialorder %v1673_v4, 0.0  ;;  %vm11834_vm7 = vnez %v11833_v50  ;;  %v4343_v21 = vsel %vm2687_vm11, 1.0, %v10716_v0  ;;  %v11921_v23 = vld [vmem:[#allocation119_spill] sm:$0xff] }
 0x28a   :  { %vm2689_vm6 = vmand %vm11834_vm7, %vm8542_vm2  ;;  %v3707_v34 = vadd.f32 %v4335_v2, %v3706_v9  ;;  %v3776_v22 = vadd.f32 %v4336_v44, %v3775_v24  ;;  %v1667_v26 = vsub.f32 %v1360_v13, %v7258_v33  ;;  %v4344_v28 = vsel %vm2688_vm0, 1.0, %v10716_v0  ;;  %v11837_v2 = vld [vmem:[#allocation98_spill] sm:$0xff]  ;;  %v11888_v9 = vld [vmem:[#allocation111_spill] sm:$0xff] }
 0x28b   :  { %v3845_v49 = vadd.f32 %v4337_v62, %v3844_v51  ;;  %vm11836_vm4 = vnez %v11835_v17  ;;  %v1668_v27 = vsub.f32 %v1360_v13, %v7262_v1  ;;  %v1669_v16 = vsub.f32 %v1360_v13, %v7266_v53 }
 0x28c   :  { %vm2682_vm13 = vmand %vm11836_vm4, %vm8564_vm8  ;;  %v4345_v7 = vsel %vm2689_vm6, 1.0, %v10716_v0  ;;  %vm11838_vm2 = vnez %v11837_v2  ;;  %vm8650_vm10 = vcmp.lt.f32.partialorder %v1666_v43, 0.0  ;;  %v1678_v18 = vsub.f32 %v1375_v10, %v7254_v61 }
 0x28d   :  { %vm2683_vm11 = vmand %vm11838_vm2, %vm8588_vm3  ;;  %v4338_v44 = vsel %vm2682_vm13, 1.0, %v10716_v0  ;;  %vm11842_vm8 = vnez %v11841_v39  ;;  %v1679_v57 = vsub.f32 %v1375_v10, %v7258_v33  ;;  %v1680_v38 = vsub.f32 %v1375_v10, %v7262_v1  ;;  %v11876_v39 = vld [vmem:[#allocation108_spill] sm:$0xff] }
 0x28e   :  { %vm2684_vm0 = vmand %vm11842_vm8, %vm8597_vm15  ;;  %v4339_v63 = vsel %vm2683_vm11, 1.0, %v10716_v0  ;;  %v3639_v35 = vadd.f32 %v4338_v44, %v3638_v30  ;;  %vm11844_vm3 = vnez %v11843_v41  ;;  %vm8667_vm6 = vcmp.lt.f32.partialorder %v1667_v26, 0.0 }
 0x28f   :  { %vm2685_vm7 = vmand %vm11844_vm3, %vm8601_vm14  ;;  %v4340_v52 = vsel %vm2684_vm0, 1.0, %v10716_v0  ;;  %v3708_v56 = vadd.f32 %v4339_v63, %v3707_v34  ;;  %v1681_v4 = vsub.f32 %v1375_v10, %v7266_v53  ;;  %vm11848_vm15 = vnez %v11847_v3  ;;  %v11868_v34 = vld [vmem:[#allocation105_spill] sm:$0xff] }
 0x290   :  { %v4341_v13 = vsel %vm2685_vm7, 1.0, %v10716_v0  ;;  %v3777_v62 = vadd.f32 %v4340_v52, %v3776_v22  ;;  %v3640_v60 = vadd.f32 %v4342_v46, %v3639_v35  ;;  %vm8677_vm13 = vcmp.lt.f32.partialorder %v1668_v27, 0.0  ;;  %v11863_v46 = vld [vmem:[#allocation104_spill] sm:$0xff]  ;;  %v11880_v52 = vld [vmem:[#allocation109_spill] sm:$0xff] }
 0x291   :  { %v3846_v15 = vadd.f32 %v4341_v13, %v3845_v49  ;;  %vm11852_vm14 = vnez %v11851_v8  ;;  %v3709_v24 = vadd.f32 %v4343_v21, %v3708_v56  ;;  %vm8685_vm11 = vcmp.lt.f32.partialorder %v1669_v16, 0.0  ;;  %v11874_v16 = vld [vmem:[#allocation107_spill] sm:$0xff]  ;;  %v11884_v13 = vld [vmem:[#allocation110_spill] sm:$0xff]  ;;  %v12014_v3 = vld [vmem:[#allocation141_spill] sm:$0xff] }
 0x292   :  { %vm2695_vm2 = vmand %vm11852_vm14, %vm8613_vm9  ;;  %v1674_v11 = vsub.f32 %v1370_v6, %v7254_v61  ;;  %vm11856_vm8 = vnez %v11855_v58  ;;  %v3778_v51 = vadd.f32 %v4344_v28, %v3777_v62  ;;  %vm8694_vm3 = vcmp.lt.f32.partialorder %v1678_v18, 0.0  ;;  %v11870_v28 = vld [vmem:[#allocation106_spill] sm:$0xff]  ;;  %v1380_v18 = vpop.permute.xlu0 %1379  ;;  %v11896_v58 = vld [vmem:[#allocation112_spill] sm:$0xff] }
 0x293   :  { %vm2696_vm0 = vmand %vm11856_vm8, %vm8623_vm5  ;;  %vm8698_vm7 = vcmp.lt.f32.partialorder %v1679_v57, 0.0  ;;  %vm8702_vm9 = vcmp.lt.f32.partialorder %v1680_v38, 0.0  ;;  %vm11864_vm14 = vnez %v11863_v46  ;;  %v3847_v40 = vadd.f32 %v4345_v7, %v3846_v15  ;;  %v11954_v57 = vld [vmem:[#allocation127_spill] sm:$0xff] }
 0x294   :  { %vm2697_vm4 = vmand %vm11864_vm14, %vm8627_vm12  ;;  %vm8716_vm8 = vcmp.lt.f32.partialorder %v1681_v4, 0.0  ;;  %v1675_v50 = vsub.f32 %v1370_v6, %v7258_v33  ;;  %v4351_v21 = vsel %vm2695_vm2, 1.0, %v10716_v0  ;;  %v4352_v19 = vsel %vm2696_vm0, 1.0, %v10716_v0 }
 0x295   :  { %vm11865_vm5 = vmand %vm11848_vm15, %vm8609_vm1  ;;  %vm11869_vm12 = vnez %v11868_v34  ;;  %v1676_v48 = vsub.f32 %v1370_v6, %v7262_v1  ;;  %v1677_v22 = vsub.f32 %v1370_v6, %v7266_v53  ;;  %v4353_v26 = vsel %vm2697_vm4, 1.0, %v10716_v0 }
 0x296   :  { %v4350_v30 = vsel %vm11865_vm5, 1.0, %v10716_v0  ;;  %vm2690_vm14 = vmand %vm11869_vm12, %vm8650_vm10  ;;  %vm11871_vm1 = vnez %v11870_v28  ;;  %vm8735_vm2 = vcmp.lt.f32.partialorder %v1674_v11, 0.0  ;;  %v1686_v27 = vsub.f32 %v1385_v42, %v7254_v61  ;;  %v1395_v11 = vpop.permute.xlu1 %1394 }
 0x297   :  { %vm2691_vm15 = vmand %vm11871_vm1, %vm8667_vm6  ;;  %v4346_v49 = vsel %vm2690_vm14, 1.0, %v10716_v0  ;;  %vm11875_vm10 = vnez %v11874_v16  ;;  %v1687_v44 = vsub.f32 %v1385_v42, %v7258_v33  ;;  %v1688_v36 = vsub.f32 %v1385_v42, %v7262_v1  ;;  %v11909_v16 = vld [vmem:[#allocation116_spill] sm:$0xff] }
 0x298   :  { %vm2692_vm0 = vmand %vm11875_vm10, %vm8677_vm13  ;;  %v4347_v7 = vsel %vm2691_vm15, 1.0, %v10716_v0  ;;  %v3641_v2 = vadd.f32 %v4346_v49, %v3640_v60  ;;  %vm11877_vm6 = vnez %v11876_v39  ;;  %vm8752_vm5 = vcmp.lt.f32.partialorder %v1675_v50, 0.0 }
 0x299   :  { %vm2693_vm4 = vmand %vm11877_vm6, %vm8685_vm11  ;;  %v4348_v63 = vsel %vm2692_vm0, 1.0, %v10716_v0  ;;  %v3710_v35 = vadd.f32 %v4347_v7, %v3709_v24  ;;  %v1689_v38 = vsub.f32 %v1385_v42, %v7266_v53  ;;  %vm11881_vm13 = vnez %v11880_v52 }
 0x29a   :  { %v4349_v6 = vsel %vm2693_vm4, 1.0, %v10716_v0  ;;  %v3779_v41 = vadd.f32 %v4348_v63, %v3778_v51  ;;  %v3642_v56 = vadd.f32 %v4350_v30, %v3641_v2  ;;  %vm8762_vm14 = vcmp.lt.f32.partialorder %v1676_v48, 0.0  ;;  %v11913_v63 = vld [vmem:[#allocation117_spill] sm:$0xff] }
 0x29b   :  { %v3848_v4 = vadd.f32 %v4349_v6, %v3847_v40  ;;  %vm11885_vm11 = vnez %v11884_v13  ;;  %v3711_v62 = vadd.f32 %v4351_v21, %v3710_v35  ;;  %vm8770_vm15 = vcmp.lt.f32.partialorder %v1677_v22, 0.0  ;;  %v11901_v40 = vld [vmem:[#allocation113_spill] sm:$0xff]  ;;  %v11903_v21 = vld [vmem:[#allocation114_spill] sm:$0xff]  ;;  %v11907_v22 = vld [vmem:[#allocation115_spill] sm:$0xff] }
 0x29c   :  { %vm2703_vm1 = vmand %vm11885_vm11, %vm8698_vm7  ;;  %v1682_v60 = vsub.f32 %v1380_v18, %v7254_v61  ;;  %vm11889_vm10 = vnez %v11888_v9  ;;  %v3780_v15 = vadd.f32 %v4352_v19, %v3779_v41  ;;  %vm8779_vm6 = vcmp.lt.f32.partialorder %v1686_v27, 0.0  ;;  %v1390_v27 = vpop.permute.xlu0 %1389  ;;  %v11917_v6 = vld [vmem:[#allocation118_spill] sm:$0xff]  ;;  %v11929_v9 = vld [vmem:[#allocation120_spill] sm:$0xff] }
 0x29d   :  { %vm2704_vm0 = vmand %vm11889_vm10, %vm8702_vm9  ;;  %vm8783_vm4 = vcmp.lt.f32.partialorder %v1687_v44, 0.0  ;;  %vm8787_vm7 = vcmp.lt.f32.partialorder %v1688_v36, 0.0  ;;  %vm11897_vm11 = vnez %v11896_v58  ;;  %v3849_v14 = vadd.f32 %v4353_v26, %v3848_v4  ;;  %v11993_v44 = vld [vmem:[#allocation135_spill] sm:$0xff] }
 0x29e   :  { %vm2705_vm12 = vmand %vm11897_vm11, %vm8716_vm8  ;;  %vm8801_vm10 = vcmp.lt.f32.partialorder %v1689_v38, 0.0  ;;  %v1683_v42 = vsub.f32 %v1380_v18, %v7258_v33  ;;  %v4359_v46 = vsel %vm2703_vm1, 1.0, %v10716_v0  ;;  %v4360_v30 = vsel %vm2704_vm0, 1.0, %v10716_v0 }
 0x29f   :  { %vm11898_vm9 = vmand %vm11881_vm13, %vm8694_vm3  ;;  %vm11902_vm8 = vnez %v11901_v40  ;;  %v1684_v5 = vsub.f32 %v1380_v18, %v7262_v1  ;;  %v1685_v10 = vsub.f32 %v1380_v18, %v7266_v53  ;;  %v4361_v50 = vsel %vm2705_vm12, 1.0, %v10716_v0 }
 0x2a0   :  { %v4358_v51 = vsel %vm11898_vm9, 1.0, %v10716_v0  ;;  %vm2698_vm11 = vmand %vm11902_vm8, %vm8735_vm2  ;;  %vm11904_vm3 = vnez %v11903_v21  ;;  %vm8820_vm1 = vcmp.lt.f32.partialorder %v1682_v60, 0.0  ;;  %v1694_v48 = vsub.f32 %v1395_v11, %v7254_v61  ;;  %v1405_v60 = vpop.permute.xlu1 %1404 }
 0x2a1   :  { %vm2699_vm13 = vmand %vm11904_vm3, %vm8752_vm5  ;;  %v4354_v19 = vsel %vm2698_vm11, 1.0, %v10716_v0  ;;  %vm11908_vm2 = vnez %v11907_v22  ;;  %v1695_v49 = vsub.f32 %v1395_v11, %v7258_v33  ;;  %v1696_v17 = vsub.f32 %v1395_v11, %v7262_v1  ;;  %v11942_v22 = vld [vmem:[#allocation124_spill] sm:$0xff] }
 0x2a2   :  { %vm2700_vm0 = vmand %vm11908_vm2, %vm8762_vm14  ;;  %v4355_v26 = vsel %vm2699_vm13, 1.0, %v10716_v0  ;;  %v3643_v28 = vadd.f32 %v4354_v19, %v3642_v56  ;;  %vm11910_vm5 = vnez %v11909_v16  ;;  %vm8837_vm9 = vcmp.lt.f32.partialorder %v1683_v42, 0.0 }
 0x2a3   :  { %vm2701_vm12 = vmand %vm11910_vm5, %vm8770_vm15  ;;  %v4356_v7 = vsel %vm2700_vm0, 1.0, %v10716_v0  ;;  %v3712_v2 = vadd.f32 %v4355_v26, %v3711_v62  ;;  %v1697_v36 = vsub.f32 %v1395_v11, %v7266_v53  ;;  %vm11914_vm14 = vnez %v11913_v63  ;;  %v12047_v63 = vld [vmem:[#allocation149_spill] sm:$0xff] }
 0x2a4   :  { %v4357_v18 = vsel %vm2701_vm12, 1.0, %v10716_v0  ;;  %v3781_v39 = vadd.f32 %v4356_v7, %v3780_v15  ;;  %v3644_v35 = vadd.f32 %v4358_v51, %v3643_v28  ;;  %vm8847_vm11 = vcmp.lt.f32.partialorder %v1684_v5, 0.0  ;;  %v11946_v7 = vld [vmem:[#allocation125_spill] sm:$0xff] }
 0x2a5   :  { %v3850_v38 = vadd.f32 %v4357_v18, %v3849_v14  ;;  %vm11918_vm15 = vnez %v11917_v6  ;;  %v3713_v41 = vadd.f32 %v4359_v46, %v3712_v2  ;;  %vm8855_vm13 = vcmp.lt.f32.partialorder %v1685_v10, 0.0  ;;  %v11934_v14 = vld [vmem:[#allocation121_spill] sm:$0xff]  ;;  %v11936_v46 = vld [vmem:[#allocation122_spill] sm:$0xff]  ;;  %v11940_v10 = vld [vmem:[#allocation123_spill] sm:$0xff] }
 0x2a6   :  { %vm2711_vm3 = vmand %vm11918_vm15, %vm8783_vm4  ;;  %v1690_v56 = vsub.f32 %v1390_v27, %v7254_v61  ;;  %vm11922_vm2 = vnez %v11921_v23  ;;  %v3782_v4 = vadd.f32 %v4360_v30, %v3781_v39  ;;  %vm8864_vm5 = vcmp.lt.f32.partialorder %v1694_v48, 0.0  ;;  %v1400_v48 = vpop.permute.xlu0 %1399  ;;  %v11950_v18 = vld [vmem:[#allocation126_spill] sm:$0xff]  ;;  %v11962_v23 = vld [vmem:[#allocation132_spill] sm:$0xff] }
 0x2a7   :  { %vm2712_vm0 = vmand %vm11922_vm2, %vm8787_vm7  ;;  %vm8868_vm12 = vcmp.lt.f32.partialorder %v1695_v49, 0.0  ;;  %vm8872_vm4 = vcmp.lt.f32.partialorder %v1696_v17, 0.0  ;;  %vm11930_vm15 = vnez %v11929_v9  ;;  %v3851_v24 = vadd.f32 %v4361_v50, %v3850_v38  ;;  %v12026_v49 = vld [vmem:[#allocation143_spill] sm:$0xff] }
 0x2a8   :  { %vm2713_vm8 = vmand %vm11930_vm15, %vm8801_vm10  ;;  %vm8886_vm2 = vcmp.lt.f32.partialorder %v1697_v36, 0.0  ;;  %v1691_v11 = vsub.f32 %v1390_v27, %v7258_v33  ;;  %v4367_v58 = vsel %vm2711_vm3, 1.0, %v10716_v0  ;;  %v4368_v51 = vsel %vm2712_vm0, 1.0, %v10716_v0 }
 0x2a9   :  { %vm11931_vm7 = vmand %vm11914_vm14, %vm8779_vm6  ;;  %vm11935_vm10 = vnez %v11934_v14  ;;  %v1692_v8 = vsub.f32 %v1390_v27, %v7262_v1  ;;  %v1693_v43 = vsub.f32 %v1390_v27, %v7266_v53  ;;  %v4369_v42 = vsel %vm2713_vm8, 1.0, %v10716_v0 }
 0x2aa   :  { %v4366_v15 = vsel %vm11931_vm7, 1.0, %v10716_v0  ;;  %vm2706_vm15 = vmand %vm11935_vm10, %vm8820_vm1  ;;  %vm11937_vm6 = vnez %v11936_v46  ;;  %vm8905_vm3 = vcmp.lt.f32.partialorder %v1690_v56, 0.0  ;;  %v1702_v5 = vsub.f32 %v1405_v60, %v7254_v61  ;;  %v1415_v56 = vpop.permute.xlu1 %1414 }
 0x2ab   :  { %vm2707_vm14 = vmand %vm11937_vm6, %vm8837_vm9  ;;  %v4362_v30 = vsel %vm2706_vm15, 1.0, %v10716_v0  ;;  %vm11941_vm1 = vnez %v11940_v10  ;;  %v1703_v19 = vsub.f32 %v1405_v60, %v7258_v33  ;;  %v1704_v34 = vsub.f32 %v1405_v60, %v7262_v1  ;;  %v1410_v10 = vpop.permute.xlu0 %1409 }
 0x2ac   :  { %vm2708_vm0 = vmand %vm11941_vm1, %vm8847_vm11  ;;  %v4363_v50 = vsel %vm2707_vm14, 1.0, %v10716_v0  ;;  %v3645_v21 = vadd.f32 %v4362_v30, %v3644_v35  ;;  %vm11943_vm9 = vnez %v11942_v22  ;;  %vm8922_vm7 = vcmp.lt.f32.partialorder %v1691_v11, 0.0 }
 0x2ad   :  { %vm2709_vm8 = vmand %vm11943_vm9, %vm8855_vm13  ;;  %v4364_v26 = vsel %vm2708_vm0, 1.0, %v10716_v0  ;;  %v3714_v28 = vadd.f32 %v4363_v50, %v3713_v41  ;;  %v1705_v17 = vsub.f32 %v1405_v60, %v7266_v53  ;;  %vm11947_vm11 = vnez %v11946_v7  ;;  %v12080_v7 = vld [vmem:[#allocation157_spill] sm:$0xff] }
 0x2ae   :  { %v4365_v27 = vsel %vm2709_vm8, 1.0, %v10716_v0  ;;  %v3783_v16 = vadd.f32 %v4364_v26, %v3782_v4  ;;  %v3646_v2 = vadd.f32 %v4366_v15, %v3645_v21  ;;  %vm8932_vm15 = vcmp.lt.f32.partialorder %v1692_v8, 0.0  ;;  %v11976_v21 = vld [vmem:[#allocation131_spill] sm:$0xff] }
 0x2af   :  { %v3852_v36 = vadd.f32 %v4365_v27, %v3851_v24  ;;  %vm11951_vm13 = vnez %v11950_v18  ;;  %v3715_v39 = vadd.f32 %v4367_v58, %v3714_v28  ;;  %vm8940_vm14 = vcmp.lt.f32.partialorder %v1693_v43, 0.0  ;;  %v11967_v24 = vld [vmem:[#allocation128_spill] sm:$0xff]  ;;  %v11969_v58 = vld [vmem:[#allocation129_spill] sm:$0xff]  ;;  %v11986_v27 = vld [vmem:[#allocation134_spill] sm:$0xff] }
 0x2b0   :  { %vm2719_vm6 = vmand %vm11951_vm13, %vm8868_vm12  ;;  %v1698_v35 = vsub.f32 %v1400_v48, %v7254_v61  ;;  %vm11955_vm1 = vnez %v11954_v57  ;;  %v3784_v38 = vadd.f32 %v4368_v51, %v3783_v16  ;;  %vm8949_vm9 = vcmp.lt.f32.partialorder %v1702_v5, 0.0  ;;  %v11999_v57 = vld [vmem:[#allocation140_spill] sm:$0xff] }
 0x2b1   :  { %vm2720_vm0 = vmand %vm11955_vm1, %vm8872_vm4  ;;  %vm8953_vm8 = vcmp.lt.f32.partialorder %v1703_v19, 0.0  ;;  %vm8957_vm12 = vcmp.lt.f32.partialorder %v1704_v34, 0.0  ;;  %v11960_v52 = vmov 0  ;;  %vm11963_vm13 = vnez %v11962_v23 }
 0x2b2   :  { %v11961_v52 = vsel %vm8957_vm12, 4294967295, %v11960_v52  ;;  %vm11964_vm4 = vmand %vm11947_vm11, %vm8864_vm5  ;;  %v3853_v62 = vadd.f32 %v4369_v42, %v3852_v36  ;;  %vm8971_vm1 = vcmp.lt.f32.partialorder %v1705_v17, 0.0  ;;  %v1699_v60 = vsub.f32 %v1400_v48, %v7258_v33  ;;  %v11973_v42 = vld [vmem:[#allocation130_spill] sm:$0xff] }
 0x2b3   :  { %v4374_v4 = vsel %vm11964_vm4, 1.0, %v10716_v0  ;;  %v4375_v9 = vsel %vm2719_vm6, 1.0, %v10716_v0  ;;  %v4376_v15 = vsel %vm2720_vm0, 1.0, %v10716_v0  ;;  %vm11968_vm10 = vnez %v11967_v24  ;;  %v12003_v24 = vld [vmem:[#allocation137_spill] sm:$0xff] }
 0x2b4   :  { %vm2714_vm12 = vmand %vm11968_vm10, %vm8905_vm3  ;;  %v1700_v13 = vsub.f32 %v1400_v48, %v7262_v1  ;;  %v1701_v11 = vsub.f32 %v1400_v48, %v7266_v53  ;;  %vm11970_vm5 = vnez %v11969_v58  ;;  %vm8989_vm4 = vcmp.lt.f32.partialorder %v1698_v35, 0.0  ;;  %v1425_v35 = vpop.permute.xlu1 %1424  ;;  %v12007_v58 = vld [vmem:[#allocation138_spill] sm:$0xff] }
 0x2b5   :  { %vm2715_vm11 = vmand %vm11970_vm5, %vm8922_vm7  ;;  %v4370_v51 = vsel %vm2714_vm12, 1.0, %v10716_v0  ;;  %v1710_v8 = vsub.f32 %v1415_v56, %v7254_v61  ;;  %v1711_v43 = vsub.f32 %v1415_v56, %v7258_v33  ;;  %vm11974_vm3 = vnez %v11973_v42  ;;  %v1420_v42 = vpop.permute.xlu0 %1419 }
 0x2b6   :  { %vm2716_vm10 = vmand %vm11974_vm3, %vm8932_vm15  ;;  %v4371_v46 = vsel %vm2715_vm11, 1.0, %v10716_v0  ;;  %v3647_v30 = vadd.f32 %v4370_v51, %v3646_v2  ;;  %v1712_v40 = vsub.f32 %v1415_v56, %v7262_v1  ;;  %v1713_v5 = vsub.f32 %v1415_v56, %v7266_v53 }
 0x2b7   :  { %vm11975_vm7 = vmand %vm11963_vm13, %vm8886_vm2  ;;  %vm11977_vm6 = vnez %v11976_v21  ;;  %v4372_v19 = vsel %vm2716_vm10, 1.0, %v10716_v0  ;;  %v3716_v34 = vadd.f32 %v4371_v46, %v3715_v39  ;;  %vm9013_vm0 = vcmp.lt.f32.partialorder %v1699_v60, 0.0 }
 0x2b8   :  { %v4377_v50 = vsel %vm11975_vm7, 1.0, %v10716_v0  ;;  %vm2717_vm15 = vmand %vm11977_vm6, %vm8940_vm14  ;;  %v3785_v26 = vadd.f32 %v4372_v19, %v3784_v38  ;;  %vm11981_vm2 = vnez %v11980_v12  ;;  %vm9022_vm13 = vcmp.lt.f32.partialorder %v1700_v13, 0.0  ;;  %v12113_v12 = vld [vmem:[#allocation165_spill] sm:$0xff] }
 0x2b9   :  { %v4373_v22 = vsel %vm2717_vm15, 1.0, %v10716_v0  ;;  %vm2726_vm12 = vmand %vm11981_vm2, %vm8949_vm9  ;;  %vm9026_vm14 = vcmp.lt.f32.partialorder %v1701_v11, 0.0  ;;  %vm11987_vm5 = vnez %v11986_v27  ;;  %vm9034_vm3 = vcmp.lt.f32.partialorder %v1710_v8, 0.0 }
 0x2ba   :  { %v3854_v17 = vadd.f32 %v4373_v22, %v3853_v62  ;;  %vm2727_vm11 = vmand %vm11987_vm5, %vm8953_vm8  ;;  %vm9038_vm10 = vcmp.lt.f32.partialorder %v1711_v43, 0.0  ;;  %v1706_v2 = vsub.f32 %v1410_v10, %v7254_v61  ;;  %vm11992_vm9 = vnez %v11961_v52  ;;  %v12020_v22 = vld [vmem:[#allocation142_spill] sm:$0xff] }
 0x2bb   :  { %vm11994_vm7 = vnez %v11993_v44  ;;  %v4382_v36 = vsel %vm2726_vm12, 1.0, %v10716_v0  ;;  %v3648_v18 = vadd.f32 %v4374_v4, %v3647_v30  ;;  %vm9048_vm15 = vcmp.lt.f32.partialorder %v1712_v40, 0.0  ;;  %v12001_v4 = vld [vmem:[#allocation136_spill] sm:$0xff]  ;;  %v12010_v30 = vld [vmem:[#allocation139_spill] sm:$0xff] }
 0x2bc   :  { %vm2728_vm6 = vmand %vm11994_vm7, %vm11992_vm9  ;;  %vm9052_vm8 = vcmp.lt.f32.partialorder %v1713_v5, 0.0  ;;  %vm12000_vm2 = vnez %v11999_v57  ;;  %v4383_v38 = vsel %vm2727_vm11, 1.0, %v10716_v0  ;;  %v3717_v6 = vadd.f32 %v4375_v9, %v3716_v34  ;;  %v12032_v44 = vld [vmem:[#allocation148_spill] sm:$0xff]  ;;  %v12059_v34 = vld [vmem:[#allocation151_spill] sm:$0xff] }
 0x2bd   :  { %v3786_v41 = vadd.f32 %v4376_v15, %v3785_v26  ;;  %v1707_v52 = vsub.f32 %v1410_v10, %v7258_v33  ;;  %v4384_v56 = vsel %vm2728_vm6, 1.0, %v10716_v0  ;;  %v3855_v23 = vadd.f32 %v4377_v50, %v3854_v17 }
 0x2be   :  { %vm12002_vm12 = vnez %v12001_v4  ;;  %v1708_v62 = vsub.f32 %v1410_v10, %v7262_v1  ;;  %v1709_v60 = vsub.f32 %v1410_v10, %v7266_v53  ;;  %vm12004_vm11 = vnez %v12003_v24  ;;  %v12036_v4 = vld [vmem:[#allocation145_spill] sm:$0xff]  ;;  %v12040_v24 = vld [vmem:[#allocation146_spill] sm:$0xff] }
 0x2bf   :  { %vm2722_vm9 = vmand %vm12002_vm12, %vm8989_vm4  ;;  %vm9074_vm5 = vcmp.lt.f32.partialorder %v1706_v2, 0.0  ;;  %v1718_v13 = vsub.f32 %v1425_v35, %v7254_v61  ;;  %v1719_v11 = vsub.f32 %v1425_v35, %v7258_v33  ;;  %vm12008_vm4 = vnez %v12007_v58  ;;  %v1435_v2 = vpop.permute.xlu1 %1434  ;;  %v1430_v58 = vpop.permute.xlu0 %1429 }
 0x2c0   :  { %vm2723_vm7 = vmand %vm12004_vm11, %vm9013_vm0  ;;  %v4378_v9 = vsel %vm2722_vm9, 1.0, %v10716_v0  ;;  %v1720_v8 = vsub.f32 %v1425_v35, %v7262_v1  ;;  %v1721_v43 = vsub.f32 %v1425_v35, %v7266_v53  ;;  %vm12011_vm12 = vnez %v12010_v30 }
 0x2c1   :  { %vm2724_vm6 = vmand %vm12008_vm4, %vm9022_vm13  ;;  %v4379_v51 = vsel %vm2723_vm7, 1.0, %v10716_v0  ;;  %v3649_v14 = vadd.f32 %v4378_v9, %v3648_v18  ;;  %vm9098_vm9 = vcmp.lt.f32.partialorder %v1707_v52, 0.0  ;;  %vm9107_vm11 = vcmp.lt.f32.partialorder %v1708_v62, 0.0 }
 0x2c2   :  { %vm12009_vm0 = vmand %vm12000_vm2, %vm8971_vm1  ;;  %v4380_v40 = vsel %vm2724_vm6, 1.0, %v10716_v0  ;;  %v3718_v5 = vadd.f32 %v4379_v51, %v3717_v6  ;;  %vm12015_vm1 = vnez %v12014_v3  ;;  %vm12021_vm7 = vnez %v12020_v22  ;;  %v12146_v3 = vld [vmem:[#allocation173_spill] sm:$0xff] }
 0x2c3   :  { %v4385_v46 = vsel %vm12009_vm0, 1.0, %v10716_v0  ;;  %vm2725_vm13 = vmand %vm12011_vm12, %vm9026_vm14  ;;  %v3787_v21 = vadd.f32 %v4380_v40, %v3786_v41  ;;  %vm9111_vm14 = vcmp.lt.f32.partialorder %v1709_v60, 0.0  ;;  %vm9119_vm6 = vcmp.lt.f32.partialorder %v1718_v13, 0.0  ;;  %v12034_v41 = vld [vmem:[#allocation144_spill] sm:$0xff] }
 0x2c4   :  { %v4381_v50 = vsel %vm2725_vm13, 1.0, %v10716_v0  ;;  %vm2734_vm2 = vmand %vm12015_vm1, %vm9034_vm3  ;;  %vm9123_vm0 = vcmp.lt.f32.partialorder %v1719_v11, 0.0  ;;  %v1714_v28 = vsub.f32 %v1420_v42, %v7254_v61  ;;  %vm12027_vm3 = vnez %v12026_v49  ;;  %v12065_v49 = vld [vmem:[#allocation156_spill] sm:$0xff] }
 0x2c5   :  { %v3856_v48 = vadd.f32 %v4381_v50, %v3855_v23  ;;  %vm2735_vm4 = vmand %vm12021_vm7, %vm9038_vm10  ;;  %v4390_v17 = vsel %vm2734_vm2, 1.0, %v10716_v0  ;;  %v3650_v27 = vadd.f32 %v4382_v36, %v3649_v14  ;;  %vm9133_vm13 = vcmp.lt.f32.partialorder %v1720_v8, 0.0  ;;  %v12043_v14 = vld [vmem:[#allocation147_spill] sm:$0xff]  ;;  %v12053_v50 = vld [vmem:[#allocation150_spill] sm:$0xff] }
 0x2c6   :  { %vm2736_vm12 = vmand %vm12027_vm3, %vm9048_vm15  ;;  %vm9137_vm10 = vcmp.lt.f32.partialorder %v1721_v43, 0.0  ;;  %vm12033_vm1 = vnez %v12032_v44  ;;  %v4391_v18 = vsel %vm2735_vm4, 1.0, %v10716_v0  ;;  %v3719_v39 = vadd.f32 %v4383_v38, %v3718_v5  ;;  %v12092_v5 = vld [vmem:[#allocation159_spill] sm:$0xff] }
 0x2c7   :  { %v3788_v35 = vadd.f32 %v4384_v56, %v3787_v21  ;;  %v1715_v36 = vsub.f32 %v1420_v42, %v7258_v33  ;;  %v4392_v57 = vsel %vm2736_vm12, 1.0, %v10716_v0  ;;  %v3857_v6 = vadd.f32 %v4385_v46, %v3856_v48 }
 0x2c8   :  { %vm12035_vm15 = vnez %v12034_v41  ;;  %v1716_v52 = vsub.f32 %v1420_v42, %v7262_v1  ;;  %v1717_v23 = vsub.f32 %v1420_v42, %v7266_v53  ;;  %vm12037_vm4 = vnez %v12036_v4  ;;  %v12069_v41 = vld [vmem:[#allocation153_spill] sm:$0xff]  ;;  %v12073_v4 = vld [vmem:[#allocation154_spill] sm:$0xff] }
 0x2c9   :  { %vm2730_vm2 = vmand %vm12035_vm15, %vm9074_vm5  ;;  %vm9159_vm7 = vcmp.lt.f32.partialorder %v1714_v28, 0.0  ;;  %v1726_v62 = vsub.f32 %v1435_v2, %v7254_v61  ;;  %v1727_v60 = vsub.f32 %v1435_v2, %v7258_v33  ;;  %vm12041_vm5 = vnez %v12040_v24  ;;  %v1445_v28 = vpop.permute.xlu1 %1444  ;;  %v1440_v24 = vpop.permute.xlu0 %1439 }
 0x2ca   :  { %vm2731_vm3 = vmand %vm12037_vm4, %vm9098_vm9  ;;  %v4386_v38 = vsel %vm2730_vm2, 1.0, %v10716_v0  ;;  %v1728_v13 = vsub.f32 %v1435_v2, %v7262_v1  ;;  %v1729_v11 = vsub.f32 %v1435_v2, %v7266_v53  ;;  %vm12044_vm15 = vnez %v12043_v14 }
 0x2cb   :  { %vm2732_vm12 = vmand %vm12041_vm5, %vm9107_vm11  ;;  %v4387_v9 = vsel %vm2731_vm3, 1.0, %v10716_v0  ;;  %v3651_v15 = vadd.f32 %v4386_v38, %v3650_v27  ;;  %vm9183_vm2 = vcmp.lt.f32.partialorder %v1715_v36, 0.0  ;;  %vm9192_vm4 = vcmp.lt.f32.partialorder %v1716_v52, 0.0 }
 0x2cc   :  { %vm12042_vm9 = vmand %vm12033_vm1, %vm9052_vm8  ;;  %v4388_v8 = vsel %vm2732_vm12, 1.0, %v10716_v0  ;;  %v3720_v43 = vadd.f32 %v4387_v9, %v3719_v39  ;;  %vm12048_vm8 = vnez %v12047_v63  ;;  %vm12054_vm3 = vnez %v12053_v50  ;;  %v12179_v63 = vld [vmem:[#allocation181_spill] sm:$0xff] }
 0x2cd   :  { %v4393_v51 = vsel %vm12042_vm9, 1.0, %v10716_v0  ;;  %vm2733_vm11 = vmand %vm12044_vm15, %vm9111_vm14  ;;  %v3789_v30 = vadd.f32 %v4388_v8, %v3788_v35  ;;  %vm9196_vm14 = vcmp.lt.f32.partialorder %v1717_v23, 0.0  ;;  %vm9204_vm12 = vcmp.lt.f32.partialorder %v1726_v62, 0.0  ;;  %v12067_v35 = vld [vmem:[#allocation152_spill] sm:$0xff] }
 0x2ce   :  { %v4389_v46 = vsel %vm2733_vm11, 1.0, %v10716_v0  ;;  %vm2742_vm1 = vmand %vm12048_vm8, %vm9119_vm6  ;;  %vm9208_vm9 = vcmp.lt.f32.partialorder %v1727_v60, 0.0  ;;  %v1722_v19 = vsub.f32 %v1430_v58, %v7254_v61  ;;  %vm12060_vm6 = vnez %v12059_v34  ;;  %v12098_v34 = vld [vmem:[#allocation164_spill] sm:$0xff] }
 0x2cf   :  { %v3858_v10 = vadd.f32 %v4389_v46, %v3857_v6  ;;  %vm2743_vm5 = vmand %vm12054_vm3, %vm9123_vm0  ;;  %v4398_v48 = vsel %vm2742_vm1, 1.0, %v10716_v0  ;;  %v3652_v22 = vadd.f32 %v4390_v17, %v3651_v15  ;;  %vm9218_vm11 = vcmp.lt.f32.partialorder %v1728_v13, 0.0  ;;  %v12076_v15 = vld [vmem:[#allocation155_spill] sm:$0xff]  ;;  %v12086_v46 = vld [vmem:[#allocation158_spill] sm:$0xff] }
 0x2d0   :  { %vm2744_vm15 = vmand %vm12060_vm6, %vm9133_vm13  ;;  %vm9222_vm0 = vcmp.lt.f32.partialorder %v1729_v11, 0.0  ;;  %vm12066_vm8 = vnez %v12065_v49  ;;  %v4399_v27 = vsel %vm2743_vm5, 1.0, %v10716_v0  ;;  %v3721_v16 = vadd.f32 %v4391_v18, %v3720_v43  ;;  %v12125_v43 = vld [vmem:[#allocation167_spill] sm:$0xff] }
 0x2d1   :  { %v3790_v2 = vadd.f32 %v4392_v57, %v3789_v30  ;;  %v1723_v17 = vsub.f32 %v1430_v58, %v7258_v33  ;;  %v4400_v44 = vsel %vm2744_vm15, 1.0, %v10716_v0  ;;  %v3859_v39 = vadd.f32 %v4393_v51, %v3858_v10 }
 0x2d2   :  { %vm12068_vm13 = vnez %v12067_v35  ;;  %v1724_v36 = vsub.f32 %v1430_v58, %v7262_v1  ;;  %v1725_v6 = vsub.f32 %v1430_v58, %v7266_v53  ;;  %vm12070_vm5 = vnez %v12069_v41  ;;  %v12102_v35 = vld [vmem:[#allocation161_spill] sm:$0xff]  ;;  %v12106_v41 = vld [vmem:[#allocation162_spill] sm:$0xff] }
 0x2d3   :  { %vm2738_vm1 = vmand %vm12068_vm13, %vm9159_vm7  ;;  %vm9244_vm3 = vcmp.lt.f32.partialorder %v1722_v19, 0.0  ;;  %v1734_v52 = vsub.f32 %v1445_v28, %v7254_v61  ;;  %v1735_v23 = vsub.f32 %v1445_v28, %v7258_v33  ;;  %vm12074_vm7 = vnez %v12073_v4  ;;  %v1455_v19 = vpop.permute.xlu1 %1454  ;;  %v1450_v4 = vpop.permute.xlu0 %1449 }
 0x2d4   :  { %vm2739_vm6 = vmand %vm12070_vm5, %vm9183_vm2  ;;  %v4394_v18 = vsel %vm2738_vm1, 1.0, %v10716_v0  ;;  %v1736_v62 = vsub.f32 %v1445_v28, %v7262_v1  ;;  %v1737_v60 = vsub.f32 %v1445_v28, %v7266_v53  ;;  %vm12077_vm13 = vnez %v12076_v15 }
 0x2d5   :  { %vm2740_vm15 = vmand %vm12074_vm7, %vm9192_vm4  ;;  %v4395_v38 = vsel %vm2739_vm6, 1.0, %v10716_v0  ;;  %v3653_v56 = vadd.f32 %v4394_v18, %v3652_v22  ;;  %vm9268_vm1 = vcmp.lt.f32.partialorder %v1723_v17, 0.0  ;;  %vm9277_vm5 = vcmp.lt.f32.partialorder %v1724_v36, 0.0 }
 0x2d6   :  { %vm12075_vm2 = vmand %vm12066_vm8, %vm9137_vm10  ;;  %v4396_v13 = vsel %vm2740_vm15, 1.0, %v10716_v0  ;;  %v3722_v11 = vadd.f32 %v4395_v38, %v3721_v16  ;;  %vm12081_vm10 = vnez %v12080_v7  ;;  %vm12087_vm6 = vnez %v12086_v46  ;;  %v12212_v7 = vld [vmem:[#allocation189_spill] sm:$0xff] }
 0x2d7   :  { %v4401_v9 = vsel %vm12075_vm2, 1.0, %v10716_v0  ;;  %vm2741_vm4 = vmand %vm12077_vm13, %vm9196_vm14  ;;  %v3791_v14 = vadd.f32 %v4396_v13, %v3790_v2  ;;  %vm9281_vm14 = vcmp.lt.f32.partialorder %v1725_v6, 0.0  ;;  %vm9289_vm15 = vcmp.lt.f32.partialorder %v1734_v52, 0.0  ;;  %v12100_v2 = vld [vmem:[#allocation160_spill] sm:$0xff] }
 0x2d8   :  { %v4397_v51 = vsel %vm2741_vm4, 1.0, %v10716_v0  ;;  %vm2750_vm8 = vmand %vm12081_vm10, %vm9204_vm12  ;;  %vm9293_vm2 = vcmp.lt.f32.partialorder %v1735_v23, 0.0  ;;  %v1730_v40 = vsub.f32 %v1440_v24, %v7254_v61  ;;  %vm12093_vm12 = vnez %v12092_v5  ;;  %v12131_v5 = vld [vmem:[#allocation172_spill] sm:$0xff] }
 0x2d9   :  { %v3860_v42 = vadd.f32 %v4397_v51, %v3859_v39  ;;  %vm2751_vm7 = vmand %vm12087_vm6, %vm9208_vm9  ;;  %v4406_v10 = vsel %vm2750_vm8, 1.0, %v10716_v0  ;;  %v3654_v50 = vadd.f32 %v4398_v48, %v3653_v56  ;;  %vm9303_vm4 = vcmp.lt.f32.partialorder %v1736_v62, 0.0  ;;  %v12109_v56 = vld [vmem:[#allocation163_spill] sm:$0xff]  ;;  %v12119_v51 = vld [vmem:[#allocation166_spill] sm:$0xff] }
 0x2da   :  { %vm2752_vm13 = vmand %vm12093_vm12, %vm9218_vm11  ;;  %vm9307_vm9 = vcmp.lt.f32.partialorder %v1737_v60, 0.0  ;;  %vm12099_vm10 = vnez %v12098_v34  ;;  %v4407_v22 = vsel %vm2751_vm7, 1.0, %v10716_v0  ;;  %v3723_v26 = vadd.f32 %v4399_v27, %v3722_v11  ;;  %v12158_v11 = vld [vmem:[#allocation175_spill] sm:$0xff] }
 0x2db   :  { %v3792_v28 = vadd.f32 %v4400_v44, %v3791_v14  ;;  %v1731_v48 = vsub.f32 %v1440_v24, %v7258_v33  ;;  %v4408_v49 = vsel %vm2752_vm13, 1.0, %v10716_v0  ;;  %v3861_v16 = vadd.f32 %v4401_v9, %v3860_v42 }
 0x2dc   :  { %vm12101_vm11 = vnez %v12100_v2  ;;  %v1732_v17 = vsub.f32 %v1440_v24, %v7262_v1  ;;  %v1733_v39 = vsub.f32 %v1440_v24, %v7266_v53  ;;  %vm12103_vm7 = vnez %v12102_v35  ;;  %v12135_v2 = vld [vmem:[#allocation169_spill] sm:$0xff]  ;;  %v12139_v35 = vld [vmem:[#allocation170_spill] sm:$0xff] }
 0x2dd   :  { %vm2746_vm8 = vmand %vm12101_vm11, %vm9244_vm3  ;;  %vm9329_vm6 = vcmp.lt.f32.partialorder %v1730_v40, 0.0  ;;  %v1742_v36 = vsub.f32 %v1455_v19, %v7254_v61  ;;  %v1743_v6 = vsub.f32 %v1455_v19, %v7258_v33  ;;  %vm12107_vm3 = vnez %v12106_v41  ;;  %v1465_v40 = vpop.permute.xlu1 %1464  ;;  %v1460_v41 = vpop.permute.xlu0 %1459 }
 0x2de   :  { %vm2747_vm12 = vmand %vm12103_vm7, %vm9268_vm1  ;;  %v4402_v27 = vsel %vm2746_vm8, 1.0, %v10716_v0  ;;  %v1744_v52 = vsub.f32 %v1455_v19, %v7262_v1  ;;  %v1745_v23 = vsub.f32 %v1455_v19, %v7266_v53  ;;  %vm12110_vm11 = vnez %v12109_v56 }
 0x2df   :  { %vm2748_vm13 = vmand %vm12107_vm3, %vm9277_vm5  ;;  %v4403_v18 = vsel %vm2747_vm12, 1.0, %v10716_v0  ;;  %v3655_v57 = vadd.f32 %v4402_v27, %v3654_v50  ;;  %vm9353_vm8 = vcmp.lt.f32.partialorder %v1731_v48, 0.0  ;;  %vm9362_vm7 = vcmp.lt.f32.partialorder %v1732_v17, 0.0 }
 0x2e0   :  { %vm12108_vm1 = vmand %vm12099_vm10, %vm9222_vm0  ;;  %v4404_v62 = vsel %vm2748_vm13, 1.0, %v10716_v0  ;;  %v3724_v60 = vadd.f32 %v4403_v18, %v3723_v26  ;;  %vm12114_vm0 = vnez %v12113_v12  ;;  %vm12120_vm12 = vnez %v12119_v51  ;;  %v12245_v12 = vld [vmem:[#allocation197_spill] sm:$0xff] }
 0x2e1   :  { %v4409_v38 = vsel %vm12108_vm1, 1.0, %v10716_v0  ;;  %vm2749_vm5 = vmand %vm12110_vm11, %vm9281_vm14  ;;  %v3793_v15 = vadd.f32 %v4404_v62, %v3792_v28  ;;  %vm9366_vm14 = vcmp.lt.f32.partialorder %v1733_v39, 0.0  ;;  %vm9374_vm13 = vcmp.lt.f32.partialorder %v1742_v36, 0.0  ;;  %v12133_v28 = vld [vmem:[#allocation168_spill] sm:$0xff] }
 0x2e2   :  { %v4405_v9 = vsel %vm2749_vm5, 1.0, %v10716_v0  ;;  %vm2758_vm10 = vmand %vm12114_vm0, %vm9289_vm15  ;;  %vm9378_vm1 = vcmp.lt.f32.partialorder %v1743_v6, 0.0  ;;  %v1738_v8 = vsub.f32 %v1450_v4, %v7254_v61  ;;  %vm12126_vm15 = vnez %v12125_v43  ;;  %v12164_v43 = vld [vmem:[#allocation180_spill] sm:$0xff] }
 0x2e3   :  { %v3862_v58 = vadd.f32 %v4405_v9, %v3861_v16  ;;  %vm2759_vm3 = vmand %vm12120_vm12, %vm9293_vm2  ;;  %v4414_v42 = vsel %vm2758_vm10, 1.0, %v10716_v0  ;;  %v3656_v46 = vadd.f32 %v4406_v10, %v3655_v57  ;;  %vm9388_vm5 = vcmp.lt.f32.partialorder %v1744_v52, 0.0  ;;  %v12142_v57 = vld [vmem:[#allocation171_spill] sm:$0xff]  ;;  %v12152_v9 = vld [vmem:[#allocation174_spill] sm:$0xff] }
 0x2e4   :  { %vm2760_vm11 = vmand %vm12126_vm15, %vm9303_vm4  ;;  %vm9392_vm2 = vcmp.lt.f32.partialorder %v1745_v23, 0.0  ;;  %vm12132_vm0 = vnez %v12131_v5  ;;  %v4415_v50 = vsel %vm2759_vm3, 1.0, %v10716_v0  ;;  %v3725_v21 = vadd.f32 %v4407_v22, %v3724_v60  ;;  %v12191_v60 = vld [vmem:[#allocation183_spill] sm:$0xff] }
 0x2e5   :  { %v3794_v19 = vadd.f32 %v4408_v49, %v3793_v15  ;;  %v1739_v10 = vsub.f32 %v1450_v4, %v7258_v33  ;;  %v4416_v34 = vsel %vm2760_vm11, 1.0, %v10716_v0  ;;  %v3863_v26 = vadd.f32 %v4409_v38, %v3862_v58 }
 0x2e6   :  { %vm12134_vm4 = vnez %v12133_v28  ;;  %v1740_v48 = vsub.f32 %v1450_v4, %v7262_v1  ;;  %v1741_v16 = vsub.f32 %v1450_v4, %v7266_v53  ;;  %vm12136_vm3 = vnez %v12135_v2  ;;  %v12168_v28 = vld [vmem:[#allocation177_spill] sm:$0xff]  ;;  %v12172_v2 = vld [vmem:[#allocation178_spill] sm:$0xff] }
 0x2e7   :  { %vm2754_vm10 = vmand %vm12134_vm4, %vm9329_vm6  ;;  %vm9414_vm12 = vcmp.lt.f32.partialorder %v1738_v8, 0.0  ;;  %v1750_v17 = vsub.f32 %v1465_v40, %v7254_v61  ;;  %v1751_v39 = vsub.f32 %v1465_v40, %v7258_v33  ;;  %vm12140_vm6 = vnez %v12139_v35  ;;  %v1475_v8 = vpop.permute.xlu1 %1474  ;;  %v1470_v35 = vpop.permute.xlu0 %1469 }
 0x2e8   :  { %vm2755_vm15 = vmand %vm12136_vm3, %vm9353_vm8  ;;  %v4410_v22 = vsel %vm2754_vm10, 1.0, %v10716_v0  ;;  %v1752_v36 = vsub.f32 %v1465_v40, %v7262_v1  ;;  %v1753_v6 = vsub.f32 %v1465_v40, %v7266_v53  ;;  %vm12143_vm4 = vnez %v12142_v57 }
 0x2e9   :  { %vm2756_vm11 = vmand %vm12140_vm6, %vm9362_vm7  ;;  %v4411_v27 = vsel %vm2755_vm15, 1.0, %v10716_v0  ;;  %v3657_v44 = vadd.f32 %v4410_v22, %v3656_v46  ;;  %vm9438_vm10 = vcmp.lt.f32.partialorder %v1739_v10, 0.0  ;;  %vm9447_vm3 = vcmp.lt.f32.partialorder %v1740_v48, 0.0 }
 0x2ea   :  { %vm12141_vm8 = vmand %vm12132_vm0, %vm9307_vm9  ;;  %v4412_v52 = vsel %vm2756_vm11, 1.0, %v10716_v0  ;;  %v3726_v23 = vadd.f32 %v4411_v27, %v3725_v21  ;;  %vm12147_vm9 = vnez %v12146_v3  ;;  %vm12153_vm15 = vnez %v12152_v9 }
 0x2eb   :  { %v4417_v18 = vsel %vm12141_vm8, 1.0, %v10716_v0  ;;  %vm2757_vm7 = vmand %vm12143_vm4, %vm9366_vm14  ;;  %v3795_v56 = vadd.f32 %v4412_v52, %v3794_v19  ;;  %vm9451_vm14 = vcmp.lt.f32.partialorder %v1741_v16, 0.0  ;;  %vm9459_vm11 = vcmp.lt.f32.partialorder %v1750_v17, 0.0  ;;  %v12166_v19 = vld [vmem:[#allocation176_spill] sm:$0xff] }
 0x2ec   :  { %v4413_v38 = vsel %vm2757_vm7, 1.0, %v10716_v0  ;;  %vm2766_vm0 = vmand %vm12147_vm9, %vm9374_vm13  ;;  %vm9463_vm8 = vcmp.lt.f32.partialorder %v1751_v39, 0.0  ;;  %v1746_v13 = vsub.f32 %v1460_v41, %v7254_v61  ;;  %vm12159_vm13 = vnez %v12158_v11  ;;  %v12197_v11 = vld [vmem:[#allocation188_spill] sm:$0xff] }
 0x2ed   :  { %v3864_v24 = vadd.f32 %v4413_v38, %v3863_v26  ;;  %vm2767_vm6 = vmand %vm12153_vm15, %vm9378_vm1  ;;  %v4422_v58 = vsel %vm2766_vm0, 1.0, %v10716_v0  ;;  %v3658_v51 = vadd.f32 %v4414_v42, %v3657_v44  ;;  %vm9473_vm7 = vcmp.lt.f32.partialorder %v1752_v36, 0.0  ;;  %v12175_v44 = vld [vmem:[#allocation179_spill] sm:$0xff]  ;;  %v12185_v38 = vld [vmem:[#allocation182_spill] sm:$0xff] }
 0x2ee   :  { %vm2768_vm4 = vmand %vm12159_vm13, %vm9388_vm5  ;;  %vm9477_vm1 = vcmp.lt.f32.partialorder %v1753_v6, 0.0  ;;  %vm12165_vm9 = vnez %v12164_v43  ;;  %v4423_v46 = vsel %vm2767_vm6, 1.0, %v10716_v0  ;;  %v3727_v30 = vadd.f32 %v4415_v50, %v3726_v23  ;;  %v12224_v23 = vld [vmem:[#allocation191_spill] sm:$0xff] }
 0x2ef   :  { %v3796_v40 = vadd.f32 %v4416_v34, %v3795_v56  ;;  %v1747_v42 = vsub.f32 %v1460_v41, %v7258_v33  ;;  %v4424_v5 = vsel %vm2768_vm4, 1.0, %v10716_v0  ;;  %v3865_v21 = vadd.f32 %v4417_v18, %v3864_v24 }
 0x2f0   :  { %vm12167_vm5 = vnez %v12166_v19  ;;  %v1748_v10 = vsub.f32 %v1460_v41, %v7262_v1  ;;  %v1749_v26 = vsub.f32 %v1460_v41, %v7266_v53  ;;  %vm12169_vm6 = vnez %v12168_v28  ;;  %v12201_v19 = vld [vmem:[#allocation185_spill] sm:$0xff]  ;;  %v12205_v28 = vld [vmem:[#allocation186_spill] sm:$0xff] }
 0x2f1   :  { %vm2762_vm0 = vmand %vm12167_vm5, %vm9414_vm12  ;;  %vm9499_vm15 = vcmp.lt.f32.partialorder %v1746_v13, 0.0  ;;  %v1758_v48 = vsub.f32 %v1475_v8, %v7254_v61  ;;  %v1759_v16 = vsub.f32 %v1475_v8, %v7258_v33  ;;  %vm12173_vm12 = vnez %v12172_v2  ;;  %v1485_v13 = vpop.permute.xlu1 %1484  ;;  %v1480_v2 = vpop.permute.xlu0 %1479 }
 0x2f2   :  { %vm2763_vm13 = vmand %vm12169_vm6, %vm9438_vm10  ;;  %v4418_v50 = vsel %vm2762_vm0, 1.0, %v10716_v0  ;;  %v1760_v17 = vsub.f32 %v1475_v8, %v7262_v1  ;;  %v1761_v39 = vsub.f32 %v1475_v8, %v7266_v53  ;;  %vm12176_vm5 = vnez %v12175_v44 }
 0x2f3   :  { %vm2764_vm4 = vmand %vm12173_vm12, %vm9447_vm3  ;;  %v4419_v22 = vsel %vm2763_vm13, 1.0, %v10716_v0  ;;  %v3659_v49 = vadd.f32 %v4418_v50, %v3658_v51  ;;  %vm9523_vm0 = vcmp.lt.f32.partialorder %v1747_v42, 0.0  ;;  %vm9532_vm6 = vcmp.lt.f32.partialorder %v1748_v10, 0.0 }
 0x2f4   :  { %vm12174_vm10 = vmand %vm12165_vm9, %vm9392_vm2  ;;  %v4420_v36 = vsel %vm2764_vm4, 1.0, %v10716_v0  ;;  %v3728_v6 = vadd.f32 %v4419_v22, %v3727_v30  ;;  %vm12180_vm2 = vnez %v12179_v63  ;;  %vm12186_vm13 = vnez %v12185_v38  ;;  %v12308_v63 = vld [vmem:[#allocation207_spill] sm:$0xff] }
 0x2f5   :  { %v4425_v27 = vsel %vm12174_vm10, 1.0, %v10716_v0  ;;  %vm2765_vm3 = vmand %vm12176_vm5, %vm9451_vm14  ;;  %v3797_v57 = vadd.f32 %v4420_v36, %v3796_v40  ;;  %vm9536_vm14 = vcmp.lt.f32.partialorder %v1749_v26, 0.0  ;;  %vm9544_vm4 = vcmp.lt.f32.partialorder %v1758_v48, 0.0  ;;  %v12199_v40 = vld [vmem:[#allocation184_spill] sm:$0xff] }
 0x2f6   :  { %v4421_v18 = vsel %vm2765_vm3, 1.0, %v10716_v0  ;;  %vm2774_vm9 = vmand %vm12180_vm2, %vm9459_vm11  ;;  %vm9548_vm10 = vcmp.lt.f32.partialorder %v1759_v16, 0.0  ;;  %v1754_v62 = vsub.f32 %v1470_v35, %v7254_v61  ;;  %vm12192_vm11 = vnez %v12191_v60  ;;  %v12230_v60 = vld [vmem:[#allocation196_spill] sm:$0xff] }
 0x2f7   :  { %v3866_v4 = vadd.f32 %v4421_v18, %v3865_v21  ;;  %vm2775_vm12 = vmand %vm12186_vm13, %vm9463_vm8  ;;  %v4430_v24 = vsel %vm2774_vm9, 1.0, %v10716_v0  ;;  %v3660_v9 = vadd.f32 %v4422_v58, %v3659_v49  ;;  %vm9558_vm3 = vcmp.lt.f32.partialorder %v1760_v17, 0.0  ;;  %v12208_v49 = vld [vmem:[#allocation187_spill] sm:$0xff]  ;;  %v12218_v18 = vld [vmem:[#allocation190_spill] sm:$0xff] }
 0x2f8   :  { %vm2776_vm5 = vmand %vm12192_vm11, %vm9473_vm7  ;;  %vm9562_vm8 = vcmp.lt.f32.partialorder %v1761_v39, 0.0  ;;  %vm12198_vm2 = vnez %v12197_v11  ;;  %v4431_v51 = vsel %vm2775_vm12, 1.0, %v10716_v0  ;;  %v3729_v14 = vadd.f32 %v4423_v46, %v3728_v6  ;;  %v12257_v6 = vld [vmem:[#allocation199_spill] sm:$0xff] }
 0x2f9   :  { %v3798_v8 = vadd.f32 %v4424_v5, %v3797_v57  ;;  %v1755_v58 = vsub.f32 %v1470_v35, %v7258_v33  ;;  %v4432_v43 = vsel %vm2776_vm5, 1.0, %v10716_v0  ;;  %v3867_v30 = vadd.f32 %v4425_v27, %v3866_v4 }
 0x2fa   :  { %vm12200_vm7 = vnez %v12199_v40  ;;  %v1756_v42 = vsub.f32 %v1470_v35, %v7262_v1  ;;  %v1757_v21 = vsub.f32 %v1470_v35, %v7266_v53  ;;  %vm12202_vm12 = vnez %v12201_v19  ;;  %v12234_v40 = vld [vmem:[#allocation193_spill] sm:$0xff]  ;;  %v12238_v19 = vld [vmem:[#allocation194_spill] sm:$0xff] }
 0x2fb   :  { %vm2770_vm9 = vmand %vm12200_vm7, %vm9499_vm15  ;;  %vm9584_vm13 = vcmp.lt.f32.partialorder %v1754_v62, 0.0  ;;  %v1766_v10 = vsub.f32 %v1485_v13, %v7254_v61  ;;  %v1767_v26 = vsub.f32 %v1485_v13, %v7258_v33  ;;  %vm12206_vm15 = vnez %v12205_v28  ;;  %v1495_v62 = vpop.permute.xlu1 %1494  ;;  %v1490_v28 = vpop.permute.xlu0 %1489 }
 0x2fc   :  { %vm2771_vm11 = vmand %vm12202_vm12, %vm9523_vm0  ;;  %v4426_v46 = vsel %vm2770_vm9, 1.0, %v10716_v0  ;;  %v1768_v48 = vsub.f32 %v1485_v13, %v7262_v1  ;;  %v1769_v16 = vsub.f32 %v1485_v13, %v7266_v53  ;;  %vm12209_vm7 = vnez %v12208_v49 }
 0x2fd   :  { %vm2772_vm5 = vmand %vm12206_vm15, %vm9532_vm6  ;;  %v4427_v50 = vsel %vm2771_vm11, 1.0, %v10716_v0  ;;  %v3661_v34 = vadd.f32 %v4426_v46, %v3660_v9  ;;  %vm9608_vm9 = vcmp.lt.f32.partialorder %v1755_v58, 0.0  ;;  %vm9617_vm12 = vcmp.lt.f32.partialorder %v1756_v42, 0.0 }
 0x2fe   :  { %vm12207_vm0 = vmand %vm12198_vm2, %vm9477_vm1  ;;  %v4428_v17 = vsel %vm2772_vm5, 1.0, %v10716_v0  ;;  %v3730_v39 = vadd.f32 %v4427_v50, %v3729_v14  ;;  %vm12213_vm1 = vnez %v12212_v7  ;;  %vm12219_vm11 = vnez %v12218_v18 }
 0x2ff   :  { %v4433_v22 = vsel %vm12207_vm0, 1.0, %v10716_v0  ;;  %vm2773_vm6 = vmand %vm12209_vm7, %vm9536_vm14  ;;  %v3799_v44 = vadd.f32 %v4428_v17, %v3798_v8  ;;  %vm9621_vm14 = vcmp.lt.f32.partialorder %v1757_v21, 0.0  ;;  %vm9629_vm5 = vcmp.lt.f32.partialorder %v1766_v10, 0.0  ;;  %v12232_v8 = vld [vmem:[#allocation192_spill] sm:$0xff] }
 0x300   :  { %v4429_v27 = vsel %vm2773_vm6, 1.0, %v10716_v0  ;;  %vm2782_vm2 = vmand %vm12213_vm1, %vm9544_vm4  ;;  %vm9633_vm0 = vcmp.lt.f32.partialorder %v1767_v26, 0.0  ;;  %v1762_v52 = vsub.f32 %v1480_v2, %v7254_v61  ;;  %vm12225_vm4 = vnez %v12224_v23  ;;  %v12263_v23 = vld [vmem:[#allocation200_spill] sm:$0xff] }
 0x301   :  { %v3868_v41 = vadd.f32 %v4429_v27, %v3867_v30  ;;  %vm2783_vm15 = vmand %vm12219_vm11, %vm9548_vm10  ;;  %v4438_v4 = vsel %vm2782_vm2, 1.0, %v10716_v0  ;;  %v3662_v38 = vadd.f32 %v4430_v24, %v3661_v34  ;;  %vm9643_vm6 = vcmp.lt.f32.partialorder %v1768_v48, 0.0  ;;  %v12241_v34 = vld [vmem:[#allocation195_spill] sm:$0xff]  ;;  %v12251_v27 = vld [vmem:[#allocation198_spill] sm:$0xff] }
 0x302   :  { %vm2784_vm7 = vmand %vm12225_vm4, %vm9558_vm3  ;;  %vm9647_vm10 = vcmp.lt.f32.partialorder %v1769_v16, 0.0  ;;  %vm12231_vm1 = vnez %v12230_v60  ;;  %v4439_v9 = vsel %vm2783_vm15, 1.0, %v10716_v0  ;;  %v3731_v15 = vadd.f32 %v4431_v51, %v3730_v39 }
 0x303   :  { %v3800_v13 = vadd.f32 %v4432_v43, %v3799_v44  ;;  %v1763_v24 = vsub.f32 %v1480_v2, %v7258_v33  ;;  %v4440_v11 = vsel %vm2784_vm7, 1.0, %v10716_v0  ;;  %v3869_v14 = vadd.f32 %v4433_v22, %v3868_v41 }
 0x304   :  { %vm12233_vm3 = vnez %v12232_v8  ;;  %v1764_v58 = vsub.f32 %v1480_v2, %v7262_v1  ;;  %v1765_v30 = vsub.f32 %v1480_v2, %v7266_v53  ;;  %vm12235_vm15 = vnez %v12234_v40  ;;  %v12270_v8 = vld [vmem:[#allocation202_spill] sm:$0xff] }
 0x305   :  { %vm2778_vm2 = vmand %vm12233_vm3, %vm9584_vm13  ;;  %vm9669_vm11 = vcmp.lt.f32.partialorder %v1762_v52, 0.0  ;;  %v1774_v42 = vsub.f32 %v1495_v62, %v7254_v61  ;;  %v1775_v21 = vsub.f32 %v1495_v62, %v7258_v33  ;;  %vm12239_vm13 = vnez %v12238_v19  ;;  %v1505_v52 = vpop.permute.xlu1 %1504  ;;  %v12278_v19 = vld [vmem:[#allocation203_spill] sm:$0xff] }
 0x306   :  { %vm2779_vm4 = vmand %vm12235_vm15, %vm9608_vm9  ;;  %v4434_v51 = vsel %vm2778_vm2, 1.0, %v10716_v0  ;;  %v1776_v10 = vsub.f32 %v1495_v62, %v7262_v1  ;;  %v1777_v26 = vsub.f32 %v1495_v62, %v7266_v53  ;;  %vm12242_vm3 = vnez %v12241_v34 }
 0x307   :  { %vm2780_vm7 = vmand %vm12239_vm13, %vm9617_vm12  ;;  %v4435_v46 = vsel %vm2779_vm4, 1.0, %v10716_v0  ;;  %v3663_v5 = vadd.f32 %v4434_v51, %v3662_v38  ;;  %vm9693_vm2 = vcmp.lt.f32.partialorder %v1763_v24, 0.0  ;;  %vm9702_vm15 = vcmp.lt.f32.partialorder %v1764_v58, 0.0 }
 0x308   :  { %vm12240_vm9 = vmand %vm12231_vm1, %vm9562_vm8  ;;  %v4436_v48 = vsel %vm2780_vm7, 1.0, %v10716_v0  ;;  %v3732_v16 = vadd.f32 %v4435_v46, %v3731_v15  ;;  %vm12246_vm8 = vnez %v12245_v12  ;;  %vm12252_vm4 = vnez %v12251_v27  ;;  %v12295_v27 = vld [vmem:[#allocation205_spill] sm:$0xff] }
 0x309   :  { %v4441_v50 = vsel %vm12240_vm9, 1.0, %v10716_v0  ;;  %vm2781_vm12 = vmand %vm12242_vm3, %vm9621_vm14  ;;  %v3801_v49 = vadd.f32 %v4436_v48, %v3800_v13  ;;  %vm9706_vm14 = vcmp.lt.f32.partialorder %v1765_v30, 0.0  ;;  %vm9714_vm7 = vcmp.lt.f32.partialorder %v1774_v42, 0.0  ;;  %v12286_v48 = vld [vmem:[#allocation204_spill] sm:$0xff] }
 0x30a   :  { %v4437_v22 = vsel %vm2781_vm12, 1.0, %v10716_v0  ;;  %vm2790_vm1 = vmand %vm12246_vm8, %vm9629_vm5  ;;  %vm9718_vm9 = vcmp.lt.f32.partialorder %v1775_v21, 0.0  ;;  %v1770_v36 = vsub.f32 %v1490_v28, %v7254_v61  ;;  %vm12258_vm5 = vnez %v12257_v6  ;;  %v12301_v6 = vld [vmem:[#allocation206_spill] sm:$0xff] }
 0x30b   :  { %v3870_v35 = vadd.f32 %v4437_v22, %v3869_v14  ;;  %vm2791_vm13 = vmand %vm12252_vm4, %vm9633_vm0  ;;  %v4446_v41 = vsel %vm2790_vm1, 1.0, %v10716_v0  ;;  %v3664_v18 = vadd.f32 %v4438_v4, %v3663_v5  ;;  %vm9728_vm12 = vcmp.lt.f32.partialorder %v1776_v10, 0.0  ;;  %v12268_v14 = vld [vmem:[#allocation201_spill] sm:$0xff] }
 0x30c   :  { %vm2792_vm3 = vmand %vm12258_vm5, %vm9643_vm6  ;;  %vm9732_vm0 = vcmp.lt.f32.partialorder %v1777_v26, 0.0  ;;  %vm12264_vm8 = vnez %v12263_v23  ;;  %v4447_v38 = vsel %vm2791_vm13, 1.0, %v10716_v0  ;;  %v3733_v56 = vadd.f32 %v4439_v9, %v3732_v16  ;;  %v1500_v26 = vpop.permute.xlu0 %1499 }
 0x30d   :  { %v3802_v62 = vadd.f32 %v4440_v11, %v3801_v49  ;;  %v1771_v4 = vsub.f32 %v1490_v28, %v7258_v33  ;;  %v12265_v60 = vsub.f32 %v7157_v31, %v5042_v45  ;;  %v12266_v15 = vmov 0 }
 0x30e   :  { %v4448_v13 = vsel %vm2792_vm3, 1.0, %v10716_v0  ;;  %v3871_v24 = vadd.f32 %v4441_v50, %v3870_v35  ;;  %vm12269_vm1 = vnez %v12268_v14  ;;  %v1772_v9 = vsub.f32 %v1490_v28, %v7262_v1 }
 0x30f   :  { %vm9745_vm6 = vcmp.lt.f32.partialorder %v12265_v60, 0.0  ;;  %vm2786_vm5 = vmand %vm12269_vm1, %vm9669_vm11  ;;  %v1773_v11 = vsub.f32 %v1490_v28, %v7266_v53  ;;  %vm12271_vm13 = vnez %v12270_v8  ;;  %v1782_v40 = vsub.f32 %v1505_v52, %v7254_v61  ;;  %v12360_v8 = vld [vmem:[#allocation221_spill] sm:$0xff] }
 0x310   :  { %v12267_v15 = vsel %vm9745_vm6, 4294967295, %v12266_v15  ;;  %vm2787_vm4 = vmand %vm12271_vm13, %vm9693_vm2  ;;  %v4442_v58 = vsel %vm2786_vm5, 1.0, %v10716_v0  ;;  %vm9761_vm6 = vcmp.lt.f32.partialorder %v1770_v36, 0.0  ;;  %v1783_v51 = vsub.f32 %v1505_v52, %v7258_v33 }
 0x311   :  { %v12274_v43 = vsub.f32 %v7157_v31, %v5046_v47  ;;  %vm12277_vm2 = vmand %vm12264_vm8, %vm9647_vm10  ;;  %vm12279_vm3 = vnez %v12278_v19  ;;  %v4443_v46 = vsel %vm2787_vm4, 1.0, %v10716_v0  ;;  %v3665_v5 = vadd.f32 %v4442_v58, %v3664_v18  ;;  %v12316_v58 = vld [vmem:[#allocation209_spill] sm:$0xff] }
 0x312   :  { %v4449_v21 = vsel %vm12277_vm2, 1.0, %v10716_v0  ;;  %vm2788_vm1 = vmand %vm12279_vm3, %vm9702_vm15  ;;  %v1784_v10 = vsub.f32 %v1505_v52, %v7262_v1  ;;  %v12280_v28 = vsub.f32 %v7157_v31, %v5050_v54  ;;  %v12281_v50 = vmov 0 }
 0x313   :  { %vm9770_vm11 = vcmp.lt.f32.partialorder %v12274_v43, 0.0  ;;  %v12283_v3 = vsub.f32 %v7157_v31, %v5054_v55  ;;  %v12284_v34 = vmov 0  ;;  %vm12287_vm15 = vnez %v12286_v48 }
 0x314   :  { %vm9789_vm5 = vcmp.lt.f32.partialorder %v12280_v28, 0.0  ;;  %vm2789_vm8 = vmand %vm12287_vm15, %vm9706_vm14  ;;  %v4444_v16 = vsel %vm2788_vm1, 1.0, %v10716_v0  ;;  %v3734_v2 = vadd.f32 %v4443_v46, %v3733_v56  ;;  %vm9805_vm4 = vcmp.lt.f32.partialorder %v1771_v4, 0.0  ;;  %v12324_v28 = vld [vmem:[#allocation210_spill] sm:$0xff]  ;;  %v12365_v46 = vld [vmem:[#allocation223_spill] sm:$0xff] }
 0x315   :  { %v12282_v50 = vsel %vm9789_vm5, 4294967295, %v12281_v50  ;;  %vm9796_vm10 = vcmp.lt.f32.partialorder %v12283_v3, 0.0  ;;  %v1785_v49 = vsub.f32 %v1505_v52, %v7266_v53  ;;  %v4445_v31 = vsel %vm2789_vm8, 1.0, %v10716_v0 }
 0x316   :  { %v12285_v34 = vsel %vm9796_vm10, 4294967295, %v12284_v34  ;;  %v3803_v12 = vadd.f32 %v4444_v16, %v3802_v62  ;;  %vm12290_vm13 = vnez %v11294_v29  ;;  %vm9815_vm3 = vcmp.lt.f32.partialorder %v1772_v9, 0.0  ;;  %v12310_v9 = vld [vmem:[#allocation208_spill] sm:$0xff]  ;;  %v12327_v16 = vld [vmem:[#allocation211_spill] sm:$0xff] }
 0x317   :  { %vm2798_vm2 = vmand %vm12290_vm13, %vm9714_vm7  ;;  %vm9819_vm14 = vcmp.lt.f32.partialorder %v1773_v11, 0.0  ;;  %v3872_v35 = vadd.f32 %v4445_v31, %v3871_v24  ;;  %vm12296_vm1 = vnez %v12295_v27  ;;  %vm9827_vm8 = vcmp.lt.f32.partialorder %v1782_v40, 0.0  ;;  %v12331_v31 = vld [vmem:[#allocation212_spill] sm:$0xff]  ;;  %v12333_v27 = vld [vmem:[#allocation213_spill] sm:$0xff] }
 0x318   :  { %vm2799_vm15 = vmand %vm12296_vm1, %vm9718_vm9  ;;  %vm9831_vm10 = vcmp.lt.f32.partialorder %v1783_v51, 0.0  ;;  %v12299_v29 = vmov 0  ;;  %v1778_v44 = vsub.f32 %v1500_v26, %v7254_v61  ;;  %vm12302_vm7 = vnez %v12301_v6  ;;  %v12363_v51 = vld [vmem:[#allocation222_spill] sm:$0xff] }
 0x319   :  { %v12300_v29 = vsel %vm9831_vm10, 4294967295, %v12299_v29  ;;  %vm2800_vm13 = vmand %vm12302_vm7, %vm9728_vm12  ;;  %v3666_v18 = vadd.f32 %v4446_v41, %v3665_v5  ;;  %vm9840_vm5 = vcmp.lt.f32.partialorder %v1784_v10, 0.0  ;;  %v1779_v52 = vsub.f32 %v1500_v26, %v7258_v33 }
 0x31a   :  { %v1780_v23 = vsub.f32 %v1500_v26, %v7262_v1  ;;  %vm12305_vm9 = vnez %v11313_v25  ;;  %v4454_v56 = vsel %vm2798_vm2, 1.0, %v10716_v0  ;;  %v3735_v57 = vadd.f32 %v4447_v38, %v3734_v2  ;;  %v9862_v25 = vpop.permute.xlu1 %1514 }
 0x31b   :  { %vm2801_vm1 = vmand %vm12305_vm9, %vm9732_vm0  ;;  %vm9851_vm10 = vcmp.lt.f32.partialorder %v1785_v49, 0.0  ;;  %v12306_v62 = vmov 0  ;;  %v1781_v41 = vsub.f32 %v1500_v26, %v7266_v53  ;;  %v4455_v4 = vsel %vm2799_vm15, 1.0, %v10716_v0 }
 0x31c   :  { %v12307_v62 = vsel %vm9851_vm10, 4294967295, %v12306_v62  ;;  %v4456_v60 = vsel %vm2800_vm13, 1.0, %v10716_v0  ;;  %v3804_v24 = vadd.f32 %v4448_v13, %v3803_v12  ;;  %v3873_v14 = vadd.f32 %v4449_v21, %v3872_v35 }
 0x31d   :  { %vm12309_vm12 = vnez %v12308_v63  ;;  %v4457_v38 = vsel %vm2801_vm1, 1.0, %v10716_v0  ;;  %vm12311_vm2 = vnez %v12310_v9  ;;  %vm9870_vm15 = vcmp.lt.f32.partialorder %v1778_v44, 0.0  ;;  %v12355_v63 = vld [vmem:[#allocation220_spill] sm:$0xff]  ;;  %v12359_v9 = vld [vmem:[#allocation214_spill] sm:$0xff] }
 0x31e   :  { %vm2794_vm0 = vmand %vm12309_vm12, %vm9761_vm6  ;;  %vm9874_vm13 = vcmp.lt.f32.partialorder %v1779_v52, 0.0  ;;  %vm12317_vm6 = vnez %v12316_v58  ;;  %vm9883_vm1 = vcmp.lt.f32.partialorder %v1780_v23, 0.0  ;;  %vm12321_vm12 = vnez %v11311_v32  ;;  %v12340_v52 = vld [vmem:[#allocation218_spill] sm:$0xff] }
 0x31f   :  { %vm2795_vm7 = vmand %vm12311_vm2, %vm9805_vm4  ;;  %v4450_v11 = vsel %vm2794_vm0, 1.0, %v10716_v0  ;;  %vm12320_vm4 = vnez %v12267_v15  ;;  %v1790_v5 = vsub.f32 %v9862_v25, %v7254_v61  ;;  %vm12325_vm2 = vnez %v12324_v28 }
 0x320   :  { %vm2796_vm9 = vmand %vm12317_vm6, %vm9815_vm3  ;;  %v4451_v30 = vsel %vm2795_vm7, 1.0, %v10716_v0  ;;  %v3667_v40 = vadd.f32 %v4450_v11, %v3666_v18  ;;  %v4214_v43 = vsel %vm12320_vm4, 1.0, %v10716_v0  ;;  %vm9895_vm3 = vcmp.lt.f32.partialorder %v1781_v41, 0.0 }
 0x321   :  { %vm2797_vm0 = vmand %vm12321_vm12, %vm9819_vm14  ;;  %v4452_v21 = vsel %vm2796_vm9, 1.0, %v10716_v0  ;;  %v3736_v19 = vadd.f32 %v4451_v30, %v3735_v57  ;;  %v4215_v32 = vsel %vm9770_vm11, 1.0, %v10716_v0  ;;  %v1791_v3 = vsub.f32 %v9862_v25, %v7258_v33  ;;  %v12362_v30 = vld [vmem:[#allocation215_spill] sm:$0xff] }
 0x322   :  { %v4453_v10 = vsel %vm2797_vm0, 1.0, %v10716_v0  ;;  %v3805_v26 = vadd.f32 %v4452_v21, %v3804_v24  ;;  %vm2806_vm7 = vmand %vm12325_vm2, %vm9827_vm8  ;;  %vm12326_vm14 = vnez %v12300_v29  ;;  %vm12328_vm6 = vnez %v12327_v16  ;;  %v12364_v21 = vld [vmem:[#allocation216_spill] sm:$0xff] }
 0x323   :  { %v3874_v48 = vadd.f32 %v4453_v10, %v3873_v14  ;;  %vm2807_vm9 = vmand %vm12328_vm6, %vm12326_vm14  ;;  %vm12329_vm12 = vnez %v12282_v50  ;;  %vm12330_vm8 = vnez %v12285_v34  ;;  %v1792_v49 = vsub.f32 %v9862_v25, %v7262_v1 }
 0x324   :  { %v4216_v2 = vsel %vm12329_vm12, 1.0, %v10716_v0  ;;  %v4217_v22 = vsel %vm12330_vm8, 1.0, %v10716_v0  ;;  %vm12332_vm0 = vnez %v12331_v31  ;;  %v4462_v12 = vsel %vm2806_vm7, 1.0, %v10716_v0 }
 0x325   :  { %vm2808_vm2 = vmand %vm12332_vm0, %vm9840_vm5  ;;  %v3668_v17 = vadd.f32 %v4454_v56, %v3667_v40  ;;  %v3737_v39 = vadd.f32 %v4455_v4, %v3736_v19  ;;  %v1793_v35 = vsub.f32 %v9862_v25, %v7266_v53  ;;  %v4463_v36 = vsel %vm2807_vm9, 1.0, %v10716_v0 }
 0x326   :  { %v3806_v29 = vadd.f32 %v4456_v60, %v3805_v26  ;;  %vm9935_vm8 = vcmp.lt.f32.partialorder %v1790_v5, 0.0  ;;  %v12337_v6 = vsub.f32 %v7187_v20, %v5042_v45  ;;  %v4464_v7 = vsel %vm2808_vm2, 1.0, %v10716_v0  ;;  %v12350_v60 = vld [vmem:[#allocation219_spill] sm:$0xff]  ;;  %v12366_v26 = vld [vmem:[#allocation217_spill] sm:$0xff] }
 0x327   :  { %vm12341_vm7 = vnez %v12340_v52  ;;  %vm9951_vm9 = vcmp.lt.f32.partialorder %v1791_v3, 0.0  ;;  %v12344_v56 = vsub.f32 %v7187_v20, %v5046_v47  ;;  %v12347_v57 = vsub.f32 %v7187_v20, %v5050_v54 }
 0x328   :  { %vm9942_vm5 = vcmp.lt.f32.partialorder %v12337_v6, 0.0  ;;  %vm2802_vm0 = vmand %vm12341_vm7, %vm9870_vm15  ;;  %v3875_v4 = vadd.f32 %v4457_v38, %v3874_v48  ;;  %vm12351_vm15 = vnez %v12350_v60  ;;  %v12352_v47 = vsub.f32 %v7187_v20, %v5054_v55 }
 0x329   :  { %vm9958_vm6 = vcmp.lt.f32.partialorder %v12344_v56, 0.0  ;;  %vm9965_vm2 = vcmp.lt.f32.partialorder %v12347_v57, 0.0  ;;  %vm2803_vm7 = vmand %vm12351_vm15, %vm9874_vm13  ;;  %v4458_v24 = vsel %vm2802_vm0, 1.0, %v10716_v0  ;;  %v4210_v54 = vsel %vm9942_vm5, 1.0, %v10716_v0 }
 0x32a   :  { %vm9977_vm12 = vcmp.lt.f32.partialorder %v12352_v47, 0.0  ;;  %vm12356_vm10 = vnez %v12355_v63  ;;  %v4459_v25 = vsel %vm2803_vm7, 1.0, %v10716_v0  ;;  %vm9989_vm13 = vcmp.lt.f32.partialorder %v1792_v49, 0.0  ;;  %vm2814_vm0 = vmand %vm12320_vm4, %vm9935_vm8 }
 0x32b   :  { %vm2804_vm14 = vmand %vm12356_vm10, %vm9883_vm1  ;;  %v4211_v55 = vsel %vm9958_vm6, 1.0, %v10716_v0  ;;  %v4212_v20 = vsel %vm9965_vm2, 1.0, %v10716_v0  ;;  %v3390_v11 = vadd.f32 %v12359_v9, %v7271_v37  ;;  %vm12361_vm10 = vnez %v12360_v8 }
 0x32c   :  { %vm2805_vm1 = vmand %vm12361_vm10, %vm9895_vm3  ;;  %v4460_v13 = vsel %vm2804_vm14, 1.0, %v10716_v0  ;;  %v3669_v58 = vadd.f32 %v4458_v24, %v3668_v17  ;;  %v3459_v40 = vadd.f32 %v12362_v30, %v7273_v59  ;;  %v3528_v19 = vadd.f32 %v12364_v21, %v12363_v51 }
 0x32d   :  { %v4461_v5 = vsel %vm2805_vm1, 1.0, %v10716_v0  ;;  %v3738_v10 = vadd.f32 %v4459_v25, %v3737_v39  ;;  %v3391_v37 = vadd.f32 %v4210_v54, %v3390_v11  ;;  %v3597_v28 = vadd.f32 %v12366_v26, %v12365_v46  ;;  %vm2815_vm3 = vmand %vm9770_vm11, %vm9951_vm9 }
 0x32e   :  { %v3807_v3 = vadd.f32 %v4460_v13, %v3806_v29  ;;  %v4213_v59 = vsel %vm9977_vm12, 1.0, %v10716_v0  ;;  %v3460_v48 = vadd.f32 %v4211_v55, %v3459_v40  ;;  %v3529_v16 = vadd.f32 %v4212_v20, %v3528_v19 }
 0x32f   :  { %vm12367_vm14 = vnez %v12333_v27  ;;  %vm12368_vm4 = vnez %v12307_v62  ;;  %v3876_v49 = vadd.f32 %v4461_v5, %v3875_v4  ;;  %v3392_v31 = vadd.f32 %v4214_v43, %v3391_v37  ;;  %v1510_v62 = vpop.permute.xlu0 %1509 }
 0x330   :  { %vm12369_vm8 = vmand %vm12367_vm14, %vm12368_vm4  ;;  %v3598_v17 = vadd.f32 %v4213_v59, %v3597_v28  ;;  %vm10030_vm15 = vcmp.lt.f32.partialorder %v1793_v35, 0.0  ;;  %v4470_v42 = vsel %vm2814_vm0, 1.0, %v10716_v0  ;;  %v4471_v29 = vsel %vm2815_vm3, 1.0, %v10716_v0 }
 0x331   :  { %v4465_v15 = vsel %vm12369_vm8, 1.0, %v10716_v0  ;;  %v3461_v44 = vadd.f32 %v4215_v32, %v3460_v48  ;;  %v3530_v6 = vadd.f32 %v4216_v2, %v3529_v16  ;;  %v3393_v52 = vrot.slane %v3392_v31, 4 }
 0x332   :  { %v3599_v23 = vadd.f32 %v4217_v22, %v3598_v17  ;;  %v3670_v27 = vadd.f32 %v4462_v12, %v3669_v58  ;;  %v3739_v56 = vadd.f32 %v4463_v36, %v3738_v10  ;;  %v3808_v4 = vadd.f32 %v4464_v7, %v3807_v3 }
 0x333   :  { %v3462_v57 = vrot.slane %v3461_v44, 4  ;;  %v3531_v60 = vrot.slane %v3530_v6, 4  ;;  %v3394_v43 = vadd.f32 %v3393_v52, %v3392_v31  ;;  %v3877_v35 = vadd.f32 %v4465_v15, %v3876_v49 }
 0x334   :  { %v3600_v24 = vrot.slane %v3599_v23, 4  ;;  %v4481_v47 = vmov 1966171168   ;;  %v1786_v55 = vsub.f32 %v1510_v62, %v7254_v61  ;;  %v1787_v32 = vsub.f32 %v1510_v62, %v7258_v33  ;;  %v12373_v61 = vld [vmem:[#allocation2_spill] sm:$0xff] }
 0x335   :  { %v3897_v54 = vunpack.c.l.s4 %v4481_v47  ;;  %v3463_v63 = vadd.f32 %v3462_v57, %v3461_v44  ;;  %v3532_v25 = vadd.f32 %v3531_v60, %v3530_v6  ;;  %v3395_v2 = vrot.slane %v3394_v43, 2 }
 0x336   :  { %v3601_v20 = vadd.f32 %v3600_v24, %v3599_v23  ;;  %v1788_v12 = vsub.f32 %v1510_v62, %v7262_v1  ;;  %vm12372_vm11 = vnez %v12282_v50  ;;  %v1789_v9 = vsub.f32 %v1510_v62, %v7266_v53 }
 0x337   :  { %v3898_v22 = vunpack.c.0.s8 %v3897_v54  ;;  %vm2816_vm9 = vmand %vm12372_vm11, %vm9989_vm13  ;;  %v3464_v36 = vrot.slane %v3463_v63, 2  ;;  %v3533_v7 = vrot.slane %v3532_v25, 2  ;;  %vm2042_vm7 = vcmp.lt.f32.partialorder %v1786_v55, 0.0 }
 0x338   :  { %v3396_v11 = vadd.f32 %v3395_v2, %v3394_v43  ;;  %v3602_v8 = vrot.slane %v3601_v20, 2  ;;  %vm2043_vm10 = vcmp.lt.f32.partialorder %v1787_v32, 0.0  ;;  %vm2810_vm1 = vmand %vm9942_vm5, %vm2042_vm7  ;;  %vm2044_vm0 = vcmp.lt.f32.partialorder %v1788_v12, 0.0 }
 0x339   :  { %v10045_v13 = vsub.s32 %v3898_v22, %v12373_v61  ;;  %v3465_v1 = vadd.f32 %v3464_v36, %v3463_v63  ;;  %v3534_v33 = vadd.f32 %v3533_v7, %v3532_v25  ;;  %vm10049_vm3 = vcmp.lt.f32.partialorder %v1789_v9, 0.0  ;;  %vm2811_vm14 = vmand %vm9958_vm6, %vm2043_vm10 }
 0x33a   :  { %v3397_v53 = vrot.slane %v3396_v11, 1  ;;  %v3603_v30 = vadd.f32 %v3602_v8, %v3601_v20  ;;  %vm2812_vm4 = vmand %vm9965_vm2, %vm2044_vm0  ;;  %v4466_v40 = vsel %vm2810_vm1, 1.0, %v10716_v0  ;;  %v4467_v18 = vsel %vm2811_vm14, 1.0, %v10716_v0 }
 0x33b   :  { %v3466_v51 = vrot.slane %v3465_v1, 1  ;;  %v3535_v21 = vrot.slane %v3534_v33, 1  ;;  %vm2813_vm5 = vmand %vm9977_vm12, %vm10049_vm3  ;;  %v4468_v19 = vsel %vm2812_vm4, 1.0, %v10716_v0  ;;  %v3671_v45 = vadd.f32 %v4466_v40, %v3670_v27 }
 0x33c   :  { %vm12376_vm6 = vnez %v12285_v34  ;;  %v3398_v41 = vadd.f32 %v3397_v53, %v3396_v11  ;;  %v3604_v5 = vrot.slane %v3603_v30, 1  ;;  %v4469_v10 = vsel %vm2813_vm5, 1.0, %v10716_v0 }
 0x33d   :  { %vm2817_vm8 = vmand %vm12376_vm6, %vm10030_vm15  ;;  %v3740_v37 = vadd.f32 %v4467_v18, %v3739_v56  ;;  %v3467_v46 = vadd.f32 %v3466_v51, %v3465_v1  ;;  %v3536_v26 = vadd.f32 %v3535_v21, %v3534_v33  ;;  %v3672_v28 = vadd.f32 %v4470_v42, %v3671_v45 }
 0x33e   :  { %v3809_v3 = vadd.f32 %v4468_v19, %v3808_v4  ;;  %v4472_v14 = vsel %vm2816_vm9, 1.0, %v10716_v0  ;;  %v3605_v59 = vadd.f32 %v3604_v5, %v3603_v30  ;;  %v3878_v34 = vadd.f32 %v4469_v10, %v3877_v35 }
 0x33f   :  { %v3741_v48 = vadd.f32 %v4471_v29, %v3740_v37  ;;  %v4473_v16 = vsel %vm2817_vm8, 1.0, %v10716_v0  ;;  %v3894_v15 = vcombine.low %v3398_v41, %v3467_v46  ;;  %v3673_v49 = vrot.slane %v3672_v28, 4 }
 0x340   :  { %v3810_v31 = vadd.f32 %v4472_v14, %v3809_v3  ;;  %v3895_v17 = vcombine.low %v3536_v26, %v3605_v59  ;;  %v3879_v44 = vadd.f32 %v4473_v16, %v3878_v34  ;;  %v12377_v0 = vlaneseq }
 0x341   :  { %v3742_v39 = vrot.slane %v3741_v48, 4  ;;  %v3902_v42 = vrot.slane %v3894_v15, %v10045_v13  ;;  %v3674_v6 = vadd.f32 %v3673_v49, %v3672_v28 }
 0x342   :  { %v3811_v52 = vrot.slane %v3810_v31, 4  ;;  %v3909_v50 = vrot.slane %v3895_v17, %v10045_v13  ;;  %v3880_v23 = vrot.slane %v3879_v44, 4  ;;  %vm10079_vm12 = vcmp.lt.s32.totalorder %v12377_v0, 512 }
 0x343   :  { %v3743_v38 = vadd.f32 %v3742_v39, %v3741_v48  ;;  %v3675_v27 = vrot.slane %v3674_v6, 2 }
 0x344   :  { %v3812_v56 = vadd.f32 %v3811_v52, %v3810_v31  ;;  %v3910_v29 = vcombine.low %v3902_v42, %v3909_v50  ;;  %v3881_v57 = vadd.f32 %v3880_v23, %v3879_v44 }
 0x345   :  { %v3744_v62 = vrot.slane %v3743_v38, 2  ;;  %v3676_v4 = vadd.f32 %v3675_v27, %v3674_v6 }
 0x346   :  { %v3813_v43 = vrot.slane %v3812_v56, 2  ;;  %v3917_v24 = vrot.slane %v3910_v29, %v10045_v13  ;;  %v3882_v47 = vrot.slane %v3881_v57, 2 }
 0x347   :  { %v3745_v35 = vadd.f32 %v3744_v62, %v3743_v38  ;;  %v3677_v54 = vrot.slane %v3676_v4, 1 }
 0x348   :  { %v3814_v63 = vadd.f32 %v3813_v43, %v3812_v56  ;;  %3923 = vst.msk [vmem:[%s10102_s5] sm:$0xf] %vm10079_vm12, %v3917_v24  ;;  %v3883_v55 = vadd.f32 %v3882_v47, %v3881_v57 }
 0x349   :  { %v3746_v25 = vrot.slane %v3745_v35, 1  ;;  %v3678_v32 = vadd.f32 %v3677_v54, %v3676_v4 }
 0x34a   :  { %v3815_v2 = vrot.slane %v3814_v63, 1  ;;  %v3884_v22 = vrot.slane %v3883_v55, 1 }
 0x34b   :  { %v3747_v20 = vadd.f32 %v3746_v25, %v3745_v35 }
 0x34c   :  { %v3816_v12 = vadd.f32 %v3815_v2, %v3814_v63  ;;  %v3885_v36 = vadd.f32 %v3884_v22, %v3883_v55 }
 0x34d   :  { %v3928_v7 = vcombine.low %v3678_v32, %v3747_v20 }
 0x34e   :  { %v3929_v9 = vcombine.low %v3816_v12, %v3885_v36 }
 0x34f   :  { %v3936_v11 = vrot.slane %v3928_v7, %v10045_v13 }
 0x350   :  { %v3943_v8 = vrot.slane %v3929_v9, %v10045_v13 }
 0x352   :  { %v3944_v61 = vcombine.low %v3936_v11, %v3943_v8 }
 0x354   :  { %v3951_v1 = vrot.slane %v3944_v61, %v10045_v13 }
 0x356   :  { %3953 = vst.msk [vmem:[%s10103_s6] sm:$0xf] %vm10079_vm12, %v3951_v1 }

</bundles_post_ra>
